<compile_context>
chip_gen: v5e
topology: v5e:2x2
jax: 0.10.0
libtpu: 0.0.40
codegen_flags: <defaults>
</compile_context>

<pallas_src>
import functools

import jax
import jax.numpy as jnp
from jax import lax
from jax.experimental import pallas as pl
from jax.experimental.pallas import tpu as pltpu


# ---------------------------------------------------------------------------
# Fused Bottleneck kernel (one grid step == one batch element, fully in VMEM)
# ---------------------------------------------------------------------------
def _bottleneck_kernel(*refs, planes, has_downsample):
    if has_downsample:
        x_ref, w1_ref, w2_ref, w3_ref, wd_ref, o_ref, hcat_ref = refs
    else:
        x_ref, w1_ref, w2_ref, w3_ref, o_ref, hcat_ref = refs
        wd_ref = None

    _, H, W, Cin = x_ref.shape
    Cout = o_ref.shape[-1]
    P = planes

    # --- load x once (f32); bf16 copy only where it feeds the MXU ------------
    x2d = x_ref[0].reshape(H * W, Cin)                       # (H*W, Cin) f32
    x2d_bf = x2d.astype(jnp.bfloat16)

    # --- conv1 (1x1) + ReLU ---------------------------------------------------
    h1 = jnp.dot(x2d_bf, w1_ref[...], preferred_element_type=jnp.float32)
    h1 = jnp.maximum(h1, 0.0).reshape(H, W, P)               # (H, W, P) f32

    # --- build dx-concatenated conv2 operand in VMEM scratch ------------------
    # hcat[r, x, dx*P:(dx+1)*P] = h1_pad[r, x+dx]  (halo in H only; zero edge
    # columns injected via mask).  Rows 0 and H+1 are the zero H-halo.
    zrow = jnp.zeros((W, 3 * P), jnp.bfloat16)
    hcat_ref[0] = zrow
    hcat_ref[H + 1] = zrow
    col = lax.broadcasted_iota(jnp.int32, (H, W, P), 1)
    left = jnp.where(col == 0, 0.0, pltpu.roll(h1, shift=1, axis=1))           # h1[y, x-1]
    right = jnp.where(col == W - 1, 0.0, pltpu.roll(h1, shift=W - 1, axis=1))  # h1[y, x+1]
    hcat_ref[1:H + 1, :, 0:P] = left.astype(jnp.bfloat16)
    hcat_ref[1:H + 1, :, P:2 * P] = h1.astype(jnp.bfloat16)
    hcat_ref[1:H + 1, :, 2 * P:3 * P] = right.astype(jnp.bfloat16)

    # --- conv2 (3x3, padding=1, stride=1): 3 dy matmuls, K = 3*P, f32 acc -----
    acc = jnp.zeros((H * W, P), jnp.float32)
    for dy in range(3):                       # static unroll; chained acc -> MRB on v7x
        tap = hcat_ref[dy:dy + H].reshape(H * W, 3 * P)      # aligned whole-slab slice
        acc = acc + jnp.dot(tap, w2_ref[dy], preferred_element_type=jnp.float32)
    h2 = jnp.maximum(acc, 0.0).astype(jnp.bfloat16)          # (H*W, P)

    # --- conv3 (1x1) + residual (+ optional 1x1 downsample) + ReLU ------------
    # TODO(synk): when downsample is present, fuse [h2 | x] @ [w3 ; wd] into a single
    # K = P + Cin matmul to drop the second result-pop + VPU add on v5e/v6e.
    out = jnp.dot(h2, w3_ref[...], preferred_element_type=jnp.float32)
    if has_downsample:
        out = out + jnp.dot(x2d_bf, wd_ref[...], preferred_element_type=jnp.float32)
    else:
        out = out + x2d                                      # full-precision identity residual
    o_ref[0] = jnp.maximum(out, 0.0).reshape(H, W, Cout).astype(o_ref.dtype)


def bottleneck(x, w1, w2, w3, wd=None, *, stride=1, out_dtype=jnp.bfloat16):
    """Fused Bottleneck forward.

    x : (B, H, W, Cin) f32 NHWC (streamed f32; cast to bf16 inside the kernel)
    w1: (Cin, planes)          conv1 1x1          (bf16 preferred)
    w2: (3, 3, planes, planes) conv2 3x3, pad=1   (bf16 preferred)
    w3: (planes, Cout)         conv3 1x1          (bf16 preferred)
    wd: (Cin, Cout) or None    optional downsample 1x1 conv
    """
    assert stride == 1, "TODO(synk): stride > 1 (strided conv2 / downsample) not implemented"
    B, H, W, Cin = x.shape
    planes = w1.shape[1]
    Cout = w3.shape[1]
    has_ds = wd is not None
    if not has_ds:
        assert Cin == Cout, "identity residual requires inplanes == outplanes"

    # Weights in bf16 (no-op if caller already stores them in bf16); x stays f32.
    args = [x,
            w1.astype(jnp.bfloat16),
            w2.astype(jnp.bfloat16).reshape(3, 3 * planes, planes),   # [dy, dx*P+c, o]
            w3.astype(jnp.bfloat16)]
    in_specs = [
        pl.BlockSpec((1, H, W, Cin), lambda b: (b, 0, 0, 0)),
        pl.BlockSpec((Cin, planes), lambda b: (0, 0)),
        pl.BlockSpec((3, 3 * planes, planes), lambda b: (0, 0, 0)),
        pl.BlockSpec((planes, Cout), lambda b: (0, 0)),
    ]
    if has_ds:
        args.append(wd.astype(jnp.bfloat16))
        in_specs.append(pl.BlockSpec((Cin, Cout), lambda b: (0, 0)))

    kernel = functools.partial(_bottleneck_kernel, planes=planes, has_downsample=has_ds)

    # TODO(synk): at real model sizes (H=W>=64, Cin=2048) add spatial tiling:
    # grid=(B, H//TH), input blocks (1, TH+2, W, Cin) with halo rows, output blocks
    # (1, TH, W, Cout); single-buffer the constant-index weight specs
    # (pipeline_mode=pl.Buffered(1)) and set vmem_limit_bytes per chip
    # (budget ~48 MiB on v7x, ~100 MiB on v5e/v6e).
    return pl.pallas_call(
        kernel,
        out_shape=jax.ShapeDtypeStruct((B, H, W, Cout), out_dtype),
        grid_spec=pltpu.PrefetchScalarGridSpec(
            num_scalar_prefetch=0,
            grid=(B,),
            in_specs=in_specs,
            out_specs=pl.BlockSpec((1, H, W, Cout), lambda b: (b, 0, 0, 0)),
            scratch_shapes=[pltpu.VMEM((H + 2, W, 3 * planes), jnp.bfloat16)],
        ),
        compiler_params=pltpu.CompilerParams(
            dimension_semantics=("parallel",)),
    )(*args)


# ---------------------------------------------------------------------------
# Pure-JAX reference (emulates the kernel's bf16-operand / f32-accumulate numerics)
# ---------------------------------------------------------------------------
def bottleneck_reference(x, w1, w2, w3, wd=None):
    bf = lambda a: a.astype(jnp.bfloat16).astype(jnp.float32)
    xb = bf(x)
    h = jnp.einsum('bhwc,cd->bhwd', xb, bf(w1), precision=lax.Precision.HIGHEST)
    h = bf(jnp.maximum(h, 0.0))
    h = lax.conv_general_dilated(
        h, bf(w2), window_strides=(1, 1), padding=((1, 1), (1, 1)),
        dimension_numbers=('NHWC', 'HWIO', 'NHWC'),
        precision=lax.Precision.HIGHEST)
    h = bf(jnp.maximum(h, 0.0))
    out = jnp.einsum('bhwc,cd->bhwd', h, bf(w3), precision=lax.Precision.HIGHEST)
    if wd is not None:
        res = jnp.einsum('bhwc,cd->bhwd', xb, bf(wd), precision=lax.Precision.HIGHEST)
    else:
        res = x                                   # full-precision identity residual
    return jnp.maximum(out + res, 0.0)


# ---------------------------------------------------------------------------
if __name__ == "__main__":
    key = jax.random.PRNGKey(0)
    kx, k1, k2, k3, kd = jax.random.split(key, 5)

    B, H, W = 2, 16, 16
    CIN, PLANES, COUT = 256, 128, 256      # lane-dense (multiples of 128)

    x = jax.random.normal(kx, (B, H, W, CIN), jnp.float32)
    w1 = jax.random.normal(k1, (CIN, PLANES), jnp.float32) * 0.05
    w2 = jax.random.normal(k2, (3, 3, PLANES, PLANES), jnp.float32) * 0.05
    w3 = jax.random.normal(k3, (PLANES, COUT), jnp.float32) * 0.05
    wd = jax.random.normal(kd, (CIN, COUT), jnp.float32) * 0.05

    # Weights stored persistently in bf16 (MXU operand dtype); activations stay f32.
    w1b, w2b, w3b, wdb = (w.astype(jnp.bfloat16) for w in (w1, w2, w3, wd))

    # --- with downsample (1x1 conv residual projection), f32 output, tight check
    fn_f32 = jax.jit(functools.partial(bottleneck, out_dtype=jnp.float32))
    y = jax.block_until_ready(fn_f32(x, w1b, w2b, w3b, wdb))
    y_ref = bottleneck_reference(x, w1, w2, w3, wd)
    assert y.shape == (B, H, W, COUT) and y.dtype == jnp.float32
    assert bool(jnp.all(jnp.isfinite(y)))
    err = float(jnp.max(jnp.abs(y - y_ref)))
    assert err < 2e-2, f"mismatch vs reference (downsample): {err}"

    # --- identity residual (downsample=None), default bf16 output ---------------
    w3_id = jax.random.normal(k3, (PLANES, CIN), jnp.float32) * 0.05
    y2 = jax.block_until_ready(jax.jit(bottleneck)(x, w1b, w2b, w3_id.astype(jnp.bfloat16)))
    y2_ref = bottleneck_reference(x, w1, w2, w3_id)
    assert y2.shape == (B, H, W, CIN) and y2.dtype == jnp.bfloat16
    assert bool(jnp.all(jnp.isfinite(y2)))
    err2 = float(jnp.max(jnp.abs(y2.astype(jnp.float32) - y2_ref)))
    tol2 = 1e-2 + 8e-3 * float(jnp.max(jnp.abs(y2_ref)))   # bf16-output tolerance
    assert err2 < tol2, f"mismatch vs reference (identity, bf16 out): {err2} vs {tol2}"

    print("KERNEL_OK")
</pallas_src>

<mosaic_0001>
module attributes {stable_mosaic.version = 11 : i64} {
  func.func @_bottleneck_kernel(%arg0: i32, %arg1: memref<1x16x16x256xf32, #tpu.memory_space<vmem>>, %arg2: memref<256x128xbf16, #tpu.memory_space<vmem>>, %arg3: memref<3x384x128xbf16, #tpu.memory_space<vmem>>, %arg4: memref<128x256xbf16, #tpu.memory_space<vmem>>, %arg5: memref<256x256xbf16, #tpu.memory_space<vmem>>, %arg6: memref<1x16x16x256xf32, #tpu.memory_space<vmem>>, %arg7: memref<18x16x384xbf16, #tpu.memory_space<vmem>>) attributes {dimension_semantics = [#tpu.dimension_semantics<parallel>], iteration_bounds = array<i64: 2>, scalar_prefetch = 0 : i64, scratch_operands = 1 : i64, tpu.core_type = #tpu.core_type<tc>, window_params = [{transform_indices = @transform_0, window_bounds = array<i64: 1, 16, 16, 256>}, {pipeline_mode = #tpu.pipeline_mode<synchronous>, transform_indices = @transform_1, window_bounds = array<i64: 256, 128>}, {pipeline_mode = #tpu.pipeline_mode<synchronous>, transform_indices = @transform_2, window_bounds = array<i64: 3, 384, 128>}, {pipeline_mode = #tpu.pipeline_mode<synchronous>, transform_indices = @transform_3, window_bounds = array<i64: 128, 256>}, {pipeline_mode = #tpu.pipeline_mode<synchronous>, transform_indices = @transform_4, window_bounds = array<i64: 256, 256>}, {transform_indices = @transform_5, window_bounds = array<i64: 1, 16, 16, 256>}]} {
    %c0 = arith.constant 0 : index
    %c0_0 = arith.constant 0 : index
    %c0_1 = arith.constant 0 : index
    %c0_2 = arith.constant 0 : index
    %0 = vector.load %arg1[%c0, %c0_0, %c0_1, %c0_2] : memref<1x16x16x256xf32, #tpu.memory_space<vmem>>, vector<1x16x16x256xf32>
    %1 = vector.shape_cast %0 : vector<1x16x16x256xf32> to vector<16x16x256xf32>
    %2 = vector.shape_cast %1 : vector<16x16x256xf32> to vector<256x256xf32>
    %3 = arith.truncf %2 : vector<256x256xf32> to vector<256x256xbf16>
    %c0_3 = arith.constant 0 : index
    %c0_4 = arith.constant 0 : index
    %4 = vector.load %arg2[%c0_3, %c0_4] : memref<256x128xbf16, #tpu.memory_space<vmem>>, vector<256x128xbf16>
    %cst = arith.constant dense<0.000000e+00> : vector<256x128xf32>
    %5 = tpu.matmul %3, %4, %cst {dimension_numbers = #tpu.dot_dimension_numbers<[1], [0], [0], [1], [0, 0, 1, 1], [], []>} : vector<256x256xbf16>, vector<256x128xbf16>, vector<256x128xf32> -> vector<256x128xf32>
    %cst_5 = arith.constant 0.000000e+00 : f32
    %6 = vector.broadcast %cst_5 : f32 to vector<256x128xf32>
    %7 = arith.maximumf %5, %6 : vector<256x128xf32>
    %8 = vector.shape_cast %7 : vector<256x128xf32> to vector<16x16x128xf32>
    %cst_6 = arith.constant 0.000000e+00 : bf16
    %9 = vector.broadcast %cst_6 : bf16 to vector<16x384xbf16>
    %c0_7 = arith.constant 0 : index
    %c0_8 = arith.constant 0 : index
    %c0_9 = arith.constant 0 : index
    %10 = vector.load %arg7[%c0_7, %c0_8, %c0_9] : memref<18x16x384xbf16, #tpu.memory_space<vmem>>, vector<1x16x384xbf16>
    %11 = vector.shape_cast %10 : vector<1x16x384xbf16> to vector<16x384xbf16>
    %12 = vector.shape_cast %9 : vector<16x384xbf16> to vector<1x16x384xbf16>
    tpu.vector_store %arg7[%c0_7, %c0_8, %c0_9], %12 {strides = array<i32>} : memref<18x16x384xbf16, #tpu.memory_space<vmem>>, vector<1x16x384xbf16>,
    %c17 = arith.constant 17 : index
    %c0_10 = arith.constant 0 : index
    %c0_11 = arith.constant 0 : index
    %13 = vector.load %arg7[%c17, %c0_10, %c0_11] : memref<18x16x384xbf16, #tpu.memory_space<vmem>>, vector<1x16x384xbf16>
    %14 = vector.shape_cast %13 : vector<1x16x384xbf16> to vector<16x384xbf16>
    %15 = vector.shape_cast %9 : vector<16x384xbf16> to vector<1x16x384xbf16>
    tpu.vector_store %arg7[%c17, %c0_10, %c0_11], %15 {strides = array<i32>} : memref<18x16x384xbf16, #tpu.memory_space<vmem>>, vector<1x16x384xbf16>,
    %16 = tpu.iota {dimensions = array<i32: 1>} : vector<16x16x128xi32>
    %c0_i32 = arith.constant 0 : i32
    %17 = vector.broadcast %c0_i32 : i32 to vector<16x16x128xi32>
    %18 = arith.cmpi eq, %16, %17 : vector<16x16x128xi32>
    %c1_i32 = arith.constant 1 : i32
    %19 = tpu.dynamic_rotate %8 by %c1_i32 dim 1 : vector<16x16x128xf32>, i32 -> vector<16x16x128xf32>
    %cst_12 = arith.constant 0.000000e+00 : f32
    %20 = vector.broadcast %cst_12 : f32 to vector<16x16x128xf32>
    %21 = arith.select %18, %20, %19 : vector<16x16x128xi1>, vector<16x16x128xf32>
    %c15_i32 = arith.constant 15 : i32
    %22 = vector.broadcast %c15_i32 : i32 to vector<16x16x128xi32>
    %23 = arith.cmpi eq, %16, %22 : vector<16x16x128xi32>
    %c15_i32_13 = arith.constant 15 : i32
    %24 = tpu.dynamic_rotate %8 by %c15_i32_13 dim 1 : vector<16x16x128xf32>, i32 -> vector<16x16x128xf32>
    %cst_14 = arith.constant 0.000000e+00 : f32
    %25 = vector.broadcast %cst_14 : f32 to vector<16x16x128xf32>
    %26 = arith.select %23, %25, %24 : vector<16x16x128xi1>, vector<16x16x128xf32>
    %27 = arith.truncf %21 : vector<16x16x128xf32> to vector<16x16x128xbf16>
    %c1 = arith.constant 1 : index
    %c0_15 = arith.constant 0 : index
    %c0_16 = arith.constant 0 : index
    %28 = vector.load %arg7[%c1, %c0_15, %c0_16] : memref<18x16x384xbf16, #tpu.memory_space<vmem>>, vector<16x16x128xbf16>
    tpu.vector_store %arg7[%c1, %c0_15, %c0_16], %27 {strides = array<i32>} : memref<18x16x384xbf16, #tpu.memory_space<vmem>>, vector<16x16x128xbf16>,
    %29 = arith.truncf %8 : vector<16x16x128xf32> to vector<16x16x128xbf16>
    %c1_17 = arith.constant 1 : index
    %c0_18 = arith.constant 0 : index
    %c128 = arith.constant 128 : index
    %30 = vector.load %arg7[%c1_17, %c0_18, %c128] : memref<18x16x384xbf16, #tpu.memory_space<vmem>>, vector<16x16x128xbf16>
    tpu.vector_store %arg7[%c1_17, %c0_18, %c128], %29 {strides = array<i32>} : memref<18x16x384xbf16, #tpu.memory_space<vmem>>, vector<16x16x128xbf16>,
    %31 = arith.truncf %26 : vector<16x16x128xf32> to vector<16x16x128xbf16>
    %c1_19 = arith.constant 1 : index
    %c0_20 = arith.constant 0 : index
    %c256 = arith.constant 256 : index
    %32 = vector.load %arg7[%c1_19, %c0_20, %c256] : memref<18x16x384xbf16, #tpu.memory_space<vmem>>, vector<16x16x128xbf16>
    tpu.vector_store %arg7[%c1_19, %c0_20, %c256], %31 {strides = array<i32>} : memref<18x16x384xbf16, #tpu.memory_space<vmem>>, vector<16x16x128xbf16>,
    %cst_21 = arith.constant 0.000000e+00 : f32
    %33 = vector.broadcast %cst_21 : f32 to vector<256x128xf32>
    %c0_22 = arith.constant 0 : index
    %c0_23 = arith.constant 0 : index
    %c0_24 = arith.constant 0 : index
    %34 = vector.load %arg7[%c0_22, %c0_23, %c0_24] : memref<18x16x384xbf16, #tpu.memory_space<vmem>>, vector<16x16x384xbf16>
    %35 = vector.shape_cast %34 : vector<16x16x384xbf16> to vector<256x384xbf16>
    %c0_25 = arith.constant 0 : index
    %c0_26 = arith.constant 0 : index
    %c0_27 = arith.constant 0 : index
    %36 = vector.load %arg3[%c0_25, %c0_26, %c0_27] : memref<3x384x128xbf16, #tpu.memory_space<vmem>>, vector<1x384x128xbf16>
    %37 = vector.shape_cast %36 : vector<1x384x128xbf16> to vector<384x128xbf16>
    %cst_28 = arith.constant dense<0.000000e+00> : vector<256x128xf32>
    %38 = tpu.matmul %35, %37, %cst_28 {dimension_numbers = #tpu.dot_dimension_numbers<[1], [0], [0], [1], [0, 0, 1, 1], [], []>} : vector<256x384xbf16>, vector<384x128xbf16>, vector<256x128xf32> -> vector<256x128xf32>
    %39 = arith.addf %33, %38 : vector<256x128xf32>
    %c1_29 = arith.constant 1 : index
    %c0_30 = arith.constant 0 : index
    %c0_31 = arith.constant 0 : index
    %40 = vector.load %arg7[%c1_29, %c0_30, %c0_31] : memref<18x16x384xbf16, #tpu.memory_space<vmem>>, vector<16x16x384xbf16>
    %41 = vector.shape_cast %40 : vector<16x16x384xbf16> to vector<256x384xbf16>
    %c1_32 = arith.constant 1 : index
    %c0_33 = arith.constant 0 : index
    %c0_34 = arith.constant 0 : index
    %42 = vector.load %arg3[%c1_32, %c0_33, %c0_34] : memref<3x384x128xbf16, #tpu.memory_space<vmem>>, vector<1x384x128xbf16>
    %43 = vector.shape_cast %42 : vector<1x384x128xbf16> to vector<384x128xbf16>
    %cst_35 = arith.constant dense<0.000000e+00> : vector<256x128xf32>
    %44 = tpu.matmul %41, %43, %cst_35 {dimension_numbers = #tpu.dot_dimension_numbers<[1], [0], [0], [1], [0, 0, 1, 1], [], []>} : vector<256x384xbf16>, vector<384x128xbf16>, vector<256x128xf32> -> vector<256x128xf32>
    %45 = arith.addf %39, %44 : vector<256x128xf32>
    %c2 = arith.constant 2 : index
    %c0_36 = arith.constant 0 : index
    %c0_37 = arith.constant 0 : index
    %46 = vector.load %arg7[%c2, %c0_36, %c0_37] : memref<18x16x384xbf16, #tpu.memory_space<vmem>>, vector<16x16x384xbf16>
    %47 = vector.shape_cast %46 : vector<16x16x384xbf16> to vector<256x384xbf16>
    %c2_38 = arith.constant 2 : index
    %c0_39 = arith.constant 0 : index
    %c0_40 = arith.constant 0 : index
    %48 = vector.load %arg3[%c2_38, %c0_39, %c0_40] : memref<3x384x128xbf16, #tpu.memory_space<vmem>>, vector<1x384x128xbf16>
    %49 = vector.shape_cast %48 : vector<1x384x128xbf16> to vector<384x128xbf16>
    %cst_41 = arith.constant dense<0.000000e+00> : vector<256x128xf32>
    %50 = tpu.matmul %47, %49, %cst_41 {dimension_numbers = #tpu.dot_dimension_numbers<[1], [0], [0], [1], [0, 0, 1, 1], [], []>} : vector<256x384xbf16>, vector<384x128xbf16>, vector<256x128xf32> -> vector<256x128xf32>
    %51 = arith.addf %45, %50 : vector<256x128xf32>
    %cst_42 = arith.constant 0.000000e+00 : f32
    %52 = vector.broadcast %cst_42 : f32 to vector<256x128xf32>
    %53 = arith.maximumf %51, %52 : vector<256x128xf32>
    %54 = arith.truncf %53 : vector<256x128xf32> to vector<256x128xbf16>
    %c0_43 = arith.constant 0 : index
    %c0_44 = arith.constant 0 : index
    %55 = vector.load %arg4[%c0_43, %c0_44] : memref<128x256xbf16, #tpu.memory_space<vmem>>, vector<128x256xbf16>
    %cst_45 = arith.constant dense<0.000000e+00> : vector<256x256xf32>
    %56 = tpu.matmul %54, %55, %cst_45 {dimension_numbers = #tpu.dot_dimension_numbers<[1], [0], [0], [1], [0, 0, 1, 1], [], []>} : vector<256x128xbf16>, vector<128x256xbf16>, vector<256x256xf32> -> vector<256x256xf32>
    %c0_46 = arith.constant 0 : index
    %c0_47 = arith.constant 0 : index
    %57 = vector.load %arg5[%c0_46, %c0_47] : memref<256x256xbf16, #tpu.memory_space<vmem>>, vector<256x256xbf16>
    %cst_48 = arith.constant dense<0.000000e+00> : vector<256x256xf32>
    %58 = tpu.matmul %3, %57, %cst_48 {dimension_numbers = #tpu.dot_dimension_numbers<[1], [0], [0], [1], [0, 0, 1, 1], [], []>} : vector<256x256xbf16>, vector<256x256xbf16>, vector<256x256xf32> -> vector<256x256xf32>
    %59 = arith.addf %56, %58 : vector<256x256xf32>
    %cst_49 = arith.constant 0.000000e+00 : f32
    %60 = vector.broadcast %cst_49 : f32 to vector<256x256xf32>
    %61 = arith.maximumf %59, %60 : vector<256x256xf32>
    %62 = vector.shape_cast %61 : vector<256x256xf32> to vector<16x16x256xf32>
    %c0_50 = arith.constant 0 : index
    %c0_51 = arith.constant 0 : index
    %c0_52 = arith.constant 0 : index
    %c0_53 = arith.constant 0 : index
    %63 = vector.load %arg6[%c0_50, %c0_51, %c0_52, %c0_53] : memref<1x16x16x256xf32, #tpu.memory_space<vmem>>, vector<1x16x16x256xf32>
    %64 = vector.shape_cast %63 : vector<1x16x16x256xf32> to vector<16x16x256xf32>
    %65 = vector.shape_cast %62 : vector<16x16x256xf32> to vector<1x16x16x256xf32>
    tpu.vector_store %arg6[%c0_50, %c0_51, %c0_52, %c0_53], %65 {strides = array<i32>} : memref<1x16x16x256xf32, #tpu.memory_space<vmem>>, vector<1x16x16x256xf32>,
    return
  }
  func.func @transform_0(%arg0: i32) -> (i32, i32, i32, i32) {
    %c0_i32 = arith.constant 0 : i32
    %c0_i32_0 = arith.constant 0 : i32
    %c0_i32_1 = arith.constant 0 : i32
    %c0_i32_2 = arith.constant 0 : i32
    return %arg0, %c0_i32, %c0_i32_0, %c0_i32_1 : i32, i32, i32, i32
  }
  func.func @transform_1(%arg0: i32) -> (i32, i32) {
    %c0_i32 = arith.constant 0 : i32
    %c0_i32_0 = arith.constant 0 : i32
    %c0_i32_1 = arith.constant 0 : i32
    return %c0_i32, %c0_i32_0 : i32, i32
  }
  func.func @transform_2(%arg0: i32) -> (i32, i32, i32) {
    %c0_i32 = arith.constant 0 : i32
    %c0_i32_0 = arith.constant 0 : i32
    %c0_i32_1 = arith.constant 0 : i32
    %c0_i32_2 = arith.constant 0 : i32
    return %c0_i32, %c0_i32_0, %c0_i32_1 : i32, i32, i32
  }
  func.func @transform_3(%arg0: i32) -> (i32, i32) {
    %c0_i32 = arith.constant 0 : i32
    %c0_i32_0 = arith.constant 0 : i32
    %c0_i32_1 = arith.constant 0 : i32
    return %c0_i32, %c0_i32_0 : i32, i32
  }
  func.func @transform_4(%arg0: i32) -> (i32, i32) {
    %c0_i32 = arith.constant 0 : i32
    %c0_i32_0 = arith.constant 0 : i32
    %c0_i32_1 = arith.constant 0 : i32
    return %c0_i32, %c0_i32_0 : i32, i32
  }
  func.func @transform_5(%arg0: i32) -> (i32, i32, i32, i32) {
    %c0_i32 = arith.constant 0 : i32
    %c0_i32_0 = arith.constant 0 : i32
    %c0_i32_1 = arith.constant 0 : i32
    %c0_i32_2 = arith.constant 0 : i32
    return %arg0, %c0_i32, %c0_i32_0, %c0_i32_1 : i32, i32, i32, i32
  }
}

</mosaic_0001>

<bundles_post_ra>
// kernel: bottleneck.1
= control target key start
LH: loop header
LB: loop body
LE: loop exit
PB: predicated region body
PF: predicated region fallthrough
CT: control target
= control target key end

     0   :  { %10 = vsyncpa [#allocation4], 0  ;;  %s7817_s0 = inlined_call_operand.hbm [shape: f32[2,16,16,256], index: 0, kind: input, shape index: {}]   ;;  %s7818_s1 = inlined_call_operand.hbm [shape: bf16[256,128], index: 1, kind: input, shape index: {}]   ;;  %s7819_s2 = inlined_call_operand.hbm [shape: bf16[3,384,128], index: 2, kind: input, shape index: {}]   ;;  %s7820_s3 = inlined_call_operand.hbm [shape: bf16[128,256], index: 3, kind: input, shape index: {}]   ;;  %s7821_s4 = inlined_call_operand.hbm [shape: bf16[256,256], index: 4, kind: input, shape index: {}]   ;;  %s7822_s5 = inlined_call_operand.hbm [shape: f32[2,16,16,256], index: 5, kind: output, shape index: {}]  }
   0x1   :  { %12 = vsyncpa [#allocation4 + $0x1], 0 }
   0x2   :  { %13 = vsyncpa [#allocation7], 0 }
   0x3   :  { %14 = vsyncpa [#allocation10], 0 }
   0x4   :  { %15 = vsyncpa [#allocation5], 0 }
   0x5   :  { %17 = vsyncpa [#allocation5 + $0x1], 0  ;;  %s6459_s18 = smov 0   ;;  %s6461_s19 = smov 0  }
   0x6   :  { %s6463_s20 = smov 0   ;;  %s6465_s21 = smov 0  }
   0x7 LB: > { %s6480_s22 = sadd.s32 4294967295, %s6414_s21   ;;  %s4646_s23 = sadd.s32 4294967294, %s6414_s21   ;;  %s6414_s21 = sphi %s6465_s21, %s8034_s21   ;;  %s6410_s20 = sphi %s6463_s20, %s8033_s20   ;;  %s6406_s19 = sphi %s6461_s19, %s8032_s19   ;;  %s6402_s18 = sphi %s6459_s18, %s8031_s18  }
   0x8   : > { %p43_p0 = scmp.ne.s32.totalorder %s6406_s19, %s6402_s18  ;;  %p44_p1 = scmp.eq.s32.totalorder %s6480_s22, 0 }
   0x9   : > { %p151_p2 = scmp.eq.s32.totalorder %s6480_s22, 1  ;;  %p157_p3 = scmp.eq.s32.totalorder %s4646_s23, 1 }
   0xa   : > { %p6489_p4 = por %p44_p1, %p43_p0  ;;  %p4647_p5 = scmp.ge.s32.totalorder %s6414_s21, 1 }
   0xb   : > { %p6494_p6 = por %p157_p3, %p43_p0  ;;  %p164_p7 = scmp.lt.s32.totalorder %s6414_s21, 3 }
   0xc   : > { %s175_s28 = sshll.u32 %s7818_s1, 4  ;;  %s6416_s30 = smov [#allocation6]   ;;  %s176_s28 = int_to_ptr.hbm [resolvable:$true] %s175_s28 }
   0xd   : > { %p6502_p8 = pnand %p4647_p5, %p164_p7  ;;  %s177_s6 = sshll.u32 %s6416_s30, 4  ;;  %s178_s6 = int_to_ptr.vmem [resolvable:$true] %s177_s6 }
   0xe   : > { %s203_s10 = sshll.u32 %s7820_s3, 4  ;;  %s6417_s11 = smov 64   ;;  %s204_s10 = int_to_ptr.hbm [resolvable:$true] %s203_s10 }
   0xf   : > { %p6114_p9 = pneg %p6502_p8  ;;  %s6418_s12 = smov 4  }
  0x10   : > { %s6419_s13 = smov [#allocation9]   ;;  %s6420_s15 = smov 128  }
  0x11   : > { %p6510_p10 = pnand %p6114_p9, %p44_p1  ;;  %s205_s14 = sshll.u32 %s6419_s13, 4  ;;  %s206_s14 = int_to_ptr.vmem [resolvable:$true] %s205_s14 }
  0x12   : > { %s6421_s16 = smov 8   ;;  %s189_s26 = sshll.u32 %s7819_s2, 4  ;;  %s190_s26 = int_to_ptr.hbm [resolvable:$true] %s189_s26 }
  0x13   : > { %6117 = dma.hbm_to_vmem [thread:$0]  (!%p6510_p10), %s176_s28, 2048, %s178_s6, [#allocation7], %s6417_s11, %s6417_s11, %s6418_s12  }
  0x14   : > { %6123 = dma.hbm_to_vmem [thread:$0]  (!%p6510_p10), %s204_s10, 2048, %s206_s14, [#allocation10], %s6420_s15, %s6420_s15, %s6421_s16  }
  0x15   : > { %s6422_s27 = smov [#allocation8]   ;;  %s217_s8 = sshll.u32 %s7821_s4, 4  ;;  %s218_s8 = int_to_ptr.hbm [resolvable:$true] %s217_s8 }
  0x16   : > { %s191_s28 = sshll.u32 %s6422_s27, 4  ;;  %s6423_s9 = smov [#allocation11]   ;;  %s192_s28 = int_to_ptr.vmem [resolvable:$true] %s191_s28 }
  0x17   : > { %6120 = dma.hbm_to_vmem [thread:$0]  (!%p6510_p10), %s190_s26, 9216, %s192_s28, [#allocation7], %s6417_s11, %s6417_s11, %s6418_s12  }
  0x18   : > { %s219_s10 = sshll.u32 %s6423_s9, 4  ;;  %s6533_s13 = sadd.s32 1, %s6414_s21   ;;  %s220_s10 = int_to_ptr.vmem [resolvable:$true] %s219_s10 }
  0x19   : > { %6126 = dma.hbm_to_vmem [thread:$0]  (!%p6510_p10), %s218_s8, 4096, %s220_s10, [#allocation10], %s6420_s15, %s6420_s15, %s6421_s16  }
  0x1a   : > { %s30_s14 = sadd.s32 1, %s6410_s20  ;;  %s27_s17 = ssub.s32 %s6414_s21, %s6533_s13 }
  0x1b   : > { %p37_p12 = scmp.ne.s32.totalorder %s6410_s20, %s6406_s19  ;;  %p28_p13 = scmp.eq.s32.totalorder %s27_s17, 0 }
  0x1c   : > { %p38_p0 = scmp.eq.s32.totalorder %s6414_s21, 0  ;;  %p6139_p5 = scmp.lt.s32.totalorder %s6414_s21, 2 }
  0x1d   : > { %p6543_p3 = por %p151_p2, %p37_p12  ;;  %s233_s12 = sand.u32 1, %s6410_s20  }
  0x1e   : > { %s6549_s11 = scalar_select %p28_p13, %s6410_s20, %s30_s14  }
  0x1f   : > { %p39_p7 = por %p38_p0, %p37_p12  ;;  %s4653_s7 = sshll.u32 %s233_s12, 9 }
  0x20   : > { %s5788_s15 = sshll.u32 %s6414_s21, 9  ;;  %s237_s28 = scalar_lea.vmem [#allocation3], %s4653_s7 }
  0x21   : > { %s242_s27 = scalar_lea.hbm %s7817_s0, %s5788_s15  ;;  %s245_s30 = sshll.u32 %s237_s28, 4  ;;  %s246_s30 = int_to_ptr.vmem [resolvable:$true] %s245_s30 }
  0x22   : > { %s243_s6 = sshll.u32 %s242_s27, 4  ;;  %p6556_p2 = pnand %p6139_p5, %p39_p7  ;;  %s244_s6 = int_to_ptr.hbm [resolvable:$true] %s243_s6 }
  0x23   : > { %s234_s9 = scalar_lea.sflag [#allocation4], %s233_s12  ;;  %s6310_s10 = sshra.s32 %s244_s6, 4  ;;  %s6311_s10 = int_to_ptr.hbm [resolvable:$true] %s6310_s10 }
  0x24   : > { %s6312_s14 = scalar_lea.hbm %s6311_s10, 512  ;;  %p6314_p10 = pneg %p6556_p2 }
  0x25   : > { %p6313_p9 = scmp.ne.s32.totalorder %s6311_s10, %s6312_s14  ;;  %s6317_s15 = scalar_lea.hbm %s7817_s0, 1024 }
  0x26   : > { %p6318_p0 = scmp.lt.s32.totalorder %s6311_s10, %s7817_s0  ;;  %p6319_p5 = scmp.lt.s32.totalorder %s6317_s15, %s6312_s14 }
  0x27   : > { %p6315_p12 = pnand %p6314_p10, %p6313_p9 }
  0x28   : > { %p6320_p7 = por %p6319_p5, %p6318_p0 }
  0x29   : > { %p6316_p13 = pneg %p6315_p12 }
  0x2b   : > { %p6321_p11 = pnand %p6320_p7, %p6316_p13 }
  0x2d   : > { %6324 = shalt.err (!%p6321_p11)
}
  0x2e   : > { %s6424_s12 = smov 256   ;;  %s6425_s27 = smov 16  }
  0x2f   : > { %6130 = dma.hbm_to_vmem [thread:$0]  (!%p6556_p2), %s244_s6, 8192, %s246_s30, %s234_s9, %s6424_s12, %s6424_s12, %s6425_s27  }
  0x30   : > { %257 = sbr.rel (%p6502_p8) target bundleno = 1469 (0x5bd), region = 40 }
  0x35   : > { %s6573_s28 = sand.u32 1, %s6406_s19  }
  0x36   : > { %s4657_s10 = sshll.u32 %s6573_s28, 9  ;;  %s260_s14 = scalar_lea.sflag [#allocation4], %s6573_s28 }
  0x37   : > { %s6579_s17 = scalar_lea.vmem [#allocation3], %s4657_s10 }
  0x38   : > { %6385 = dma.done.wait (%p6489_p4), %s260_s14, 8192  }
  0x39   : > { %6387 = vsyncadd (%p6489_p4), %s260_s14, 4294959104 }
  0x3a   : > { %6389 = dma.done.wait (%p44_p1), [#allocation7], 11264  }
  0x3b   : > { %6391 = vsyncadd (%p44_p1), [#allocation7], 4294956032 }
  0x3c   : > { %6393 = dma.done.wait (%p44_p1), [#allocation10], 6144  }
  0x3d   : > { %6395 = vsyncadd (%p44_p1), [#allocation10], 4294961152  ;;  %v5796_v0 = vld [vmem:[#allocation6 + $0x38] sm:$0xff]  ;;  %v5795_v1 = vld [vmem:[#allocation6 + $0x30] sm:$0xff]  ;;  %s7661_s24 = scalar_lea.vmem [#allocation12], %s4657_s10  ;;  %s6069_s29 = sshll.u32 %s6480_s22, 9 }
  0x3e   : > { %6070 = vmatpush.bf16.msra.mxu1 %v5796_v0  ;;  %536 = vmatpush.bf16.msra.mxu0 %v5796_v0  ;;  %v5794_v2 = vld [vmem:[#allocation6 + $0x28] sm:$0xff]  ;;  %v5793_v3 = vld [vmem:[#allocation6 + $0x20] sm:$0xff]  ;;  %v5792_v4 = vld [vmem:[#allocation6 + $0x18] sm:$0xff]  ;;  %s4531_s8 = scalar_lea.hbm %s7822_s5, %s6069_s29  ;;  %s4532_s9 = sshll.u32 %s7661_s24, 4  ;;  %s4533_s9 = int_to_ptr.vmem [resolvable:$true] %s4532_s9 }
  0x3f   : > { %6071 = vmatpush.bf16.msra.mxu2 %v5796_v0  ;;  %6072 = vmatpush.bf16.msra.mxu3 %v5796_v0  ;;  %v5791_v5 = vld [vmem:[#allocation6 + $0x10] sm:$0xff]  ;;  %v5790_v6 = vld [vmem:[#allocation6 + $0x8] sm:$0xff]  ;;  %v5789_v7 = vld [vmem:[#allocation6] sm:$0xff]  ;;  %s4534_s7 = sshll.u32 %s4531_s8, 4  ;;  %s4520_s22 = scalar_lea.sflag [#allocation5], %s6573_s28  ;;  %s4535_s7 = int_to_ptr.hbm [resolvable:$true] %s4534_s7 }
  0x40   : > { %v328_v8 = vld [vmem:[%s6579_s17 + $0x80] sm:$0xff]  ;;  %v330_v9 = vld [vmem:[%s6579_s17 + $0x90] sm:$0xff]  ;;  %v5804_v10 = vld [vmem:[#allocation6 + $0x78] sm:$0xff]  ;;  %s6354_s15 = sshra.s32 %s4535_s7, 4  ;;  %s6360_s27 = scalar_lea.hbm %s7822_s5, 1024  ;;  %s6355_s15 = int_to_ptr.hbm [resolvable:$true] %s6354_s15 }
  0x41   : > { %v6595_v11 = vpack.c.bf16 %v330_v9, %v328_v8  ;;  %v5803_v12 = vld [vmem:[#allocation6 + $0x70] sm:$0xff]  ;;  %v5802_v13 = vld [vmem:[#allocation6 + $0x68] sm:$0xff]  ;;  %v5801_v14 = vld [vmem:[#allocation6 + $0x60] sm:$0xff]  ;;  %s6356_s16 = scalar_lea.hbm %s6355_s15, 512  ;;  %p6361_p11 = scmp.lt.s32.totalorder %s6355_s15, %s7822_s5 }
  0x42   : > { %6073 = vmatpush.bf16.msra.mxu1 %v5795_v1  ;;  %537 = vmatpush.bf16.msra.mxu0 %v5795_v1  ;;  %v332_v15 = vld [vmem:[%s6579_s17 + $0xa0] sm:$0xff]  ;;  %v334_v16 = vld [vmem:[%s6579_s17 + $0xb0] sm:$0xff]  ;;  %v5800_v17 = vld [vmem:[#allocation6 + $0x58] sm:$0xff]  ;;  %p6357_p1 = scmp.ne.s32.totalorder %s6355_s15, %s6356_s16  ;;  %p6362_p2 = scmp.lt.s32.totalorder %s6360_s27, %s6356_s16 }
  0x43   : > { %6074 = vmatpush.bf16.msra.mxu2 %v5795_v1  ;;  %6075 = vmatpush.bf16.msra.mxu3 %v5795_v1  ;;  %v6600_v18 = vpack.c.bf16 %v334_v16, %v332_v15  ;;  %v5799_v19 = vld [vmem:[#allocation6 + $0x50] sm:$0xff]  ;;  %v312_v20 = vld [vmem:[%s6579_s17] sm:$0xff]  ;;  %v5798_v23 = vld [vmem:[#allocation6 + $0x48] sm:$0xff] }
  0x44   : > { %v314_v21 = vld [vmem:[%s6579_s17 + $0x10] sm:$0xff]  ;;  %v5797_v24 = vld [vmem:[#allocation6 + $0x40] sm:$0xff]  ;;  %v313_v37 = vld [vmem:[%s6579_s17 + $0x8] sm:$0xff]  ;;  %p6358_p4 = pnand %p6357_p1, %p6543_p3  ;;  %p6363_p9 = por %p6362_p2, %p6361_p11 }
  0x45   : > { %7878 = vst [vmem:[#allocation17_spill] sm:$0xff] %v6600_v18  ;;  %v6605_v22 = vpack.c.bf16 %v314_v21, %v312_v20  ;;  %v336_v25 = vld [vmem:[%s6579_s17 + $0xc0] sm:$0xff]  ;;  %v338_v26 = vld [vmem:[%s6579_s17 + $0xd0] sm:$0xff]  ;;  %v315_v38 = vld [vmem:[%s6579_s17 + $0x18] sm:$0xff] }
  0x46   : > { %6076 = vmatpush.bf16.msra.mxu1 %v5794_v2  ;;  %538 = vmatpush.bf16.msra.mxu0 %v5794_v2  ;;  %v6610_v27 = vpack.c.bf16 %v338_v26, %v336_v25  ;;  %v316_v28 = vld [vmem:[%s6579_s17 + $0x20] sm:$0xff]  ;;  %v318_v29 = vld [vmem:[%s6579_s17 + $0x30] sm:$0xff]  ;;  %v6630_v39 = vpack.c.bf16 %v315_v38, %v313_v37  ;;  %v317_v43 = vld [vmem:[%s6579_s17 + $0x28] sm:$0xff]  ;;  %p6359_p8 = pneg %p6358_p4 }
  0x47   : > { %6077 = vmatpush.bf16.msra.mxu2 %v5794_v2  ;;  %6078 = vmatpush.bf16.msra.mxu3 %v5794_v2  ;;  %v6615_v30 = vpack.c.bf16 %v318_v29, %v316_v28  ;;  %v340_v31 = vld [vmem:[%s6579_s17 + $0xe0] sm:$0xff]  ;;  %v342_v32 = vld [vmem:[%s6579_s17 + $0xf0] sm:$0xff]  ;;  %v319_v44 = vld [vmem:[%s6579_s17 + $0x38] sm:$0xff] }
  0x48   : > { %7879 = vst [vmem:[#allocation18_spill] sm:$0xff] %v6610_v27  ;;  %v6620_v33 = vpack.c.bf16 %v342_v32, %v340_v31  ;;  %v320_v34 = vld [vmem:[%s6579_s17 + $0x40] sm:$0xff]  ;;  %v322_v35 = vld [vmem:[%s6579_s17 + $0x50] sm:$0xff]  ;;  %v6640_v45 = vpack.c.bf16 %v319_v44, %v317_v43  ;;  %v321_v46 = vld [vmem:[%s6579_s17 + $0x48] sm:$0xff]  ;;  %p6364_p10 = pnand %p6363_p9, %p6359_p8 }
  0x49   : > { %v6625_v36 = vpack.c.bf16 %v322_v35, %v320_v34  ;;  %7881 = vst [vmem:[#allocation20_spill] sm:$0xff] %v6630_v39  ;;  %v324_v40 = vld [vmem:[%s6579_s17 + $0x60] sm:$0xff]  ;;  %v326_v41 = vld [vmem:[%s6579_s17 + $0x70] sm:$0xff]  ;;  %v323_v47 = vld [vmem:[%s6579_s17 + $0x58] sm:$0xff] }
  0x4a   : > { %6079 = vmatpush.bf16.msra.mxu1 %v5793_v3  ;;  %539 = vmatpush.bf16.msra.mxu0 %v5793_v3  ;;  %7880 = vst [vmem:[#allocation19_spill] sm:$0xff] %v6620_v33  ;;  %v6635_v42 = vpack.c.bf16 %v326_v41, %v324_v40  ;;  %v6645_v48 = vpack.c.bf16 %v323_v47, %v321_v46  ;;  %v325_v49 = vld [vmem:[%s6579_s17 + $0x68] sm:$0xff]  ;;  %v327_v50 = vld [vmem:[%s6579_s17 + $0x78] sm:$0xff]  ;;  %v344_v52 = vld [vmem:[%s6579_s17 + $0x100] sm:$0xff] }
  0x4b   : > { %6080 = vmatpush.bf16.msra.mxu2 %v5793_v3  ;;  %6081 = vmatpush.bf16.msra.mxu3 %v5793_v3  ;;  %7882 = vst [vmem:[#allocation21_spill] sm:$0xff] %v6640_v45  ;;  %v6650_v51 = vpack.c.bf16 %v327_v50, %v325_v49  ;;  %v346_v53 = vld [vmem:[%s6579_s17 + $0x110] sm:$0xff]  ;;  %v360_v55 = vld [vmem:[%s6579_s17 + $0x180] sm:$0xff]  ;;  %v5932_v58 = vld [vmem:[#allocation8 + $0xf8] sm:$0xff] }
  0x4c   : > { %7883 = vst [vmem:[#allocation22_spill] sm:$0xff] %v6645_v48  ;;  %v6655_v54 = vpack.c.bf16 %v346_v53, %v344_v52  ;;  %v362_v56 = vld [vmem:[%s6579_s17 + $0x190] sm:$0xff]  ;;  %v5940_v59 = vld [vmem:[#allocation8 + $0x138] sm:$0xff]  ;;  %v329_v60 = vld [vmem:[%s6579_s17 + $0x88] sm:$0xff] }
  0x4d   : > { %7884 = vst [vmem:[#allocation23_spill] sm:$0xff] %v6650_v51  ;;  %v6659_v57 = vpack.c.bf16 %v362_v56, %v360_v55  ;;  %v331_v61 = vld [vmem:[%s6579_s17 + $0x98] sm:$0xff]  ;;  %v348_v0 = vld [vmem:[%s6579_s17 + $0x120] sm:$0xff]  ;;  %v350_v1 = vld [vmem:[%s6579_s17 + $0x130] sm:$0xff] }
  0x4e   : > { %6082 = vmatpush.bf16.msra.mxu1 %v5792_v4  ;;  %540 = vmatpush.bf16.msra.mxu0 %v5792_v4  ;;  %7885 = vst [vmem:[#allocation24_spill] sm:$0xff] %v6655_v54  ;;  %v6665_v62 = vpack.c.bf16 %v331_v61, %v329_v60  ;;  %v6672_v2 = vpack.c.bf16 %v350_v1, %v348_v0  ;;  %v5931_v3 = vld [vmem:[#allocation8 + $0xf0] sm:$0xff]  ;;  %v335_v15 = vld [vmem:[%s6579_s17 + $0xb8] sm:$0xff]  ;;  %v368_v25 = vld [vmem:[%s6579_s17 + $0x1c0] sm:$0xff] }
  0x4f   : > { %6083 = vmatpush.bf16.msra.mxu2 %v5792_v4  ;;  %6084 = vmatpush.bf16.msra.mxu3 %v5792_v4  ;;  %7886 = vst [vmem:[#allocation25_spill] sm:$0xff] %v6659_v57  ;;  %v5948_v4 = vld [vmem:[#allocation8 + $0x178] sm:$0xff]  ;;  %v354_v20 = vld [vmem:[%s6579_s17 + $0x150] sm:$0xff]  ;;  %v5937_v28 = vld [vmem:[#allocation8 + $0x120] sm:$0xff] }
  0x50   : > { %7887 = vst [vmem:[#allocation26_spill] sm:$0xff] %v6665_v62  ;;  %v370_v26 = vld [vmem:[%s6579_s17 + $0x1d0] sm:$0xff]  ;;  %v5928_v32 = vld [vmem:[#allocation8 + $0xd8] sm:$0xff]  ;;  %v5945_v34 = vld [vmem:[#allocation8 + $0x160] sm:$0xff] }
  0x51   : > { %7888 = vst [vmem:[#allocation27_spill] sm:$0xff] %v6672_v2  ;;  %v6696_v29 = vpack.c.bf16 %v370_v26, %v368_v25  ;;  %v5936_v35 = vld [vmem:[#allocation8 + $0x118] sm:$0xff]  ;;  %v337_v37 = vld [vmem:[%s6579_s17 + $0xc8] sm:$0xff]  ;;  %v356_v43 = vld [vmem:[%s6579_s17 + $0x160] sm:$0xff] }
  0x52   : > { %6085 = vmatpush.bf16.msra.mxu1 %v5791_v5  ;;  %541 = vmatpush.bf16.msra.mxu0 %v5791_v5  ;;  %v339_v38 = vld [vmem:[%s6579_s17 + $0xd8] sm:$0xff]  ;;  %v358_v44 = vld [vmem:[%s6579_s17 + $0x170] sm:$0xff]  ;;  %v372_v47 = vld [vmem:[%s6579_s17 + $0x1e0] sm:$0xff] }
  0x53   : > { %6086 = vmatpush.bf16.msra.mxu2 %v5791_v5  ;;  %6087 = vmatpush.bf16.msra.mxu3 %v5791_v5  ;;  %v364_v5 = vld [vmem:[%s6579_s17 + $0x1a0] sm:$0xff]  ;;  %7892 = vst [vmem:[#allocation31_spill] sm:$0xff] %v6696_v29  ;;  %v6703_v40 = vpack.c.bf16 %v339_v38, %v337_v37  ;;  %v6710_v46 = vpack.c.bf16 %v358_v44, %v356_v43  ;;  %v374_v49 = vld [vmem:[%s6579_s17 + $0x1f0] sm:$0xff]  ;;  %v5944_v53 = vld [vmem:[#allocation8 + $0x158] sm:$0xff] }
  0x54   : > { %v6715_v50 = vpack.c.bf16 %v374_v49, %v372_v47  ;;  %v5927_v52 = vld [vmem:[#allocation8 + $0xd0] sm:$0xff]  ;;  %v5860_v37 = vld [vmem:[#allocation8 + $0x38] sm:$0xff] }
  0x55   : > { %7893 = vst [vmem:[#allocation32_spill] sm:$0xff] %v6703_v40  ;;  %v5935_v55 = vld [vmem:[#allocation8 + $0x110] sm:$0xff]  ;;  %v6004_v38 = vld [vmem:[#allocation8 + $0x1b8] sm:$0xff] }
  0x56   : > { %6088 = vmatpush.bf16.msra.mxu1 %v5790_v6  ;;  %542 = vmatpush.bf16.msra.mxu0 %v5790_v6  ;;  %7894 = vst [vmem:[#allocation33_spill] sm:$0xff] %v6710_v46  ;;  %v5943_v1 = vld [vmem:[#allocation8 + $0x150] sm:$0xff] }
  0x57   : > { %6089 = vmatpush.bf16.msra.mxu2 %v5790_v6  ;;  %6090 = vmatpush.bf16.msra.mxu3 %v5790_v6  ;;  %v366_v6 = vld [vmem:[%s6579_s17 + $0x1b0] sm:$0xff]  ;;  %7895 = vst [vmem:[#allocation34_spill] sm:$0xff] %v6715_v50 }
  0x58   : > { %v6677_v8 = vpack.c.bf16 %v366_v6, %v364_v5  ;;  %v5942_v5 = vld [vmem:[#allocation8 + $0x148] sm:$0xff]  ;;  %v5933_v6 = vld [vmem:[#allocation8 + $0x100] sm:$0xff] }
  0x5a   : > { %6091 = vmatpush.bf16.msra.mxu1 %v5789_v7  ;;  %543 = vmatpush.bf16.msra.mxu0 %v5789_v7  ;;  %7889 = vst [vmem:[#allocation28_spill] sm:$0xff] %v6677_v8 }
  0x5b   : > { %6092 = vmatpush.bf16.msra.mxu2 %v5789_v7  ;;  %6093 = vmatpush.bf16.msra.mxu3 %v5789_v7  ;;  %v5939_v7 = vld [vmem:[#allocation8 + $0x130] sm:$0xff] }
  0x5d   : > { %564 = vmatmul.bf16.vlgmr.msra.gmra.mxu1 %v6595_v11  ;;  %544 = vmatmul.bf16.vlgmr.msra.gmra.mxu0 %v6605_v22 }
  0x5e   : > { %625 = vmatpush.bf16.msrb.mxu1 %v5804_v10  ;;  %584 = vmatmul.bf16.vlgmr.msra.gmra.mxu2 %v6655_v54  ;;  %v5930_v10 = vld [vmem:[#allocation8 + $0xe8] sm:$0xff]  ;;  %v6060_v54 = vld [vmem:[#allocation11 + $0xb4] sm:$0xf0] }
  0x5f   : > { %604 = vmatmul.bf16.vlgmr.msra.gmra.mxu3 %v6659_v57  ;;  %1774 = vmatpush.bf16.msrb.mxu2 %v5932_v58  ;;  %v341_v58 = vld [vmem:[%s6579_s17 + $0xe8] sm:$0xff]  ;;  %v5697_v57 = vld [vmem:[#allocation11 + $0xd0] sm:$0xf] }
  0x60   : > { %1863 = vmatpush.bf16.msrb.mxu3 %v5940_v59  ;;  %1952 = vmatpush.bf16.msrb.mxu0 %v5948_v4  ;;  %v343_v59 = vld [vmem:[%s6579_s17 + $0xf8] sm:$0xff]  ;;  %v5926_v4 = vld [vmem:[#allocation8 + $0xc8] sm:$0xff] }
  0x61   : > { %v6722_v60 = vpack.c.bf16 %v343_v59, %v341_v58 }
  0x62   : > { %626 = vmatpush.bf16.msrb.mxu1 %v5803_v12  ;;  %v5947_v12 = vld [vmem:[#allocation8 + $0x170] sm:$0xff] }
  0x63   : > { %1775 = vmatpush.bf16.msrb.mxu2 %v5931_v3  ;;  %7896 = vst [vmem:[#allocation35_spill] sm:$0xff] %v6722_v60  ;;  %v5934_v3 = vld [vmem:[#allocation8 + $0x108] sm:$0xff] }
  0x64   : > { %1864 = vmatpush.bf16.msrb.mxu3 %v5939_v7  ;;  %1953 = vmatpush.bf16.msrb.mxu0 %v5947_v12  ;;  %v5925_v7 = vld [vmem:[#allocation8 + $0xc0] sm:$0xff] }
  0x65   : > { %v5941_v12 = vld [vmem:[#allocation8 + $0x140] sm:$0xff] }
  0x66   : > { %627 = vmatpush.bf16.msrb.mxu1 %v5802_v13  ;;  %v5938_v13 = vld [vmem:[#allocation8 + $0x128] sm:$0xff] }
  0x67   : > { %1776 = vmatpush.bf16.msrb.mxu2 %v5930_v10 }
  0x68   : > { %1865 = vmatpush.bf16.msrb.mxu3 %v5938_v13 }
  0x6a   : > { %628 = vmatpush.bf16.msrb.mxu1 %v5801_v14  ;;  %v333_v14 = vld [vmem:[%s6579_s17 + $0xa8] sm:$0xff] }
  0x6b   : > { %v6684_v16 = vpack.c.bf16 %v335_v15, %v333_v14  ;;  %v345_v14 = vld [vmem:[%s6579_s17 + $0x108] sm:$0xff]  ;;  %v347_v15 = vld [vmem:[%s6579_s17 + $0x118] sm:$0xff] }
  0x6c   : > { %1866 = vmatpush.bf16.msrb.mxu3 %v5937_v28 }
  0x6d   : > { %569 = vmatmul.bf16.gmra.mxu1 %v6600_v18  ;;  %549 = vmatmul.bf16.gmra.mxu0 %v6615_v30  ;;  %7890 = vst [vmem:[#allocation29_spill] sm:$0xff] %v6684_v16 }
  0x6e   : > { %629 = vmatpush.bf16.msrb.mxu1 %v5800_v17  ;;  %589 = vmatmul.bf16.gmra.mxu2 %v6672_v2 }
  0x6f   : > { %609 = vmatmul.bf16.gmra.mxu3 %v6677_v8 }
  0x70   : > { %1867 = vmatpush.bf16.msrb.mxu3 %v5936_v35 }
  0x72   : > { %630 = vmatpush.bf16.msrb.mxu1 %v5799_v19  ;;  %v352_v19 = vld [vmem:[%s6579_s17 + $0x140] sm:$0xff] }
  0x73   : > { %v6691_v21 = vpack.c.bf16 %v354_v20, %v352_v19  ;;  %v6731_v19 = vpack.c.bf16 %v347_v15, %v345_v14 }
  0x74   : > { %1868 = vmatpush.bf16.msrb.mxu3 %v5935_v55 }
  0x75   : > { %7891 = vst [vmem:[#allocation30_spill] sm:$0xff] %v6691_v21 }
  0x76   : > { %631 = vmatpush.bf16.msrb.mxu1 %v5798_v23  ;;  %v5929_v23 = vld [vmem:[#allocation8 + $0xe0] sm:$0xff]  ;;  %7897 = vst [vmem:[#allocation36_spill] sm:$0xff] %v6731_v19 }
  0x77   : > { %1777 = vmatpush.bf16.msrb.mxu2 %v5929_v23  ;;  %v755_v23 = vlaneseq }
  0x78   : > { %1869 = vmatpush.bf16.msrb.mxu3 %v5934_v3 }
  0x79   : > { %v6734_v26 = vshrl.u32 %v755_v23, 7 }
  0x7a   : > { %632 = vmatpush.bf16.msrb.mxu1 %v5797_v24  ;;  %v5946_v24 = vld [vmem:[#allocation8 + $0x168] sm:$0xff] }
  0x7b   : > { %1954 = vmatpush.bf16.msrb.mxu0 %v5946_v24  ;;  %1778 = vmatpush.bf16.msrb.mxu2 %v5928_v32  ;;  %v5868_v32 = vld [vmem:[#allocation8 + $0x78] sm:$0xff]  ;;  %v6737_v44 = vadd.s32 8, %v6734_v26  ;;  %vm758_vm0 = vcmp.eq.s32.totalorder %v6734_v26, 0  ;;  %vm792_vm1 = vcmp.lt.s32.totalorder %v6734_v26, 1  ;;  %vm891_vm3 = vcmp.lt.s32.totalorder %v6734_v26, 7 }
  0x7c   : > { %1870 = vmatpush.bf16.msrb.mxu3 %v5933_v6 }
  0x7d   : > { %574 = vmatmul.bf16.gmra.mxu1 %v6610_v27  ;;  %554 = vmatmul.bf16.gmra.mxu0 %v6625_v36  ;;  %vm858_vm2 = vcmp.eq.s32.totalorder %v6737_v44, 15 }
  0x7e   : > { %594 = vmatmul.bf16.gmra.mxu2 %v6691_v21  ;;  %2441 = vmatpush.bf16.msra.mxu1 %v5860_v37  ;;  %v5689_v21 = vld [vmem:[#allocation11 + $0xc0] sm:$0xf] }
  0x7f   : > { %614 = vmatmul.bf16.gmra.mxu3 %v6696_v29  ;;  %1955 = vmatpush.bf16.msrb.mxu0 %v5945_v34  ;;  %v5876_v34 = vld [vmem:[#allocation8 + $0xb8] sm:$0xff] }
  0x80   : > { %1779 = vmatpush.bf16.msrb.mxu2 %v5927_v52  ;;  %2619 = vmatpush.bf16.msra.mxu3 %v5876_v34  ;;  %v349_v52 = vld [vmem:[%s6579_s17 + $0x128] sm:$0xff] }
  0x83   : > { %1956 = vmatpush.bf16.msrb.mxu0 %v5944_v53  ;;  %v351_v53 = vld [vmem:[%s6579_s17 + $0x138] sm:$0xff] }
  0x84   : > { %1780 = vmatpush.bf16.msrb.mxu2 %v5926_v4  ;;  %v6745_v3 = vpack.c.bf16 %v351_v53, %v349_v52 }
  0x86   : > { %7898 = vst [vmem:[#allocation37_spill] sm:$0xff] %v6745_v3 }
  0x87   : > { %1957 = vmatpush.bf16.msrb.mxu0 %v5943_v1 }
  0x88   : > { %1781 = vmatpush.bf16.msrb.mxu2 %v5925_v7 }
  0x8b   : > { %1958 = vmatpush.bf16.msrb.mxu0 %v5942_v5 }
  0x8c   : > { %2530 = vmatpush.bf16.msra.mxu2 %v5868_v32 }
  0x8d   : > { %579 = vmatmul.bf16.gmra.mxu1 %v6620_v33  ;;  %559 = vmatmul.bf16.gmra.mxu0 %v6635_v42 }
  0x8e   : > { %599 = vmatmul.bf16.gmra.mxu2 %v6710_v46 }
  0x8f   : > { %619 = vmatmul.bf16.gmra.mxu3 %v6715_v50  ;;  %1959 = vmatpush.bf16.msrb.mxu0 %v5941_v12 }
  0x93   : > { %3222 = vmatpush.bf16.msra.mxu0 %v6004_v38 }
  0x9d   : > { %633 = vmatmul.bf16.vlgmr.msrb.gmra.mxu1 %v6630_v39 }
  0xad   : > { %638 = vmatmul.bf16.gmra.mxu1 %v6640_v45 }
  0xbd   : > { %643 = vmatmul.bf16.gmra.mxu1 %v6645_v48 }
  0xcd   : > { %648 = vmatmul.bf16.gmra.mxu1 %v6650_v51 }
  0xda   : > { %v6667_v63 = vpop.f32.mrf.mxu1  ;;  %v545_v0 = vpop.f32.mrf.mxu0 }
  0xdd   : > { %653 = vmatmul.bf16.gmra.mxu1 %v6665_v62 }
  0xe2   : > { %v6680_v9 = vpop.f32.mrf.mxu1  ;;  %v547_v13 = vpop.f32.mrf.mxu0 }
  0xea   : > { %v6686_v17 = vpop.f32.mrf.mxu1  ;;  %v550_v35 = vpop.f32.mrf.mxu0 }
  0xed   : > { %658 = vmatmul.bf16.gmra.mxu1 %v6684_v16 }
  0xf2   : > { %v6699_v31 = vpop.f32.mrf.mxu1 }
  0xfa   : > { %v6705_v41 = vpop.f32.mrf.mxu1 }
  0xfd   : > { %663 = vmatmul.bf16.gmra.mxu1 %v6703_v40 }
 0x102   : > { %v6718_v56 = vpop.f32.mrf.mxu1 }
 0x10a   : > { %v6724_v61 = vpop.f32.mrf.mxu1 }
 0x10d   : > { %668 = vmatmul.bf16.gmra.mxu1 %v6722_v60 }
 0x112   : > { %v6727_v10 = vpop.f32.mrf.mxu1 }
 0x11a   : > { %v634_v20 = vpop.f32.mrf.mxu1 }
 0x11b   : > { %v635_v24 = vadd.f32 %v634_v20, %v545_v0  ;;  %v552_v20 = vpop.f32.mrf.mxu0 }
 0x11d   : > { %v714_v25 = vmax.f32 %v635_v24, 0.0  ;;  %673 = vmatmul.bf16.gmra.mxu1 %v6731_v19 }
 0x11f   : > { %v1021_v28 = vpack.c.bf16 %v714_v25, %v714_v25  ;;  %v760_v55 = vrot.slane %v714_v25, 7  ;;  %v859_v58 = vrot.slane %v714_v25, 1 }
 0x121   : > { %1053 = vst [vmem:[#allocation2 + $0x1c] sm:$0xf] %v1021_v28 }
 0x122   : > { %v636_v43 = vpop.f32.mrf.mxu1 }
 0x123   : > { %v637_v47 = vadd.f32 %v636_v43, %v547_v13  ;;  %v555_v53 = vpop.f32.mrf.mxu0 }
 0x125   : > { %v715_v49 = vmax.f32 %v637_v47, 0.0 }
 0x127   : > { %v776_v59 = vrot.slane %v715_v49, 7  ;;  %v875_v0 = vrot.slane %v715_v49, 1  ;;  %v1022_v1 = vpack.c.bf16 %v715_v49, %v715_v49 }
 0x128   : > { %v5877_v37 = vld [vmem:[#allocation2 + $0x1c] sm:$0xf] }
 0x129   : > { %v793_v4 = vsel %vm792_vm1, %v760_v55, %v776_v59  ;;  %v809_v5 = vsel %vm792_vm1, %v776_v59, %v760_v55  ;;  %v892_v6 = vsel %vm891_vm3, %v859_v58, %v875_v0  ;;  %v908_v7 = vsel %vm891_vm3, %v875_v0, %v859_v58  ;;  %1054 = vst [vmem:[#allocation2 + $0x28] sm:$0xf] %v1022_v1  ;;  %v353_v0 = vld [vmem:[%s6579_s17 + $0x148] sm:$0xff]  ;;  %v355_v1 = vld [vmem:[%s6579_s17 + $0x158] sm:$0xff] }
 0x12a   : > { %v825_v12 = vsel %vm758_vm0, 0.0, %v809_v5  ;;  %v925_v13 = vsel %vm858_vm2, 0.0, %v908_v7  ;;  %v957_v14 = vpack.c.bf16 %v793_v4, %v793_v4  ;;  %v1085_v15 = vpack.c.bf16 %v892_v6, %v892_v6  ;;  %v639_v23 = vpop.f32.mrf.mxu1 }
 0x12b   : > { %v956_v24 = vpack.c.bf16 %v825_v12, %v825_v12  ;;  %v1086_v25 = vpack.c.bf16 %v925_v13, %v925_v13  ;;  %v640_v28 = vadd.f32 %v639_v23, %v550_v35 }
 0x12c   : > { %990 = vst [vmem:[#allocation2 + $0x24] sm:$0xf] %v957_v14 }
 0x12d   : > { %989 = vst [vmem:[#allocation2 + $0x18] sm:$0xf] %v956_v24  ;;  %v716_v32 = vmax.f32 %v640_v28, 0.0  ;;  %678 = vmatmul.bf16.gmra.mxu1 %v6745_v3  ;;  %v6062_v3 = vld [vmem:[#allocation11 + $0xc4] sm:$0xf0] }
 0x12e   : > { %1117 = vst [vmem:[#allocation2 + $0x20] sm:$0xf] %v1085_v15  ;;  %v6762_v15 = vpack.c.bf16 %v355_v1, %v353_v0  ;;  %v5690_v2 = vor.u32 %v6062_v3, %v5689_v21 }
 0x12f   : > { %1118 = vst [vmem:[#allocation2 + $0x2c] sm:$0xf] %v1086_v25  ;;  %v1023_v34 = vpack.c.bf16 %v716_v32, %v716_v32  ;;  %v761_v4 = vrot.slane %v716_v32, 7  ;;  %v860_v5 = vrot.slane %v716_v32, 1 }
 0x130   : > { %v4731_v38 = vld [vmem:[#allocation2 + $0x24] sm:$0xf0]  ;;  %7899 = vst [vmem:[#allocation38_spill] sm:$0xff] %v6762_v15 }
 0x131   : > { %1055 = vst [vmem:[#allocation2 + $0x34] sm:$0xf] %v1023_v34  ;;  %v4734_v43 = vor.u32 %v5877_v37, %v4731_v38 }
 0x132   : > { %v641_v47 = vpop.f32.mrf.mxu1 }
 0x133   : > { %v642_v49 = vadd.f32 %v641_v47, %v552_v20  ;;  %1871 = vmatmul.bf16.vlgmr.msrb.gmra.mxu3 %v4734_v43  ;;  %v5878_v52 = vld [vmem:[#allocation2 + $0x20] sm:$0xf0] }
 0x134   : > { %v4729_v35 = vld [vmem:[#allocation2 + $0x18] sm:$0xf] }
 0x135   : > { %v717_v55 = vmax.f32 %v642_v49, 0.0  ;;  %v4730_v58 = vor.u32 %v5878_v52, %v4729_v35  ;;  %v4737_v59 = vld [vmem:[#allocation2 + $0x20] sm:$0xf]  ;;  %v557_v35 = vpop.f32.mrf.mxu0 }
 0x136   : > { %v5879_v6 = vld [vmem:[#allocation2 + $0x28] sm:$0xf0] }
 0x137   : > { %v777_v7 = vrot.slane %v717_v55, 7  ;;  %v876_v12 = vrot.slane %v717_v55, 1  ;;  %v1024_v13 = vpack.c.bf16 %v717_v55, %v717_v55  ;;  %1782 = vmatmul.bf16.vlgmr.msrb.gmra.mxu2 %v4730_v58  ;;  %v4738_v14 = vor.u32 %v5879_v6, %v4737_v59  ;;  %v5867_v58 = vld [vmem:[#allocation8 + $0x70] sm:$0xff] }
 0x138   : > { %v5875_v59 = vld [vmem:[#allocation8 + $0xb0] sm:$0xff]  ;;  %v5880_v0 = vld [vmem:[#allocation2 + $0x34] sm:$0xf]  ;;  %2531 = vmatpush.bf16.msra.mxu2 %v5867_v58 }
 0x139   : > { %v794_v20 = vsel %vm792_vm1, %v761_v4, %v777_v7  ;;  %v810_v23 = vsel %vm792_vm1, %v777_v7, %v761_v4  ;;  %v893_v24 = vsel %vm891_vm3, %v860_v5, %v876_v12  ;;  %v909_v25 = vsel %vm891_vm3, %v876_v12, %v860_v5  ;;  %1056 = vst [vmem:[#allocation2 + $0x40] sm:$0xf] %v1024_v13  ;;  %v6003_v5 = vld [vmem:[#allocation8 + $0x1b0] sm:$0xff] }
 0x13a   : > { %v827_v28 = vsel %vm758_vm0, 0.0, %v810_v23  ;;  %v927_v32 = vsel %vm858_vm2, 0.0, %v909_v25  ;;  %v959_v34 = vpack.c.bf16 %v794_v20, %v794_v20  ;;  %v1087_v37 = vpack.c.bf16 %v893_v24, %v893_v24  ;;  %1960 = vmatmul.bf16.vlgmr.msrb.gmra.mxu0 %v4738_v14  ;;  %v644_v38 = vpop.f32.mrf.mxu1  ;;  %2620 = vmatpush.bf16.msra.mxu3 %v5875_v59  ;;  %v357_v24 = vld [vmem:[%s6579_s17 + $0x168] sm:$0xff]  ;;  %v359_v25 = vld [vmem:[%s6579_s17 + $0x178] sm:$0xff] }
 0x13b   : > { %v958_v43 = vpack.c.bf16 %v827_v28, %v827_v28  ;;  %v1088_v47 = vpack.c.bf16 %v927_v32, %v927_v32  ;;  %v645_v49 = vadd.f32 %v644_v38, %v555_v53  ;;  %v5859_v53 = vld [vmem:[#allocation8 + $0x30] sm:$0xff]  ;;  %3223 = vmatpush.bf16.msra.mxu0 %v6003_v5 }
 0x13c   : > { %992 = vst [vmem:[#allocation2 + $0x3c] sm:$0xf] %v959_v34  ;;  %2442 = vmatpush.bf16.msra.mxu1 %v5859_v53 }
 0x13d   : > { %991 = vst [vmem:[#allocation2 + $0x30] sm:$0xf] %v958_v43  ;;  %v718_v52 = vmax.f32 %v645_v49, 0.0  ;;  %683 = vmatmul.bf16.gmra.mxu1 %v6762_v15  ;;  %v560_v49 = vpop.f32.mrf.mxu0 }
 0x13e   : > { %1119 = vst [vmem:[#allocation2 + $0x38] sm:$0xf] %v1087_v37 }
 0x13f   : > { %1120 = vst [vmem:[#allocation2 + $0x44] sm:$0xf] %v1088_v47  ;;  %v1025_v55 = vpack.c.bf16 %v718_v52, %v718_v52  ;;  %v762_v28 = vrot.slane %v718_v52, 7  ;;  %v861_v32 = vrot.slane %v718_v52, 1 }
 0x140   : > { %v4743_v1 = vld [vmem:[#allocation2 + $0x3c] sm:$0xf0] }
 0x141   : > { %1057 = vst [vmem:[#allocation2 + $0x4c] sm:$0xf] %v1025_v55  ;;  %v4746_v4 = vor.u32 %v5880_v0, %v4743_v1 }
 0x142   : > { %v646_v6 = vpop.f32.mrf.mxu1 }
 0x143   : > { %v647_v7 = vadd.f32 %v646_v6, %v557_v35  ;;  %1876 = vmatmul.bf16.gmra.mxu3 %v4746_v4  ;;  %v5881_v12 = vld [vmem:[#allocation2 + $0x38] sm:$0xf0]  ;;  %v6779_v35 = vpack.c.bf16 %v359_v25, %v357_v24 }
 0x144   : > { %v4741_v13 = vld [vmem:[#allocation2 + $0x30] sm:$0xf] }
 0x145   : > { %v719_v14 = vmax.f32 %v647_v7, 0.0  ;;  %v4742_v20 = vor.u32 %v5881_v12, %v4741_v13  ;;  %v4749_v23 = vld [vmem:[#allocation2 + $0x38] sm:$0xf]  ;;  %7900 = vst [vmem:[#allocation39_spill] sm:$0xff] %v6779_v35  ;;  %v562_v25 = vpop.f32.mrf.mxu0 }
 0x146   : > { %v5882_v34 = vld [vmem:[#allocation2 + $0x40] sm:$0xf0] }
 0x147   : > { %v778_v37 = vrot.slane %v719_v14, 7  ;;  %v877_v38 = vrot.slane %v719_v14, 1  ;;  %v1026_v43 = vpack.c.bf16 %v719_v14, %v719_v14  ;;  %1787 = vmatmul.bf16.gmra.mxu2 %v4742_v20  ;;  %v4750_v47 = vor.u32 %v5882_v34, %v4749_v23 }
 0x148   : > { %v5883_v20 = vld [vmem:[#allocation2 + $0x4c] sm:$0xf] }
 0x149   : > { %v795_v55 = vsel %vm792_vm1, %v762_v28, %v778_v37  ;;  %v811_v58 = vsel %vm792_vm1, %v778_v37, %v762_v28  ;;  %v894_v59 = vsel %vm891_vm3, %v861_v32, %v877_v38  ;;  %v910_v52 = vsel %vm891_vm3, %v877_v38, %v861_v32  ;;  %1058 = vst [vmem:[#allocation2 + $0x58] sm:$0xf] %v1026_v43 }
 0x14a   : > { %v829_v0 = vsel %vm758_vm0, 0.0, %v811_v58  ;;  %v929_v1 = vsel %vm858_vm2, 0.0, %v910_v52  ;;  %v961_v4 = vpack.c.bf16 %v795_v55, %v795_v55  ;;  %v1089_v53 = vpack.c.bf16 %v894_v59, %v894_v59  ;;  %1965 = vmatmul.bf16.gmra.mxu0 %v4750_v47  ;;  %v649_v5 = vpop.f32.mrf.mxu1  ;;  %v363_v55 = vld [vmem:[%s6579_s17 + $0x198] sm:$0xff] }
 0x14b   : > { %v960_v6 = vpack.c.bf16 %v829_v0, %v829_v0  ;;  %v1090_v7 = vpack.c.bf16 %v929_v1, %v929_v1  ;;  %v650_v12 = vadd.f32 %v649_v5, %v560_v49  ;;  %v361_v49 = vld [vmem:[%s6579_s17 + $0x188] sm:$0xff] }
 0x14c   : > { %994 = vst [vmem:[#allocation2 + $0x54] sm:$0xf] %v961_v4  ;;  %v6796_v5 = vpack.c.bf16 %v363_v55, %v361_v49 }
 0x14d   : > { %993 = vst [vmem:[#allocation2 + $0x48] sm:$0xf] %v960_v6  ;;  %v720_v13 = vmax.f32 %v650_v12, 0.0  ;;  %688 = vmatmul.bf16.gmra.mxu1 %v6779_v35  ;;  %v6064_v35 = vld [vmem:[#allocation11 + $0xd4] sm:$0xf0] }
 0x14e   : > { %1121 = vst [vmem:[#allocation2 + $0x50] sm:$0xf] %v1089_v53  ;;  %v5698_v46 = vor.u32 %v6064_v35, %v5697_v57 }
 0x14f   : > { %1122 = vst [vmem:[#allocation2 + $0x5c] sm:$0xf] %v1090_v7  ;;  %v1027_v14 = vpack.c.bf16 %v720_v13, %v720_v13  ;;  %v763_v58 = vrot.slane %v720_v13, 7  ;;  %v862_v59 = vrot.slane %v720_v13, 1 }
 0x150   : > { %v4755_v23 = vld [vmem:[#allocation2 + $0x54] sm:$0xf0]  ;;  %7901 = vst [vmem:[#allocation40_spill] sm:$0xff] %v6796_v5 }
 0x151   : > { %1059 = vst [vmem:[#allocation2 + $0x64] sm:$0xf] %v1027_v14  ;;  %v4758_v24 = vor.u32 %v5883_v20, %v4755_v23 }
 0x152   : > { %v651_v28 = vpop.f32.mrf.mxu1 }
 0x153   : > { %v652_v32 = vadd.f32 %v651_v28, %v562_v25  ;;  %1881 = vmatmul.bf16.gmra.mxu3 %v4758_v24  ;;  %v5884_v34 = vld [vmem:[#allocation2 + $0x50] sm:$0xf0] }
 0x154   : > { %v4753_v37 = vld [vmem:[#allocation2 + $0x48] sm:$0xf] }
 0x155   : > { %v721_v38 = vmax.f32 %v652_v32, 0.0  ;;  %v4754_v43 = vor.u32 %v5884_v34, %v4753_v37  ;;  %v4761_v47 = vld [vmem:[#allocation2 + $0x50] sm:$0xf] }
 0x156   : > { %v5885_v52 = vld [vmem:[#allocation2 + $0x58] sm:$0xf0] }
 0x157   : > { %v779_v0 = vrot.slane %v721_v38, 7  ;;  %v878_v1 = vrot.slane %v721_v38, 1  ;;  %v1028_v4 = vpack.c.bf16 %v721_v38, %v721_v38  ;;  %1792 = vmatmul.bf16.gmra.mxu2 %v4754_v43  ;;  %v4762_v53 = vor.u32 %v5885_v52, %v4761_v47  ;;  %v5866_v43 = vld [vmem:[#allocation8 + $0x68] sm:$0xff] }
 0x158   : > { %v5874_v47 = vld [vmem:[#allocation8 + $0xa8] sm:$0xff]  ;;  %v5886_v49 = vld [vmem:[#allocation2 + $0x64] sm:$0xf]  ;;  %2532 = vmatpush.bf16.msra.mxu2 %v5866_v43 }
 0x159   : > { %v796_v6 = vsel %vm792_vm1, %v763_v58, %v779_v0  ;;  %v812_v7 = vsel %vm792_vm1, %v779_v0, %v763_v58  ;;  %v895_v12 = vsel %vm891_vm3, %v862_v59, %v878_v1  ;;  %v911_v13 = vsel %vm891_vm3, %v878_v1, %v862_v59  ;;  %1060 = vst [vmem:[#allocation2 + $0x70] sm:$0xf] %v1028_v4  ;;  %v5858_v59 = vld [vmem:[#allocation8 + $0x28] sm:$0xff] }
 0x15a   : > { %v831_v14 = vsel %vm758_vm0, 0.0, %v812_v7  ;;  %v931_v20 = vsel %vm858_vm2, 0.0, %v911_v13  ;;  %v963_v23 = vpack.c.bf16 %v796_v6, %v796_v6  ;;  %v1091_v24 = vpack.c.bf16 %v895_v12, %v895_v12  ;;  %1970 = vmatmul.bf16.gmra.mxu0 %v4762_v53  ;;  %v654_v25 = vpop.f32.mrf.mxu1  ;;  %2621 = vmatpush.bf16.msra.mxu3 %v5874_v47  ;;  %v365_v12 = vld [vmem:[%s6579_s17 + $0x1a8] sm:$0xff]  ;;  %v367_v13 = vld [vmem:[%s6579_s17 + $0x1b8] sm:$0xff] }
 0x15b   : > { %v962_v28 = vpack.c.bf16 %v831_v14, %v831_v14  ;;  %v1092_v32 = vpack.c.bf16 %v931_v20, %v931_v20  ;;  %v655_v34 = vadd.f32 %v654_v25, %v6667_v63  ;;  %v6002_v63 = vld [vmem:[#allocation8 + $0x1a8] sm:$0xff]  ;;  %2443 = vmatpush.bf16.msra.mxu1 %v5858_v59 }
 0x15c   : > { %996 = vst [vmem:[#allocation2 + $0x6c] sm:$0xf] %v963_v23  ;;  %3224 = vmatpush.bf16.msra.mxu0 %v6002_v63 }
 0x15d   : > { %995 = vst [vmem:[#allocation2 + $0x60] sm:$0xf] %v962_v28  ;;  %v722_v37 = vmax.f32 %v655_v34, 0.0  ;;  %693 = vmatmul.bf16.gmra.mxu1 %v6796_v5  ;;  %v6815_v34 = vpack.c.bf16 %v367_v13, %v365_v12  ;;  %v5856_v12 = vld [vmem:[#allocation8 + $0x18] sm:$0xff] }
 0x15e   : > { %1123 = vst [vmem:[#allocation2 + $0x68] sm:$0xf] %v1091_v24 }
 0x15f   : > { %1124 = vst [vmem:[#allocation2 + $0x74] sm:$0xf] %v1092_v32  ;;  %v1029_v38 = vpack.c.bf16 %v722_v37, %v722_v37  ;;  %v764_v14 = vrot.slane %v722_v37, 7  ;;  %v863_v20 = vrot.slane %v722_v37, 1 }
 0x160   : > { %v4767_v55 = vld [vmem:[#allocation2 + $0x6c] sm:$0xf0]  ;;  %7902 = vst [vmem:[#allocation41_spill] sm:$0xff] %v6815_v34 }
 0x161   : > { %1061 = vst [vmem:[#allocation2 + $0x7c] sm:$0xf] %v1029_v38  ;;  %v4770_v58 = vor.u32 %v5886_v49, %v4767_v55 }
 0x162   : > { %v656_v52 = vpop.f32.mrf.mxu1 }
 0x163   : > { %v657_v0 = vadd.f32 %v656_v52, %v6680_v9  ;;  %1886 = vmatmul.bf16.gmra.mxu3 %v4770_v58  ;;  %v5887_v1 = vld [vmem:[#allocation2 + $0x68] sm:$0xf0]  ;;  %v6817_v9 = vpop.f32.mrf.mxu3 }
 0x164   : > { %v4765_v4 = vld [vmem:[#allocation2 + $0x60] sm:$0xf] }
 0x165   : > { %v723_v53 = vmax.f32 %v657_v0, 0.0  ;;  %v4766_v6 = vor.u32 %v5887_v1, %v4765_v4  ;;  %v4773_v7 = vld [vmem:[#allocation2 + $0x68] sm:$0xf]  ;;  %v5857_v4 = vld [vmem:[#allocation8 + $0x20] sm:$0xff] }
 0x166   : > { %v5888_v23 = vld [vmem:[#allocation2 + $0x70] sm:$0xf0]  ;;  %2444 = vmatpush.bf16.msra.mxu1 %v5857_v4 }
 0x167   : > { %v780_v24 = vrot.slane %v723_v53, 7  ;;  %v879_v25 = vrot.slane %v723_v53, 1  ;;  %v1030_v28 = vpack.c.bf16 %v723_v53, %v723_v53  ;;  %1797 = vmatmul.bf16.gmra.mxu2 %v4766_v6  ;;  %v4774_v32 = vor.u32 %v5888_v23, %v4773_v7  ;;  %v6832_v53 = vpop.f32.mrf.mxu2 }
 0x168   : > { %v5889_v13 = vld [vmem:[#allocation2 + $0x7c] sm:$0xf] }
 0x169   : > { %v797_v38 = vsel %vm792_vm1, %v764_v14, %v780_v24  ;;  %v813_v43 = vsel %vm792_vm1, %v780_v24, %v764_v14  ;;  %v896_v47 = vsel %vm891_vm3, %v863_v20, %v879_v25  ;;  %v912_v37 = vsel %vm891_vm3, %v879_v25, %v863_v20  ;;  %1062 = vst [vmem:[#allocation2 + $0x88] sm:$0xf] %v1030_v28  ;;  %v5855_v28 = vld [vmem:[#allocation8 + $0x10] sm:$0xff] }
 0x16a   : > { %v833_v49 = vsel %vm758_vm0, 0.0, %v813_v43  ;;  %v933_v55 = vsel %vm858_vm2, 0.0, %v912_v37  ;;  %v965_v58 = vpack.c.bf16 %v797_v38, %v797_v38  ;;  %v1093_v59 = vpack.c.bf16 %v896_v47, %v896_v47  ;;  %1975 = vmatmul.bf16.gmra.mxu0 %v4774_v32  ;;  %v659_v63 = vpop.f32.mrf.mxu1  ;;  %2445 = vmatpush.bf16.msra.mxu1 %v5856_v12  ;;  %v369_v37 = vld [vmem:[%s6579_s17 + $0x1c8] sm:$0xff] }
 0x16b   : > { %v964_v52 = vpack.c.bf16 %v833_v49, %v833_v49  ;;  %v1094_v0 = vpack.c.bf16 %v933_v55, %v933_v55  ;;  %v660_v1 = vadd.f32 %v659_v63, %v6686_v17  ;;  %v6835_v23 = vpop.f32.mrf.mxu3  ;;  %v371_v49 = vld [vmem:[%s6579_s17 + $0x1d8] sm:$0xff] }
 0x16c   : > { %998 = vst [vmem:[#allocation2 + $0x84] sm:$0xf] %v965_v58  ;;  %v6842_v12 = vpack.c.bf16 %v371_v49, %v369_v37  ;;  %v5853_v37 = vld [vmem:[#allocation8] sm:$0xff] }
 0x16d   : > { %997 = vst [vmem:[#allocation2 + $0x78] sm:$0xf] %v964_v52  ;;  %v724_v6 = vmax.f32 %v660_v1, 0.0  ;;  %698 = vmatmul.bf16.gmra.mxu1 %v6815_v34  ;;  %v6426_v52 = vmov 0  }
 0x16e   : > { %1125 = vst [vmem:[#allocation2 + $0x80] sm:$0xf] %v1093_v59  ;;  %2446 = vmatpush.bf16.msra.mxu1 %v5855_v28 }
 0x16f   : > { %1126 = vst [vmem:[#allocation2 + $0x8c] sm:$0xf] %v1094_v0  ;;  %v1031_v7 = vpack.c.bf16 %v724_v6, %v724_v6  ;;  %v765_v55 = vrot.slane %v724_v6, 7  ;;  %v864_v58 = vrot.slane %v724_v6, 1  ;;  %v6840_v63 = vpop.f32.mrf.mxu2 }
 0x170   : > { %v4779_v14 = vld [vmem:[#allocation2 + $0x84] sm:$0xf0]  ;;  %746 = vst [vmem:[#allocation2] sm:$0xff] %v6426_v52 }
 0x171   : > { %1063 = vst [vmem:[#allocation2 + $0x94] sm:$0xf] %v1031_v7  ;;  %v4782_v20 = vor.u32 %v5889_v13, %v4779_v14  ;;  %v5854_v7 = vld [vmem:[#allocation8 + $0x8] sm:$0xff] }
 0x172   : > { %v661_v17 = vpop.f32.mrf.mxu1  ;;  %748 = vst [vmem:[#allocation2 + $0xc] sm:$0xff] %v6426_v52  ;;  %2447 = vmatpush.bf16.msra.mxu1 %v5854_v7  ;;  %v6001_v7 = vld [vmem:[#allocation8 + $0x1a0] sm:$0xff] }
 0x173   : > { %v662_v24 = vadd.f32 %v661_v17, %v6699_v31  ;;  %1891 = vmatmul.bf16.gmra.mxu3 %v4782_v20  ;;  %v5890_v25 = vld [vmem:[#allocation2 + $0x80] sm:$0xf0]  ;;  %7903 = vst [vmem:[#allocation42_spill] sm:$0xff] %v6842_v12  ;;  %v6857_v49 = vpop.f32.mrf.mxu3  ;;  %3225 = vmatpush.bf16.msra.mxu0 %v6001_v7 }
 0x174   : > { %v4777_v32 = vld [vmem:[#allocation2 + $0x78] sm:$0xf]  ;;  %747 = vst [vmem:[#allocation2 + $0x8] sm:$0xf] %v6426_v52 }
 0x175   : > { %v725_v38 = vmax.f32 %v662_v24, 0.0  ;;  %v4778_v43 = vor.u32 %v5890_v25, %v4777_v32  ;;  %v4785_v47 = vld [vmem:[#allocation2 + $0x80] sm:$0xf]  ;;  %749 = vst [vmem:[#allocation2 + $0x14] sm:$0xf] %v6426_v52 }
 0x176   : > { %v5891_v59 = vld [vmem:[#allocation2 + $0x88] sm:$0xf0]  ;;  %751 = vst [vmem:[#allocation2 + $0x198] sm:$0xff] %v6426_v52  ;;  %2448 = vmatpush.bf16.msra.mxu1 %v5853_v37 }
 0x177   : > { %v781_v0 = vrot.slane %v725_v38, 7  ;;  %v880_v1 = vrot.slane %v725_v38, 1  ;;  %v1032_v31 = vpack.c.bf16 %v725_v38, %v725_v38  ;;  %1802 = vmatmul.bf16.gmra.mxu2 %v4778_v43  ;;  %v4786_v4 = vor.u32 %v5891_v59, %v4785_v47  ;;  %v5865_v59 = vld [vmem:[#allocation8 + $0x60] sm:$0xff]  ;;  %752 = vst [vmem:[#allocation2 + $0x1a0] sm:$0xf] %v6426_v52 }
 0x178   : > { %2533 = vmatpush.bf16.msra.mxu2 %v5865_v59  ;;  %753 = vst [vmem:[#allocation2 + $0x1a4] sm:$0xff] %v6426_v52 }
 0x179   : > { %v798_v13 = vsel %vm792_vm1, %v765_v55, %v781_v0  ;;  %v814_v6 = vsel %vm792_vm1, %v781_v0, %v765_v55  ;;  %v897_v14 = vsel %vm891_vm3, %v864_v58, %v880_v1  ;;  %v913_v20 = vsel %vm891_vm3, %v880_v1, %v864_v58  ;;  %1064 = vst [vmem:[#allocation2 + $0xa0] sm:$0xf] %v1032_v31  ;;  %v5873_v0 = vld [vmem:[#allocation8 + $0xa0] sm:$0xff]  ;;  %v6860_v1 = vpop.f32.mrf.mxu2 }
 0x17a   : > { %v835_v17 = vsel %vm758_vm0, 0.0, %v814_v6  ;;  %v935_v24 = vsel %vm858_vm2, 0.0, %v913_v20  ;;  %v967_v25 = vpack.c.bf16 %v798_v13, %v798_v13  ;;  %v1095_v28 = vpack.c.bf16 %v897_v14, %v897_v14  ;;  %1980 = vmatmul.bf16.gmra.mxu0 %v4786_v4  ;;  %v664_v32 = vpop.f32.mrf.mxu1  ;;  %v5892_v31 = vld [vmem:[#allocation2 + $0x94] sm:$0xf]  ;;  %2622 = vmatpush.bf16.msra.mxu3 %v5873_v0  ;;  %754 = vst [vmem:[#allocation2 + $0x1ac] sm:$0xf] %v6426_v52 }
 0x17b   : > { %v966_v38 = vpack.c.bf16 %v835_v17, %v835_v17  ;;  %v1096_v43 = vpack.c.bf16 %v935_v24, %v935_v24  ;;  %v665_v47 = vadd.f32 %v664_v32, %v6705_v41  ;;  %v375_v32 = vld [vmem:[%s6579_s17 + $0x1f8] sm:$0xff]  ;;  %v6865_v37 = vpop.f32.mrf.mxu3 }
 0x17c   : > { %1000 = vst [vmem:[#allocation2 + $0x9c] sm:$0xf] %v967_v25 }
 0x17d   : > { %999 = vst [vmem:[#allocation2 + $0x90] sm:$0xf] %v966_v38  ;;  %v726_v55 = vmax.f32 %v665_v47, 0.0  ;;  %703 = vmatmul.bf16.gmra.mxu1 %v6842_v12 }
 0x17e   : > { %1127 = vst [vmem:[#allocation2 + $0x98] sm:$0xf] %v1095_v28  ;;  %v373_v28 = vld [vmem:[%s6579_s17 + $0x1e8] sm:$0xff] }
 0x17f   : > { %1128 = vst [vmem:[#allocation2 + $0xa4] sm:$0xf] %v1096_v43  ;;  %v1033_v58 = vpack.c.bf16 %v726_v55, %v726_v55  ;;  %v766_v38 = vrot.slane %v726_v55, 7  ;;  %v865_v43 = vrot.slane %v726_v55, 1 }
 0x180   : > { %v4791_v4 = vld [vmem:[#allocation2 + $0x9c] sm:$0xf0] }
 0x181   : > { %1065 = vst [vmem:[#allocation2 + $0xac] sm:$0xf] %v1033_v58  ;;  %v4794_v41 = vor.u32 %v5892_v31, %v4791_v4  ;;  %v6867_v31 = vpack.c.bf16 %v375_v32, %v373_v28 }
 0x182   : > { %v666_v13 = vpop.f32.mrf.mxu1 }
 0x183   : > { %v667_v6 = vadd.f32 %v666_v13, %v6718_v56  ;;  %1896 = vmatmul.bf16.gmra.mxu3 %v4794_v41  ;;  %v5893_v14 = vld [vmem:[#allocation2 + $0x98] sm:$0xf0]  ;;  %7904 = vst [vmem:[#allocation43_spill] sm:$0xff] %v6867_v31 }
 0x184   : > { %v4789_v20 = vld [vmem:[#allocation2 + $0x90] sm:$0xf] }
 0x185   : > { %v727_v17 = vmax.f32 %v667_v6, 0.0  ;;  %v4790_v24 = vor.u32 %v5893_v14, %v4789_v20  ;;  %v4797_v25 = vld [vmem:[#allocation2 + $0x98] sm:$0xf]  ;;  %v6881_v20 = vpop.f32.mrf.mxu2 }
 0x186   : > { %v5894_v47 = vld [vmem:[#allocation2 + $0xa0] sm:$0xf0] }
 0x187   : > { %v782_v58 = vrot.slane %v727_v17, 7  ;;  %v881_v59 = vrot.slane %v727_v17, 1  ;;  %v1034_v0 = vpack.c.bf16 %v727_v17, %v727_v17  ;;  %1807 = vmatmul.bf16.gmra.mxu2 %v4790_v24  ;;  %v4798_v56 = vor.u32 %v5894_v47, %v4797_v25 }
 0x189   : > { %v799_v52 = vsel %vm792_vm1, %v766_v38, %v782_v58  ;;  %v815_v4 = vsel %vm792_vm1, %v782_v58, %v766_v38  ;;  %v898_v41 = vsel %vm891_vm3, %v865_v43, %v881_v59  ;;  %v914_v55 = vsel %vm891_vm3, %v881_v59, %v865_v43  ;;  %1066 = vst [vmem:[#allocation2 + $0xb8] sm:$0xf] %v1034_v0  ;;  %v5895_v43 = vld [vmem:[#allocation2 + $0xac] sm:$0xf]  ;;  %v6885_v58 = vpop.f32.mrf.mxu3 }
 0x18a   : > { %v837_v7 = vsel %vm758_vm0, 0.0, %v815_v4  ;;  %v937_v13 = vsel %vm858_vm2, 0.0, %v914_v55  ;;  %v969_v6 = vpack.c.bf16 %v799_v52, %v799_v52  ;;  %v1097_v14 = vpack.c.bf16 %v898_v41, %v898_v41  ;;  %1985 = vmatmul.bf16.gmra.mxu0 %v4798_v56  ;;  %v669_v17 = vpop.f32.mrf.mxu1  ;;  %v5017_v41 = vld [vmem:[#allocation2] sm:$0xf] }
 0x18b   : > { %v968_v24 = vpack.c.bf16 %v837_v7, %v837_v7  ;;  %v1098_v25 = vpack.c.bf16 %v937_v13, %v937_v13  ;;  %v670_v28 = vadd.f32 %v669_v17, %v6724_v61 }
 0x18c   : > { %1002 = vst [vmem:[#allocation2 + $0xb4] sm:$0xf] %v969_v6  ;;  %v5806_v6 = vld [vmem:[#allocation2 + $0x8] sm:$0xf0] }
 0x18d   : > { %1001 = vst [vmem:[#allocation2 + $0xa8] sm:$0xf] %v968_v24  ;;  %v728_v32 = vmax.f32 %v670_v28, 0.0  ;;  %708 = vmatmul.bf16.gmra.mxu1 %v6867_v31  ;;  %v6888_v61 = vpop.f32.mrf.mxu2 }
 0x18e   : > { %1129 = vst [vmem:[#allocation2 + $0xb0] sm:$0xf] %v1097_v14 }
 0x18f   : > { %1130 = vst [vmem:[#allocation2 + $0xbc] sm:$0xf] %v1098_v25  ;;  %v1035_v38 = vpack.c.bf16 %v728_v32, %v728_v32  ;;  %v767_v14 = vrot.slane %v728_v32, 7  ;;  %v866_v17 = vrot.slane %v728_v32, 1 }
 0x190   : > { %v4803_v47 = vld [vmem:[#allocation2 + $0xb4] sm:$0xf0] }
 0x191   : > { %1067 = vst [vmem:[#allocation2 + $0xc4] sm:$0xf] %v1035_v38  ;;  %v4806_v59 = vor.u32 %v5895_v43, %v4803_v47  ;;  %v5018_v47 = vor.u32 %v5806_v6, %v5017_v41 }
 0x192   : > { %v671_v0 = vpop.f32.mrf.mxu1 }
 0x193   : > { %v672_v56 = vadd.f32 %v671_v0, %v6727_v10  ;;  %1901 = vmatmul.bf16.gmra.mxu3 %v4806_v59  ;;  %v5896_v52 = vld [vmem:[#allocation2 + $0xb0] sm:$0xf0] }
 0x194   : > { %v4801_v4 = vld [vmem:[#allocation2 + $0xa8] sm:$0xf] }
 0x195   : > { %v729_v55 = vmax.f32 %v672_v56, 0.0  ;;  %v4802_v7 = vor.u32 %v5896_v52, %v4801_v4  ;;  %v4809_v13 = vld [vmem:[#allocation2 + $0xb0] sm:$0xf] }
 0x196   : > { %v5897_v24 = vld [vmem:[#allocation2 + $0xb8] sm:$0xf0] }
 0x197   : > { %v783_v25 = vrot.slane %v729_v55, 7  ;;  %v882_v28 = vrot.slane %v729_v55, 1  ;;  %v1036_v38 = vpack.c.bf16 %v729_v55, %v729_v55  ;;  %1812 = vmatmul.bf16.gmra.mxu2 %v4802_v7  ;;  %v4810_v43 = vor.u32 %v5897_v24, %v4809_v13  ;;  %v6902_v7 = vpop.f32.mrf.mxu3  ;;  %v6905_v24 = vpop.f32.mrf.mxu2 }
 0x199   : > { %v800_v10 = vsel %vm792_vm1, %v767_v14, %v783_v25  ;;  %v816_v59 = vsel %vm792_vm1, %v783_v25, %v767_v14  ;;  %v899_v0 = vsel %vm891_vm3, %v866_v17, %v882_v28  ;;  %v915_v56 = vsel %vm891_vm3, %v882_v28, %v866_v17  ;;  %1068 = vst [vmem:[#allocation2 + $0xd0] sm:$0xf] %v1036_v38  ;;  %v5864_v28 = vld [vmem:[#allocation8 + $0x58] sm:$0xff] }
 0x19a   : > { %v839_v32 = vsel %vm758_vm0, 0.0, %v816_v59  ;;  %v939_v52 = vsel %vm858_vm2, 0.0, %v915_v56  ;;  %v971_v4 = vpack.c.bf16 %v800_v10, %v800_v10  ;;  %v1099_v41 = vpack.c.bf16 %v899_v0, %v899_v0  ;;  %1990 = vmatmul.bf16.gmra.mxu0 %v4810_v43  ;;  %v674_v55 = vpop.f32.mrf.mxu1  ;;  %v5872_v38 = vld [vmem:[#allocation8 + $0x98] sm:$0xff]  ;;  %v5898_v10 = vld [vmem:[#allocation2 + $0xc4] sm:$0xf]  ;;  %2534 = vmatpush.bf16.msra.mxu2 %v5864_v28 }
 0x19b   : > { %v970_v13 = vpack.c.bf16 %v839_v32, %v839_v32  ;;  %v1100_v6 = vpack.c.bf16 %v939_v52, %v939_v52  ;;  %v675_v14 = vadd.f32 %v674_v55, %v6832_v53  ;;  %2623 = vmatpush.bf16.msra.mxu3 %v5872_v38  ;;  %v6000_v0 = vld [vmem:[#allocation8 + $0x198] sm:$0xff] }
 0x19c   : > { %1004 = vst [vmem:[#allocation2 + $0xcc] sm:$0xf] %v971_v4  ;;  %3226 = vmatpush.bf16.msra.mxu0 %v6000_v0 }
 0x19d   : > { %1003 = vst [vmem:[#allocation2 + $0xc0] sm:$0xf] %v970_v13  ;;  %v730_v17 = vmax.f32 %v675_v14, 0.0  ;;  %2449 = vmatmul.bf16.vlgmr.msra.gmra.mxu1 %v5018_v47 }
 0x19e   : > { %1131 = vst [vmem:[#allocation2 + $0xc8] sm:$0xf] %v1099_v41 }
 0x19f   : > { %1132 = vst [vmem:[#allocation2 + $0xd4] sm:$0xf] %v1100_v6  ;;  %v1037_v25 = vpack.c.bf16 %v730_v17, %v730_v17  ;;  %v6908_v47 = vpop.f32.mrf.mxu3  ;;  %v768_v13 = vrot.slane %v730_v17, 7  ;;  %v867_v6 = vrot.slane %v730_v17, 1 }
 0x1a0   : > { %v4815_v43 = vld [vmem:[#allocation2 + $0xcc] sm:$0xf0] }
 0x1a1   : > { %1069 = vst [vmem:[#allocation2 + $0xdc] sm:$0xf] %v1037_v25  ;;  %v4818_v59 = vor.u32 %v5898_v10, %v4815_v43  ;;  %v6910_v43 = vpop.f32.mrf.mxu2 }
 0x1a2   : > { %v676_v56 = vpop.f32.mrf.mxu1 }
 0x1a3   : > { %v677_v53 = vadd.f32 %v676_v56, %v6840_v63  ;;  %1906 = vmatmul.bf16.gmra.mxu3 %v4818_v59  ;;  %v5899_v32 = vld [vmem:[#allocation2 + $0xc8] sm:$0xf0]  ;;  %v5029_v63 = vld [vmem:[#allocation2 + $0x18] sm:$0xf]  ;;  %v5809_v59 = vld [vmem:[#allocation2 + $0x20] sm:$0xf0] }
 0x1a4   : > { %v4813_v52 = vld [vmem:[#allocation2 + $0xc0] sm:$0xf] }
 0x1a5   : > { %v731_v4 = vmax.f32 %v677_v53, 0.0  ;;  %v4814_v41 = vor.u32 %v5899_v32, %v4813_v52  ;;  %v4821_v55 = vld [vmem:[#allocation2 + $0xc8] sm:$0xf] }
 0x1a6   : > { %v5900_v14 = vld [vmem:[#allocation2 + $0xd0] sm:$0xf0] }
 0x1a7   : > { %v784_v25 = vrot.slane %v731_v4, 7  ;;  %v883_v10 = vrot.slane %v731_v4, 1  ;;  %v1038_v28 = vpack.c.bf16 %v731_v4, %v731_v4  ;;  %1817 = vmatmul.bf16.gmra.mxu2 %v4814_v41  ;;  %v4822_v38 = vor.u32 %v5900_v14, %v4821_v55 }
 0x1a9   : > { %v801_v0 = vsel %vm792_vm1, %v768_v13, %v784_v25  ;;  %v817_v56 = vsel %vm792_vm1, %v784_v25, %v768_v13  ;;  %v900_v53 = vsel %vm891_vm3, %v867_v6, %v883_v10  ;;  %v916_v17 = vsel %vm891_vm3, %v883_v10, %v867_v6  ;;  %1070 = vst [vmem:[#allocation2 + $0xe8] sm:$0xf] %v1038_v28  ;;  %v6925_v6 = vpop.f32.mrf.mxu3  ;;  %v5901_v28 = vld [vmem:[#allocation2 + $0xdc] sm:$0xf] }
 0x1aa   : > { %v841_v32 = vsel %vm758_vm0, 0.0, %v817_v56  ;;  %v941_v52 = vsel %vm858_vm2, 0.0, %v916_v17  ;;  %v973_v4 = vpack.c.bf16 %v801_v0, %v801_v0  ;;  %v1101_v41 = vpack.c.bf16 %v900_v53, %v900_v53  ;;  %1995 = vmatmul.bf16.gmra.mxu0 %v4822_v38  ;;  %v679_v55 = vpop.f32.mrf.mxu1  ;;  %v6927_v38 = vpop.f32.mrf.mxu2 }
 0x1ab   : > { %v972_v14 = vpack.c.bf16 %v841_v32, %v841_v32  ;;  %v1102_v31 = vpack.c.bf16 %v941_v52, %v941_v52  ;;  %v680_v13 = vadd.f32 %v679_v55, %v6860_v1  ;;  %v5030_v25 = vor.u32 %v5809_v59, %v5029_v63  ;;  %v5812_v59 = vld [vmem:[#allocation2 + $0x38] sm:$0xf0] }
 0x1ac   : > { %1006 = vst [vmem:[#allocation2 + $0xe4] sm:$0xf] %v973_v4 }
 0x1ad   : > { %1005 = vst [vmem:[#allocation2 + $0xd8] sm:$0xf] %v972_v14  ;;  %v732_v50 = vmax.f32 %v680_v13, 0.0  ;;  %2454 = vmatmul.bf16.gmra.mxu1 %v5030_v25 }
 0x1ae   : > { %1133 = vst [vmem:[#allocation2 + $0xe0] sm:$0xf] %v1101_v41  ;;  %v5041_v41 = vld [vmem:[#allocation2 + $0x30] sm:$0xf] }
 0x1af   : > { %1134 = vst [vmem:[#allocation2 + $0xec] sm:$0xf] %v1102_v31  ;;  %v1039_v10 = vpack.c.bf16 %v732_v50, %v732_v50  ;;  %v769_v55 = vrot.slane %v732_v50, 7  ;;  %v868_v31 = vrot.slane %v732_v50, 1  ;;  %v5042_v29 = vor.u32 %v5812_v59, %v5041_v41 }
 0x1b0   : > { %v4827_v56 = vld [vmem:[#allocation2 + $0xe4] sm:$0xf0] }
 0x1b1   : > { %1071 = vst [vmem:[#allocation2 + $0xf4] sm:$0xf] %v1039_v10  ;;  %v4830_v0 = vor.u32 %v5901_v28, %v4827_v56  ;;  %v5127_v18 = vld [vmem:[#allocation2 + $0xe4] sm:$0xf0] }
 0x1b2   : > { %v681_v53 = vpop.f32.mrf.mxu1 }
 0x1b3   : > { %v682_v17 = vadd.f32 %v681_v53, %v6881_v20  ;;  %1911 = vmatmul.bf16.gmra.mxu3 %v4830_v0  ;;  %v5902_v1 = vld [vmem:[#allocation2 + $0xe0] sm:$0xf0] }
 0x1b4   : > { %v4825_v63 = vld [vmem:[#allocation2 + $0xd8] sm:$0xf] }
 0x1b5   : > { %v733_v32 = vmax.f32 %v682_v17, 0.0  ;;  %v4826_v52 = vor.u32 %v5902_v1, %v4825_v63  ;;  %v4833_v4 = vld [vmem:[#allocation2 + $0xe0] sm:$0xf] }
 0x1b6   : > { %v1872_v14 = vpop.f32.mrf.mxu3  ;;  %v5903_v13 = vld [vmem:[#allocation2 + $0xe8] sm:$0xf0] }
 0x1b7   : > { %v785_v25 = vrot.slane %v733_v32, 7  ;;  %v884_v10 = vrot.slane %v733_v32, 1  ;;  %v1040_v28 = vpack.c.bf16 %v733_v32, %v733_v32  ;;  %v1961_v56 = vpop.f32.mrf.mxu0  ;;  %1822 = vmatmul.bf16.gmra.mxu2 %v4826_v52  ;;  %v4834_v12 = vor.u32 %v5903_v13, %v4833_v4 }
 0x1b9   : > { %v802_v20 = vsel %vm792_vm1, %v769_v55, %v785_v25  ;;  %v818_v0 = vsel %vm792_vm1, %v785_v25, %v769_v55  ;;  %v901_v53 = vsel %vm891_vm3, %v868_v31, %v884_v10  ;;  %v917_v50 = vsel %vm891_vm3, %v884_v10, %v868_v31  ;;  %1072 = vst [vmem:[#allocation2 + $0x100] sm:$0xf] %v1040_v28 }
 0x1ba   : > { %v843_v17 = vsel %vm758_vm0, 0.0, %v818_v0  ;;  %v943_v1 = vsel %vm858_vm2, 0.0, %v917_v50  ;;  %v975_v63 = vpack.c.bf16 %v802_v20, %v802_v20  ;;  %v1103_v59 = vpack.c.bf16 %v901_v53, %v901_v53  ;;  %2000 = vmatmul.bf16.gmra.mxu0 %v4834_v12  ;;  %v684_v32 = vpop.f32.mrf.mxu1  ;;  %v1783_v52 = vpop.f32.mrf.mxu2  ;;  %v5863_v0 = vld [vmem:[#allocation8 + $0x50] sm:$0xff]  ;;  %v5904_v53 = vld [vmem:[#allocation2 + $0xf4] sm:$0xf] }
 0x1bb   : > { %v974_v4 = vpack.c.bf16 %v843_v17, %v843_v17  ;;  %v1104_v41 = vpack.c.bf16 %v943_v1, %v943_v1  ;;  %v685_v55 = vadd.f32 %v684_v32, %v6888_v61  ;;  %v1873_v13 = vadd.f32 %v1872_v14, %v1783_v52  ;;  %v5871_v12 = vld [vmem:[#allocation8 + $0x90] sm:$0xff]  ;;  %2535 = vmatpush.bf16.msra.mxu2 %v5863_v0  ;;  %v5815_v32 = vld [vmem:[#allocation2 + $0x50] sm:$0xf0] }
 0x1bc   : > { %1008 = vst [vmem:[#allocation2 + $0xfc] sm:$0xf] %v975_v63  ;;  %2624 = vmatpush.bf16.msra.mxu3 %v5871_v12  ;;  %v5999_v61 = vld [vmem:[#allocation8 + $0x190] sm:$0xff] }
 0x1bd   : > { %1007 = vst [vmem:[#allocation2 + $0xf0] sm:$0xf] %v974_v4  ;;  %v734_v31 = vmax.f32 %v685_v55, 0.0  ;;  %2459 = vmatmul.bf16.gmra.mxu1 %v5042_v29  ;;  %v6943_v25 = vadd.f32 %v1961_v56, %v1873_v13  ;;  %3227 = vmatpush.bf16.msra.mxu0 %v5999_v61  ;;  %v5053_v55 = vld [vmem:[#allocation2 + $0x48] sm:$0xf] }
 0x1be   : > { %1135 = vst [vmem:[#allocation2 + $0xf8] sm:$0xf] %v1103_v59  ;;  %v1874_v10 = vpop.f32.mrf.mxu3 }
 0x1bf   : > { %1136 = vst [vmem:[#allocation2 + $0x104] sm:$0xf] %v1104_v41  ;;  %v1041_v28 = vpack.c.bf16 %v734_v31, %v734_v31  ;;  %v1963_v20 = vpop.f32.mrf.mxu0  ;;  %v869_v0 = vrot.slane %v734_v31, 1 }
 0x1c0   : > { %v4839_v50 = vld [vmem:[#allocation2 + $0xfc] sm:$0xf0] }
 0x1c1   : > { %1073 = vst [vmem:[#allocation2 + $0x10c] sm:$0xf] %v1041_v28  ;;  %v4842_v17 = vor.u32 %v5904_v53, %v4839_v50  ;;  %v770_v28 = vrot.slane %v734_v31, 7 }
 0x1c2   : > { %v686_v14 = vpop.f32.mrf.mxu1  ;;  %v1785_v1 = vpop.f32.mrf.mxu2 }
 0x1c3   : > { %v687_v29 = vadd.f32 %v686_v14, %v6905_v24  ;;  %v1875_v56 = vadd.f32 %v1874_v10, %v1785_v1  ;;  %1916 = vmatmul.bf16.gmra.mxu3 %v4842_v17  ;;  %v5905_v63 = vld [vmem:[#allocation2 + $0xf8] sm:$0xf0]  ;;  %v5054_v17 = vor.u32 %v5815_v32, %v5053_v55 }
 0x1c4   : > { %v4837_v59 = vld [vmem:[#allocation2 + $0xf0] sm:$0xf] }
 0x1c5   : > { %v735_v52 = vmax.f32 %v687_v29, 0.0  ;;  %v4838_v4 = vor.u32 %v5905_v63, %v4837_v59  ;;  %v4845_v41 = vld [vmem:[#allocation2 + $0xf8] sm:$0xf]  ;;  %v6946_v13 = vadd.f32 %v1963_v20, %v1875_v56 }
 0x1c6   : > { %v1877_v12 = vpop.f32.mrf.mxu3  ;;  %v5906_v53 = vld [vmem:[#allocation2 + $0x100] sm:$0xf0] }
 0x1c7   : > { %v786_v50 = vrot.slane %v735_v52, 7  ;;  %v885_v34 = vrot.slane %v735_v52, 1  ;;  %v1042_v8 = vpack.c.bf16 %v735_v52, %v735_v52  ;;  %v1966_v24 = vpop.f32.mrf.mxu0  ;;  %1827 = vmatmul.bf16.gmra.mxu2 %v4838_v4  ;;  %v4846_v10 = vor.u32 %v5906_v53, %v4845_v41 }
 0x1c9   : > { %v803_v61 = vsel %vm792_vm1, %v770_v28, %v786_v50  ;;  %v819_v14 = vsel %vm792_vm1, %v786_v50, %v770_v28  ;;  %v902_v20 = vsel %vm891_vm3, %v869_v0, %v885_v34  ;;  %v918_v31 = vsel %vm891_vm3, %v885_v34, %v869_v0  ;;  %1074 = vst [vmem:[#allocation2 + $0x118] sm:$0xf] %v1042_v8  ;;  %v5907_v50 = vld [vmem:[#allocation2 + $0x10c] sm:$0xf] }
 0x1ca   : > { %v845_v1 = vsel %vm758_vm0, 0.0, %v819_v14  ;;  %v945_v29 = vsel %vm858_vm2, 0.0, %v918_v31  ;;  %v977_v56 = vpack.c.bf16 %v803_v61, %v803_v61  ;;  %v1105_v63 = vpack.c.bf16 %v902_v20, %v902_v20  ;;  %2005 = vmatmul.bf16.gmra.mxu0 %v4846_v10  ;;  %v689_v59 = vpop.f32.mrf.mxu1  ;;  %v1788_v32 = vpop.f32.mrf.mxu2 }
 0x1cb   : > { %v976_v52 = vpack.c.bf16 %v845_v1, %v845_v1  ;;  %v1106_v4 = vpack.c.bf16 %v945_v29, %v945_v29  ;;  %v690_v41 = vadd.f32 %v689_v59, %v6910_v43  ;;  %v1878_v55 = vadd.f32 %v1877_v12, %v1788_v32 }
 0x1cc   : > { %1010 = vst [vmem:[#allocation2 + $0x114] sm:$0xf] %v977_v56 }
 0x1cd   : > { %1009 = vst [vmem:[#allocation2 + $0x108] sm:$0xf] %v976_v52  ;;  %v736_v34 = vmax.f32 %v690_v41, 0.0  ;;  %2464 = vmatmul.bf16.gmra.mxu1 %v5054_v17  ;;  %v6961_v8 = vadd.f32 %v1966_v24, %v1878_v55  ;;  %v5818_v17 = vld [vmem:[#allocation2 + $0x68] sm:$0xf0] }
 0x1ce   : > { %1137 = vst [vmem:[#allocation2 + $0x110] sm:$0xf] %v1105_v63  ;;  %v1879_v28 = vpop.f32.mrf.mxu3  ;;  %v5065_v63 = vld [vmem:[#allocation2 + $0x60] sm:$0xf] }
 0x1cf   : > { %1138 = vst [vmem:[#allocation2 + $0x11c] sm:$0xf] %v1106_v4  ;;  %v1043_v0 = vpack.c.bf16 %v736_v34, %v736_v34  ;;  %v1968_v53 = vpop.f32.mrf.mxu0  ;;  %v771_v32 = vrot.slane %v736_v34, 7  ;;  %v870_v52 = vrot.slane %v736_v34, 1 }
 0x1d0   : > { %v4851_v10 = vld [vmem:[#allocation2 + $0x114] sm:$0xf0] }
 0x1d1   : > { %1075 = vst [vmem:[#allocation2 + $0x124] sm:$0xf] %v1043_v0  ;;  %v4854_v61 = vor.u32 %v5907_v50, %v4851_v10 }
 0x1d2   : > { %v691_v14 = vpop.f32.mrf.mxu1  ;;  %v1790_v20 = vpop.f32.mrf.mxu2 }
 0x1d3   : > { %v692_v43 = vadd.f32 %v691_v14, %v6927_v38  ;;  %v1880_v12 = vadd.f32 %v1879_v28, %v1790_v20  ;;  %1921 = vmatmul.bf16.gmra.mxu3 %v4854_v61  ;;  %v5908_v31 = vld [vmem:[#allocation2 + $0x110] sm:$0xf0]  ;;  %v5066_v28 = vor.u32 %v5818_v17, %v5065_v63 }
 0x1d4   : > { %v4849_v1 = vld [vmem:[#allocation2 + $0x108] sm:$0xf] }
 0x1d5   : > { %v737_v24 = vmax.f32 %v692_v43, 0.0  ;;  %v4850_v29 = vor.u32 %v5908_v31, %v4849_v1  ;;  %v4857_v56 = vld [vmem:[#allocation2 + $0x110] sm:$0xf]  ;;  %v6964_v59 = vadd.f32 %v1968_v53, %v1880_v12 }
 0x1d6   : > { %v1882_v4 = vpop.f32.mrf.mxu3  ;;  %v5909_v41 = vld [vmem:[#allocation2 + $0x118] sm:$0xf0] }
 0x1d7   : > { %v787_v55 = vrot.slane %v737_v24, 7  ;;  %v886_v0 = vrot.slane %v737_v24, 1  ;;  %v1044_v50 = vpack.c.bf16 %v737_v24, %v737_v24  ;;  %v1971_v10 = vpop.f32.mrf.mxu0  ;;  %1832 = vmatmul.bf16.gmra.mxu2 %v4850_v29  ;;  %v4858_v38 = vor.u32 %v5909_v41, %v4857_v56 }
 0x1d9   : > { %v804_v61 = vsel %vm792_vm1, %v771_v32, %v787_v55  ;;  %v820_v14 = vsel %vm792_vm1, %v787_v55, %v771_v32  ;;  %v903_v53 = vsel %vm891_vm3, %v870_v52, %v886_v0  ;;  %v919_v34 = vsel %vm891_vm3, %v886_v0, %v870_v52  ;;  %1076 = vst [vmem:[#allocation2 + $0x130] sm:$0xf] %v1044_v50  ;;  %v5862_v50 = vld [vmem:[#allocation8 + $0x48] sm:$0xff] }
 0x1da   : > { %v847_v20 = vsel %vm758_vm0, 0.0, %v820_v14  ;;  %v947_v43 = vsel %vm858_vm2, 0.0, %v919_v34  ;;  %v979_v12 = vpack.c.bf16 %v804_v61, %v804_v61  ;;  %v1107_v31 = vpack.c.bf16 %v903_v53, %v903_v53  ;;  %2010 = vmatmul.bf16.gmra.mxu0 %v4858_v38  ;;  %v694_v1 = vpop.f32.mrf.mxu1  ;;  %v1793_v17 = vpop.f32.mrf.mxu2  ;;  %v5870_v38 = vld [vmem:[#allocation8 + $0x88] sm:$0xff]  ;;  %v5910_v61 = vld [vmem:[#allocation2 + $0x124] sm:$0xf]  ;;  %2536 = vmatpush.bf16.msra.mxu2 %v5862_v50 }
 0x1db   : > { %v978_v24 = vpack.c.bf16 %v847_v20, %v847_v20  ;;  %v1108_v29 = vpack.c.bf16 %v947_v43, %v947_v43  ;;  %v695_v56 = vadd.f32 %v694_v1, %v6817_v9  ;;  %v1883_v63 = vadd.f32 %v1882_v4, %v1793_v17  ;;  %2625 = vmatpush.bf16.msra.mxu3 %v5870_v38  ;;  %v5998_v9 = vld [vmem:[#allocation8 + $0x188] sm:$0xff] }
 0x1dc   : > { %1012 = vst [vmem:[#allocation2 + $0x12c] sm:$0xf] %v979_v12  ;;  %3228 = vmatpush.bf16.msra.mxu0 %v5998_v9  ;;  %v5821_v12 = vld [vmem:[#allocation2 + $0x80] sm:$0xf0] }
 0x1dd   : > { %1011 = vst [vmem:[#allocation2 + $0x120] sm:$0xf] %v978_v24  ;;  %v738_v32 = vmax.f32 %v695_v56, 0.0  ;;  %2469 = vmatmul.bf16.gmra.mxu1 %v5066_v28  ;;  %v6979_v52 = vadd.f32 %v1971_v10, %v1883_v63  ;;  %v5077_v24 = vld [vmem:[#allocation2 + $0x78] sm:$0xf] }
 0x1de   : > { %1139 = vst [vmem:[#allocation2 + $0x128] sm:$0xf] %v1107_v31  ;;  %v1884_v41 = vpop.f32.mrf.mxu3 }
 0x1df   : > { %1140 = vst [vmem:[#allocation2 + $0x134] sm:$0xf] %v1108_v29  ;;  %v1045_v55 = vpack.c.bf16 %v738_v32, %v738_v32  ;;  %v1973_v0 = vpop.f32.mrf.mxu0  ;;  %v772_v56 = vrot.slane %v738_v32, 7  ;;  %v871_v63 = vrot.slane %v738_v32, 1 }
 0x1e0   : > { %v4863_v14 = vld [vmem:[#allocation2 + $0x12c] sm:$0xf0] }
 0x1e1   : > { %1077 = vst [vmem:[#allocation2 + $0x13c] sm:$0xf] %v1045_v55  ;;  %v4866_v53 = vor.u32 %v5910_v61, %v4863_v14 }
 0x1e2   : > { %v696_v4 = vpop.f32.mrf.mxu1  ;;  %v1795_v34 = vpop.f32.mrf.mxu2 }
 0x1e3   : > { %v697_v28 = vadd.f32 %v696_v4, %v6835_v23  ;;  %v1885_v10 = vadd.f32 %v1884_v41, %v1795_v34  ;;  %1926 = vmatmul.bf16.gmra.mxu3 %v4866_v53  ;;  %v5911_v20 = vld [vmem:[#allocation2 + $0x128] sm:$0xf0]  ;;  %v5078_v53 = vor.u32 %v5821_v12, %v5077_v24 }
 0x1e4   : > { %v4861_v43 = vld [vmem:[#allocation2 + $0x120] sm:$0xf] }
 0x1e5   : > { %v739_v31 = vmax.f32 %v697_v28, 0.0  ;;  %v4862_v1 = vor.u32 %v5911_v20, %v4861_v43  ;;  %v4869_v17 = vld [vmem:[#allocation2 + $0x128] sm:$0xf]  ;;  %v6982_v29 = vadd.f32 %v1973_v0, %v1885_v10 }
 0x1e6   : > { %v1887_v55 = vpop.f32.mrf.mxu3  ;;  %v5912_v50 = vld [vmem:[#allocation2 + $0x130] sm:$0xf0] }
 0x1e7   : > { %v788_v38 = vrot.slane %v739_v31, 7  ;;  %v887_v61 = vrot.slane %v739_v31, 1  ;;  %v1046_v14 = vpack.c.bf16 %v739_v31, %v739_v31  ;;  %v1976_v23 = vpop.f32.mrf.mxu0  ;;  %1837 = vmatmul.bf16.gmra.mxu2 %v4862_v1  ;;  %v4870_v41 = vor.u32 %v5912_v50, %v4869_v17 }
 0x1e9   : > { %v805_v9 = vsel %vm792_vm1, %v772_v56, %v788_v38  ;;  %v821_v4 = vsel %vm792_vm1, %v788_v38, %v772_v56  ;;  %v904_v0 = vsel %vm891_vm3, %v871_v63, %v887_v61  ;;  %v920_v32 = vsel %vm891_vm3, %v887_v61, %v871_v63  ;;  %1078 = vst [vmem:[#allocation2 + $0x148] sm:$0xf] %v1046_v14  ;;  %v5913_v14 = vld [vmem:[#allocation2 + $0x13c] sm:$0xf] }
 0x1ea   : > { %v849_v34 = vsel %vm758_vm0, 0.0, %v821_v4  ;;  %v949_v28 = vsel %vm858_vm2, 0.0, %v920_v32  ;;  %v981_v10 = vpack.c.bf16 %v805_v9, %v805_v9  ;;  %v1109_v20 = vpack.c.bf16 %v904_v0, %v904_v0  ;;  %2015 = vmatmul.bf16.gmra.mxu0 %v4870_v41  ;;  %v699_v43 = vpop.f32.mrf.mxu1  ;;  %v1798_v12 = vpop.f32.mrf.mxu2 }
 0x1eb   : > { %v980_v31 = vpack.c.bf16 %v849_v34, %v849_v34  ;;  %v1110_v1 = vpack.c.bf16 %v949_v28, %v949_v28  ;;  %v700_v17 = vadd.f32 %v699_v43, %v6857_v49  ;;  %v1888_v24 = vadd.f32 %v1887_v55, %v1798_v12 }
 0x1ec   : > { %1014 = vst [vmem:[#allocation2 + $0x144] sm:$0xf] %v981_v10 }
 0x1ed   : > { %1013 = vst [vmem:[#allocation2 + $0x138] sm:$0xf] %v980_v31  ;;  %v740_v56 = vmax.f32 %v700_v17, 0.0  ;;  %2474 = vmatmul.bf16.gmra.mxu1 %v5078_v53  ;;  %v6997_v63 = vadd.f32 %v1976_v23, %v1888_v24  ;;  %v5824_v53 = vld [vmem:[#allocation2 + $0x98] sm:$0xf0] }
 0x1ee   : > { %1141 = vst [vmem:[#allocation2 + $0x140] sm:$0xf] %v1109_v20  ;;  %v1889_v50 = vpop.f32.mrf.mxu3  ;;  %v5089_v20 = vld [vmem:[#allocation2 + $0x90] sm:$0xf] }
 0x1ef   : > { %1142 = vst [vmem:[#allocation2 + $0x14c] sm:$0xf] %v1110_v1  ;;  %v1047_v38 = vpack.c.bf16 %v740_v56, %v740_v56  ;;  %v1978_v61 = vpop.f32.mrf.mxu0  ;;  %v773_v12 = vrot.slane %v740_v56, 7  ;;  %v872_v31 = vrot.slane %v740_v56, 1 }
 0x1f0   : > { %v4875_v41 = vld [vmem:[#allocation2 + $0x144] sm:$0xf0] }
 0x1f1   : > { %1079 = vst [vmem:[#allocation2 + $0x154] sm:$0xf] %v1047_v38  ;;  %v4878_v9 = vor.u32 %v5913_v14, %v4875_v41 }
 0x1f2   : > { %v701_v4 = vpop.f32.mrf.mxu1  ;;  %v1800_v0 = vpop.f32.mrf.mxu2 }
 0x1f3   : > { %v702_v49 = vadd.f32 %v701_v4, %v6865_v37  ;;  %v1890_v55 = vadd.f32 %v1889_v50, %v1800_v0  ;;  %1931 = vmatmul.bf16.gmra.mxu3 %v4878_v9  ;;  %v5914_v32 = vld [vmem:[#allocation2 + $0x140] sm:$0xf0]  ;;  %v5090_v50 = vor.u32 %v5824_v53, %v5089_v20 }
 0x1f4   : > { %v4873_v34 = vld [vmem:[#allocation2 + $0x138] sm:$0xf] }
 0x1f5   : > { %v741_v23 = vmax.f32 %v702_v49, 0.0  ;;  %v4874_v28 = vor.u32 %v5914_v32, %v4873_v34  ;;  %v4881_v10 = vld [vmem:[#allocation2 + $0x140] sm:$0xf]  ;;  %v7000_v43 = vadd.f32 %v1978_v61, %v1890_v55  ;;  %v5173_v35 = vld [vmem:[#allocation2 + $0x138] sm:$0xf] }
 0x1f6   : > { %v1892_v1 = vpop.f32.mrf.mxu3  ;;  %v5915_v17 = vld [vmem:[#allocation2 + $0x148] sm:$0xf0] }
 0x1f7   : > { %v789_v24 = vrot.slane %v741_v23, 7  ;;  %v888_v38 = vrot.slane %v741_v23, 1  ;;  %v1048_v14 = vpack.c.bf16 %v741_v23, %v741_v23  ;;  %v1981_v41 = vpop.f32.mrf.mxu0  ;;  %1842 = vmatmul.bf16.gmra.mxu2 %v4874_v28  ;;  %v4882_v37 = vor.u32 %v5915_v17, %v4881_v10 }
 0x1f9   : > { %v806_v9 = vsel %vm792_vm1, %v773_v12, %v789_v24  ;;  %v822_v4 = vsel %vm792_vm1, %v789_v24, %v773_v12  ;;  %v905_v61 = vsel %vm891_vm3, %v872_v31, %v888_v38  ;;  %v921_v56 = vsel %vm891_vm3, %v888_v38, %v872_v31  ;;  %1080 = vst [vmem:[#allocation2 + $0x160] sm:$0xf] %v1048_v14  ;;  %v5861_v14 = vld [vmem:[#allocation8 + $0x40] sm:$0xff] }
 0x1fa   : > { %v851_v0 = vsel %vm758_vm0, 0.0, %v822_v4  ;;  %v951_v49 = vsel %vm858_vm2, 0.0, %v921_v56  ;;  %v983_v55 = vpack.c.bf16 %v806_v9, %v806_v9  ;;  %v1111_v32 = vpack.c.bf16 %v905_v61, %v905_v61  ;;  %2020 = vmatmul.bf16.gmra.mxu0 %v4882_v37  ;;  %v704_v34 = vpop.f32.mrf.mxu1  ;;  %v1803_v53 = vpop.f32.mrf.mxu2  ;;  %v5869_v37 = vld [vmem:[#allocation8 + $0x80] sm:$0xff]  ;;  %2537 = vmatpush.bf16.msra.mxu2 %v5861_v14 }
 0x1fb   : > { %v982_v23 = vpack.c.bf16 %v851_v0, %v851_v0  ;;  %v1112_v28 = vpack.c.bf16 %v951_v49, %v951_v49  ;;  %v705_v10 = vadd.f32 %v704_v34, %v6885_v58  ;;  %v1893_v20 = vadd.f32 %v1892_v1, %v1803_v53  ;;  %v5916_v9 = vld [vmem:[#allocation2 + $0x154] sm:$0xf]  ;;  %2626 = vmatpush.bf16.msra.mxu3 %v5869_v37 }
 0x1fc   : > { %1016 = vst [vmem:[#allocation2 + $0x15c] sm:$0xf] %v983_v55  ;;  %v5997_v61 = vld [vmem:[#allocation8 + $0x180] sm:$0xff] }
 0x1fd   : > { %1015 = vst [vmem:[#allocation2 + $0x150] sm:$0xf] %v982_v23  ;;  %v742_v12 = vmax.f32 %v705_v10, 0.0  ;;  %2479 = vmatmul.bf16.gmra.mxu1 %v5090_v50  ;;  %v7015_v31 = vadd.f32 %v1981_v41, %v1893_v20  ;;  %3229 = vmatpush.bf16.msra.mxu0 %v5997_v61  ;;  %v5827_v55 = vld [vmem:[#allocation2 + $0xb0] sm:$0xf0] }
 0x1fe   : > { %1143 = vst [vmem:[#allocation2 + $0x158] sm:$0xf] %v1111_v32  ;;  %v1894_v17 = vpop.f32.mrf.mxu3  ;;  %v5101_v23 = vld [vmem:[#allocation2 + $0xa8] sm:$0xf] }
 0x1ff   : > { %1144 = vst [vmem:[#allocation2 + $0x164] sm:$0xf] %v1112_v28  ;;  %v1049_v24 = vpack.c.bf16 %v742_v12, %v742_v12  ;;  %v1983_v38 = vpop.f32.mrf.mxu0  ;;  %v774_v10 = vrot.slane %v742_v12, 7  ;;  %v873_v20 = vrot.slane %v742_v12, 1 }
 0x200   : > { %v4887_v4 = vld [vmem:[#allocation2 + $0x15c] sm:$0xf0] }
 0x201   : > { %1081 = vst [vmem:[#allocation2 + $0x16c] sm:$0xf] %v1049_v24  ;;  %v4890_v56 = vor.u32 %v5916_v9, %v4887_v4 }
 0x202   : > { %v706_v58 = vpop.f32.mrf.mxu1  ;;  %v1805_v1 = vpop.f32.mrf.mxu2 }
 0x203   : > { %v707_v41 = vadd.f32 %v706_v58, %v6902_v7  ;;  %v1895_v50 = vadd.f32 %v1894_v17, %v1805_v1  ;;  %1936 = vmatmul.bf16.gmra.mxu3 %v4890_v56  ;;  %v5917_v0 = vld [vmem:[#allocation2 + $0x158] sm:$0xf0]  ;;  %v5102_v17 = vor.u32 %v5827_v55, %v5101_v23 }
 0x204   : > { %v4885_v49 = vld [vmem:[#allocation2 + $0x150] sm:$0xf] }
 0x205   : > { %v743_v32 = vmax.f32 %v707_v41, 0.0  ;;  %v4886_v34 = vor.u32 %v5917_v0, %v4885_v49  ;;  %v4893_v53 = vld [vmem:[#allocation2 + $0x158] sm:$0xf]  ;;  %v7018_v28 = vadd.f32 %v1983_v38, %v1895_v50 }
 0x206   : > { %v1897_v24 = vpop.f32.mrf.mxu3  ;;  %v5918_v14 = vld [vmem:[#allocation2 + $0x160] sm:$0xf0] }
 0x207   : > { %v790_v37 = vrot.slane %v743_v32, 7  ;;  %v889_v9 = vrot.slane %v743_v32, 1  ;;  %v1050_v4 = vpack.c.bf16 %v743_v32, %v743_v32  ;;  %v1986_v61 = vpop.f32.mrf.mxu0  ;;  %1847 = vmatmul.bf16.gmra.mxu2 %v4886_v34  ;;  %v4894_v7 = vor.u32 %v5918_v14, %v4893_v53 }
 0x209   : > { %v807_v56 = vsel %vm792_vm1, %v774_v10, %v790_v37  ;;  %v823_v58 = vsel %vm792_vm1, %v790_v37, %v774_v10  ;;  %v906_v38 = vsel %vm891_vm3, %v873_v20, %v889_v9  ;;  %v922_v12 = vsel %vm891_vm3, %v889_v9, %v873_v20  ;;  %1082 = vst [vmem:[#allocation2 + $0x178] sm:$0xf] %v1050_v4  ;;  %v5919_v4 = vld [vmem:[#allocation2 + $0x16c] sm:$0xf] }
 0x20a   : > { %v853_v1 = vsel %vm758_vm0, 0.0, %v823_v58  ;;  %v953_v41 = vsel %vm858_vm2, 0.0, %v922_v12  ;;  %v985_v50 = vpack.c.bf16 %v807_v56, %v807_v56  ;;  %v1113_v0 = vpack.c.bf16 %v906_v38, %v906_v38  ;;  %2025 = vmatmul.bf16.gmra.mxu0 %v4894_v7  ;;  %v709_v49 = vpop.f32.mrf.mxu1  ;;  %v1808_v55 = vpop.f32.mrf.mxu2 }
 0x20b   : > { %v984_v32 = vpack.c.bf16 %v853_v1, %v853_v1  ;;  %v1114_v34 = vpack.c.bf16 %v953_v41, %v953_v41  ;;  %v710_v53 = vadd.f32 %v709_v49, %v6908_v47  ;;  %v1898_v23 = vadd.f32 %v1897_v24, %v1808_v55 }
 0x20c   : > { %1018 = vst [vmem:[#allocation2 + $0x174] sm:$0xf] %v985_v50 }
 0x20d   : > { %1017 = vst [vmem:[#allocation2 + $0x168] sm:$0xf] %v984_v32  ;;  %v744_v10 = vmax.f32 %v710_v53, 0.0  ;;  %2484 = vmatmul.bf16.gmra.mxu1 %v5102_v17  ;;  %v7033_v20 = vadd.f32 %v1986_v61, %v1898_v23  ;;  %v5830_v17 = vld [vmem:[#allocation2 + $0xc8] sm:$0xf0] }
 0x20e   : > { %1145 = vst [vmem:[#allocation2 + $0x170] sm:$0xf] %v1113_v0  ;;  %v1899_v14 = vpop.f32.mrf.mxu3  ;;  %v5113_v0 = vld [vmem:[#allocation2 + $0xc0] sm:$0xf] }
 0x20f   : > { %1146 = vst [vmem:[#allocation2 + $0x17c] sm:$0xf] %v1114_v34  ;;  %v1051_v37 = vpack.c.bf16 %v744_v10, %v744_v10  ;;  %v1988_v9 = vpop.f32.mrf.mxu0  ;;  %v775_v55 = vrot.slane %v744_v10, 7  ;;  %v874_v32 = vrot.slane %v744_v10, 1 }
 0x210   : > { %v4899_v7 = vld [vmem:[#allocation2 + $0x174] sm:$0xf0] }
 0x211   : > { %1083 = vst [vmem:[#allocation2 + $0x184] sm:$0xf] %v1051_v37  ;;  %v4902_v56 = vor.u32 %v5919_v4, %v4899_v7 }
 0x212   : > { %v711_v58 = vpop.f32.mrf.mxu1  ;;  %v1810_v38 = vpop.f32.mrf.mxu2 }
 0x213   : > { %v712_v47 = vadd.f32 %v711_v58, %v6925_v6  ;;  %v1900_v24 = vadd.f32 %v1899_v14, %v1810_v38  ;;  %1941 = vmatmul.bf16.gmra.mxu3 %v4902_v56  ;;  %v5920_v12 = vld [vmem:[#allocation2 + $0x170] sm:$0xf0]  ;;  %v5114_v14 = vor.u32 %v5830_v17, %v5113_v0 }
 0x214   : > { %v4897_v1 = vld [vmem:[#allocation2 + $0x168] sm:$0xf] }
 0x215   : > { %v745_v61 = vmax.f32 %v712_v47, 0.0  ;;  %v4898_v41 = vor.u32 %v5920_v12, %v4897_v1  ;;  %v4905_v50 = vld [vmem:[#allocation2 + $0x170] sm:$0xf]  ;;  %v7036_v49 = vadd.f32 %v1988_v9, %v1900_v24  ;;  %v5197_v3 = vld [vmem:[#allocation2 + $0x168] sm:$0xf] }
 0x216   : > { %v1902_v34 = vpop.f32.mrf.mxu3  ;;  %v5921_v53 = vld [vmem:[#allocation2 + $0x178] sm:$0xf0] }
 0x217   : > { %v791_v23 = vrot.slane %v745_v61, 7  ;;  %v890_v37 = vrot.slane %v745_v61, 1  ;;  %v1052_v4 = vpack.c.bf16 %v745_v61, %v745_v61  ;;  %v1991_v7 = vpop.f32.mrf.mxu0  ;;  %1852 = vmatmul.bf16.gmra.mxu2 %v4898_v41  ;;  %v4906_v6 = vor.u32 %v5921_v53, %v4905_v50  ;;  %v6020_v61 = vld [vmem:[#allocation8 + $0x238] sm:$0xff]  ;;  %v5649_v41 = vld [vmem:[#allocation11 + $0x70] sm:$0xf] }
 0x218   : > { %3400 = vmatpush.bf16.msrb.mxu2 %v6020_v61 }
 0x219   : > { %v808_v56 = vsel %vm792_vm1, %v775_v55, %v791_v23  ;;  %v824_v58 = vsel %vm792_vm1, %v791_v23, %v775_v55  ;;  %v907_v9 = vsel %vm891_vm3, %v874_v32, %v890_v37  ;;  %v923_v10 = vsel %vm891_vm3, %v890_v37, %v874_v32  ;;  %1084 = vst [vmem:[#allocation2 + $0x190] sm:$0xf] %v1052_v4  ;;  %v6052_v32 = vld [vmem:[#allocation11 + $0x74] sm:$0xf0] }
 0x21a   : > { %v855_v38 = vsel %vm758_vm0, 0.0, %v824_v58  ;;  %v955_v47 = vsel %vm858_vm2, 0.0, %v923_v10  ;;  %v987_v24 = vpack.c.bf16 %v808_v56, %v808_v56  ;;  %v1115_v12 = vpack.c.bf16 %v907_v9, %v907_v9  ;;  %2030 = vmatmul.bf16.gmra.mxu0 %v4906_v6  ;;  %v1813_v1 = vpop.f32.mrf.mxu2  ;;  %v2450_v17 = vpop.f32.mrf.mxu1  ;;  %v6012_v4 = vld [vmem:[#allocation8 + $0x1f8] sm:$0xff]  ;;  %v5713_v6 = vld [vmem:[#allocation11 + $0xf0] sm:$0xf] }
 0x21b   : > { %v986_v50 = vpack.c.bf16 %v855_v38, %v855_v38  ;;  %v1116_v0 = vpack.c.bf16 %v955_v47, %v955_v47  ;;  %v1903_v55 = vadd.f32 %v1902_v34, %v1813_v1  ;;  %v7051_v53 = vadd.f32 %v2450_v17, %v6943_v25  ;;  %v5922_v56 = vld [vmem:[#allocation2 + $0x184] sm:$0xf]  ;;  %v6068_v58 = vld [vmem:[#allocation11 + $0xf4] sm:$0xf0]  ;;  %3311 = vmatpush.bf16.msrb.mxu1 %v6012_v4 }
 0x21c   : > { %1020 = vst [vmem:[#allocation2 + $0x18c] sm:$0xf] %v987_v24  ;;  %v5650_v26 = vor.u32 %v6052_v32, %v5649_v41  ;;  %v5714_v9 = vor.u32 %v6068_v58, %v5713_v6  ;;  %v5833_v32 = vld [vmem:[#allocation2 + $0xe0] sm:$0xf0] }
 0x21d   : > { %1019 = vst [vmem:[#allocation2 + $0x180] sm:$0xf] %v986_v50  ;;  %2489 = vmatmul.bf16.gmra.mxu1 %v5114_v14  ;;  %v7053_v44 = vadd.f32 %v1991_v7, %v1903_v55  ;;  %v5125_v55 = vld [vmem:[#allocation2 + $0xd8] sm:$0xf] }
 0x21e   : > { %1147 = vst [vmem:[#allocation2 + $0x188] sm:$0xf] %v1115_v12  ;;  %v1904_v23 = vpop.f32.mrf.mxu3  ;;  %3777 = vmatpush.bf16.msrb.mxu3 %v5650_v26  ;;  %3866 = vmatpush.bf16.msrb.mxu0 %v5714_v9  ;;  %v5126_v6 = vor.u32 %v5833_v32, %v5125_v55  ;;  %v5137_v32 = vld [vmem:[#allocation2 + $0xf0] sm:$0xf] }
 0x21f   : > { %1148 = vst [vmem:[#allocation2 + $0x194] sm:$0xf] %v1116_v0  ;;  %v1993_v37 = vpop.f32.mrf.mxu0 }
 0x220   : > { %v4911_v34 = vld [vmem:[#allocation2 + $0x18c] sm:$0xf0] }
 0x221   : > { %v4914_v25 = vor.u32 %v5922_v56, %v4911_v34  ;;  %v5025_v56 = vld [vmem:[#allocation2 + $0x8] sm:$0xf]  ;;  %v5807_v34 = vld [vmem:[#allocation2 + $0x10] sm:$0xf0] }
 0x222   : > { %v1815_v10 = vpop.f32.mrf.mxu2  ;;  %v2452_v38 = vpop.f32.mrf.mxu1  ;;  %v5026_v9 = vor.u32 %v5807_v34, %v5025_v56  ;;  %v5641_v56 = vld [vmem:[#allocation11 + $0x60] sm:$0xf]  ;;  %v6050_v34 = vld [vmem:[#allocation11 + $0x64] sm:$0xf0] }
 0x223   : > { %v1905_v47 = vadd.f32 %v1904_v23, %v1815_v10  ;;  %v7056_v14 = vadd.f32 %v2452_v38, %v6946_v13  ;;  %1946 = vmatmul.bf16.gmra.mxu3 %v4914_v25  ;;  %v5923_v7 = vld [vmem:[#allocation2 + $0x188] sm:$0xf0]  ;;  %v5805_v10 = vld [vmem:[#allocation2 + $0x4] sm:$0xf]  ;;  %v5019_v38 = vld [vmem:[#allocation2 + $0xc] sm:$0xf0] }
 0x224   : > { %v4909_v24 = vld [vmem:[#allocation2 + $0x180] sm:$0xf] }
 0x225   : > { %v4910_v12 = vor.u32 %v5923_v7, %v4909_v24  ;;  %v4917_v1 = vld [vmem:[#allocation2 + $0x188] sm:$0xf]  ;;  %v7058_v17 = vadd.f32 %v1993_v37, %v1905_v47 }
 0x226   : > { %v1907_v61 = vpop.f32.mrf.mxu3  ;;  %v5924_v41 = vld [vmem:[#allocation2 + $0x190] sm:$0xf0] }
 0x227   : > { %v1996_v50 = vpop.f32.mrf.mxu0  ;;  %1857 = vmatmul.bf16.gmra.mxu2 %v4910_v12  ;;  %v4918_v0 = vor.u32 %v5924_v41, %v4917_v1  ;;  %v5305_v1 = vld [vmem:[#allocation2 + $0x30] sm:$0xf] }
 0x22a   : > { %2035 = vmatmul.bf16.gmra.mxu0 %v4918_v0  ;;  %v1818_v26 = vpop.f32.mrf.mxu2  ;;  %v2455_v23 = vpop.f32.mrf.mxu1 }
 0x22b   : > { %v1908_v13 = vadd.f32 %v1907_v61, %v1818_v26  ;;  %v7061_v4 = vadd.f32 %v2455_v23, %v6961_v8  ;;  %v5022_v8 = vor.u32 %v5805_v10, %v5019_v38  ;;  %v5950_v61 = vld [vmem:[#allocation2 + $0x38] sm:$0xf0]  ;;  %v5642_v10 = vor.u32 %v6050_v34, %v5641_v56  ;;  %v5953_v56 = vld [vmem:[#allocation2 + $0x50] sm:$0xf0] }
 0x22c   : > { %v5306_v55 = vor.u32 %v5950_v61, %v5305_v1  ;;  %v5836_v26 = vld [vmem:[#allocation2 + $0xf8] sm:$0xf0]  ;;  %v5705_v1 = vld [vmem:[#allocation11 + $0xe0] sm:$0xf]  ;;  %v6066_v61 = vld [vmem:[#allocation11 + $0xe4] sm:$0xf0] }
 0x22d   : > { %2494 = vmatmul.bf16.gmra.mxu1 %v5126_v6  ;;  %v7063_v37 = vadd.f32 %v1996_v50, %v1908_v13  ;;  %v6019_v6 = vld [vmem:[#allocation8 + $0x230] sm:$0xff]  ;;  %3778 = vmatpush.bf16.msrb.mxu3 %v5642_v10 }
 0x22e   : > { %v1909_v58 = vpop.f32.mrf.mxu3  ;;  %3401 = vmatpush.bf16.msrb.mxu2 %v6019_v6  ;;  %v5317_v6 = vld [vmem:[#allocation2 + $0x48] sm:$0xf] }
 0x22f   : > { %v1998_v25 = vpop.f32.mrf.mxu0  ;;  %v5318_v10 = vor.u32 %v5953_v56, %v5317_v6 }
 0x232   : > { %v1820_v47 = vpop.f32.mrf.mxu2  ;;  %v2457_v7 = vpop.f32.mrf.mxu1 }
 0x233   : > { %v1910_v24 = vadd.f32 %v1909_v58, %v1820_v47  ;;  %v7066_v12 = vadd.f32 %v2457_v7, %v6964_v59  ;;  %2627 = vmatmul.bf16.vlgmr.msra.gmra.mxu3 %v5026_v9  ;;  %v5138_v9 = vor.u32 %v5836_v26, %v5137_v32  ;;  %v5037_v47 = vld [vmem:[#allocation2 + $0x20] sm:$0xf]  ;;  %v5810_v7 = vld [vmem:[#allocation2 + $0x28] sm:$0xf0] }
 0x234   : > { %v5038_v5 = vor.u32 %v5810_v7, %v5037_v47  ;;  %v5149_v47 = vld [vmem:[#allocation2 + $0x108] sm:$0xf]  ;;  %v5839_v7 = vld [vmem:[#allocation2 + $0x110] sm:$0xf0] }
 0x235   : > { %v7068_v41 = vadd.f32 %v1998_v25, %v1910_v24 }
 0x236   : > { %v1912_v0 = vpop.f32.mrf.mxu3 }
 0x237   : > { %v2001_v50 = vpop.f32.mrf.mxu0  ;;  %2538 = vmatmul.bf16.vlgmr.msra.gmra.mxu2 %v5022_v8  ;;  %v6011_v8 = vld [vmem:[#allocation8 + $0x1f0] sm:$0xff] }
 0x238   : > { %3312 = vmatpush.bf16.msrb.mxu1 %v6011_v8 }
 0x23a   : > { %3230 = vmatmul.bf16.vlgmr.msra.gmra.mxu0 %v5306_v55  ;;  %v1823_v23 = vpop.f32.mrf.mxu2  ;;  %v2460_v13 = vpop.f32.mrf.mxu1  ;;  %v5706_v55 = vor.u32 %v6066_v61, %v5705_v1 }
 0x23b   : > { %v1913_v59 = vadd.f32 %v1912_v0, %v1823_v23  ;;  %v7071_v58 = vadd.f32 %v2460_v13, %v6979_v52  ;;  %v5031_v23 = vld [vmem:[#allocation2 + $0x24] sm:$0xf0] }
 0x23c   : > { %3867 = vmatpush.bf16.msrb.mxu0 %v5706_v55 }
 0x23d   : > { %2499 = vmatmul.bf16.gmra.mxu1 %v5138_v9  ;;  %v7073_v25 = vadd.f32 %v2001_v50, %v1913_v59  ;;  %v5808_v50 = vld [vmem:[#allocation2 + $0x1c] sm:$0xf] }
 0x23e   : > { %v1914_v38 = vpop.f32.mrf.mxu3  ;;  %v5034_v13 = vor.u32 %v5808_v50, %v5031_v23 }
 0x23f   : > { %v2003_v24 = vpop.f32.mrf.mxu0 }
 0x240   : > { %3868 = vmatpush.bf16.msrb.mxu0 %v5698_v46 }
 0x242   : > { %v1825_v0 = vpop.f32.mrf.mxu2  ;;  %v2462_v52 = vpop.f32.mrf.mxu1 }
 0x243   : > { %v1915_v32 = vadd.f32 %v1914_v38, %v1825_v0  ;;  %v7076_v26 = vadd.f32 %v2462_v52, %v6982_v29  ;;  %2632 = vmatmul.bf16.gmra.mxu3 %v5038_v5  ;;  %v5150_v5 = vor.u32 %v5839_v7, %v5149_v47  ;;  %v5813_v0 = vld [vmem:[#allocation2 + $0x40] sm:$0xf0]  ;;  %v5956_v47 = vld [vmem:[#allocation2 + $0x68] sm:$0xf0] }
 0x244   : > { %3869 = vmatpush.bf16.msrb.mxu0 %v5690_v2 }
 0x245   : > { %v7078_v34 = vadd.f32 %v2003_v24, %v1915_v32  ;;  %v5049_v24 = vld [vmem:[#allocation2 + $0x38] sm:$0xf] }
 0x246   : > { %v1917_v59 = vpop.f32.mrf.mxu3  ;;  %v5050_v23 = vor.u32 %v5813_v0, %v5049_v24 }
 0x247   : > { %v2006_v9 = vpop.f32.mrf.mxu0  ;;  %2543 = vmatmul.bf16.gmra.mxu2 %v5034_v13  ;;  %v5043_v13 = vld [vmem:[#allocation2 + $0x3c] sm:$0xf0] }
 0x24a   : > { %3235 = vmatmul.bf16.gmra.mxu0 %v5318_v10  ;;  %v1828_v8 = vpop.f32.mrf.mxu2  ;;  %v2465_v1 = vpop.f32.mrf.mxu1  ;;  %v5329_v10 = vld [vmem:[#allocation2 + $0x60] sm:$0xf] }
 0x24b   : > { %v1918_v38 = vadd.f32 %v1917_v59, %v1828_v8  ;;  %v7081_v29 = vadd.f32 %v2465_v1, %v6997_v63  ;;  %v5811_v59 = vld [vmem:[#allocation2 + $0x34] sm:$0xf]  ;;  %v5330_v1 = vor.u32 %v5956_v47, %v5329_v10  ;;  %v5816_v10 = vld [vmem:[#allocation2 + $0x58] sm:$0xf0] }
 0x24c   : > { %v5046_v63 = vor.u32 %v5811_v59, %v5043_v13 }
 0x24d   : > { %2504 = vmatmul.bf16.gmra.mxu1 %v5150_v5  ;;  %v7083_v61 = vadd.f32 %v2006_v9, %v1918_v38  ;;  %v5161_v38 = vld [vmem:[#allocation2 + $0x120] sm:$0xf]  ;;  %v5842_v5 = vld [vmem:[#allocation2 + $0x128] sm:$0xf0] }
 0x24e   : > { %v1919_v55 = vpop.f32.mrf.mxu3  ;;  %v5162_v13 = vor.u32 %v5842_v5, %v5161_v38 }
 0x24f   : > { %v2008_v52 = vpop.f32.mrf.mxu0 }
 0x252   : > { %v1830_v32 = vpop.f32.mrf.mxu2  ;;  %v2467_v50 = vpop.f32.mrf.mxu1 }
 0x253   : > { %v1920_v6 = vadd.f32 %v1919_v55, %v1830_v32  ;;  %v7086_v56 = vadd.f32 %v2467_v50, %v7000_v43  ;;  %2637 = vmatmul.bf16.gmra.mxu3 %v5050_v23  ;;  %v6018_v55 = vld [vmem:[#allocation8 + $0x228] sm:$0xff]  ;;  %v5633_v32 = vld [vmem:[#allocation11 + $0x50] sm:$0xf]  ;;  %v6048_v43 = vld [vmem:[#allocation11 + $0x54] sm:$0xf0] }
 0x254   : > { %v5634_v59 = vor.u32 %v6048_v43, %v5633_v32  ;;  %3402 = vmatpush.bf16.msrb.mxu2 %v6018_v55  ;;  %v5341_v55 = vld [vmem:[#allocation2 + $0x78] sm:$0xf]  ;;  %v5959_v32 = vld [vmem:[#allocation2 + $0x80] sm:$0xf0] }
 0x255   : > { %v7088_v7 = vadd.f32 %v2008_v52, %v1920_v6  ;;  %v5342_v57 = vor.u32 %v5959_v32, %v5341_v55  ;;  %v5067_v32 = vld [vmem:[#allocation2 + $0x6c] sm:$0xf0] }
 0x256   : > { %v1922_v9 = vpop.f32.mrf.mxu3  ;;  %3779 = vmatpush.bf16.msrb.mxu3 %v5634_v59  ;;  %v5845_v59 = vld [vmem:[#allocation2 + $0x140] sm:$0xf0] }
 0x257   : > { %v2011_v8 = vpop.f32.mrf.mxu0  ;;  %2548 = vmatmul.bf16.gmra.mxu2 %v5046_v63  ;;  %v5061_v63 = vld [vmem:[#allocation2 + $0x50] sm:$0xf] }
 0x258   : > { %v5062_v15 = vor.u32 %v5816_v10, %v5061_v63  ;;  %v6009_v10 = vld [vmem:[#allocation8 + $0x1e0] sm:$0xff] }
 0x25a   : > { %3240 = vmatmul.bf16.gmra.mxu0 %v5330_v1  ;;  %v1833_v24 = vpop.f32.mrf.mxu2  ;;  %v2470_v0 = vpop.f32.mrf.mxu1  ;;  %v6010_v1 = vld [vmem:[#allocation8 + $0x1e8] sm:$0xff] }
 0x25b   : > { %v1923_v50 = vadd.f32 %v1922_v9, %v1833_v24  ;;  %v7091_v23 = vadd.f32 %v2470_v0, %v7015_v31  ;;  %3313 = vmatpush.bf16.msrb.mxu1 %v6010_v1  ;;  %v5055_v24 = vld [vmem:[#allocation2 + $0x54] sm:$0xf0] }
 0x25d   : > { %2509 = vmatmul.bf16.gmra.mxu1 %v5162_v13  ;;  %v7093_v52 = vadd.f32 %v2011_v8, %v1923_v50  ;;  %v5814_v8 = vld [vmem:[#allocation2 + $0x4c] sm:$0xf] }
 0x25e   : > { %v1924_v6 = vpop.f32.mrf.mxu3  ;;  %v5058_v0 = vor.u32 %v5814_v8, %v5055_v24 }
 0x25f   : > { %v2013_v47 = vpop.f32.mrf.mxu0  ;;  %3314 = vmatpush.bf16.msrb.mxu1 %v6009_v10  ;;  %v6006_v10 = vld [vmem:[#allocation8 + $0x1c8] sm:$0xff] }
 0x262   : > { %v1835_v9 = vpop.f32.mrf.mxu2  ;;  %v2472_v31 = vpop.f32.mrf.mxu1 }
 0x263   : > { %v1925_v38 = vadd.f32 %v1924_v6, %v1835_v9  ;;  %v7096_v5 = vadd.f32 %v2472_v31, %v7018_v28  ;;  %2642 = vmatmul.bf16.gmra.mxu3 %v5062_v15  ;;  %v5174_v15 = vor.u32 %v5845_v59, %v5173_v35  ;;  %v5073_v9 = vld [vmem:[#allocation2 + $0x68] sm:$0xf]  ;;  %v5819_v31 = vld [vmem:[#allocation2 + $0x70] sm:$0xf0]  ;;  %v5817_v35 = vld [vmem:[#allocation2 + $0x64] sm:$0xf] }
 0x264   : > { %v5074_v8 = vor.u32 %v5819_v31, %v5073_v9  ;;  %v5353_v59 = vld [vmem:[#allocation2 + $0x90] sm:$0xf] }
 0x265   : > { %v7098_v43 = vadd.f32 %v2013_v47, %v1925_v38  ;;  %v6008_v38 = vld [vmem:[#allocation8 + $0x1d8] sm:$0xff]  ;;  %v5185_v31 = vld [vmem:[#allocation2 + $0x150] sm:$0xf] }
 0x266   : > { %v1927_v50 = vpop.f32.mrf.mxu3  ;;  %3315 = vmatpush.bf16.msrb.mxu1 %v6008_v38  ;;  %v5848_v38 = vld [vmem:[#allocation2 + $0x158] sm:$0xf0] }
 0x267   : > { %v2016_v13 = vpop.f32.mrf.mxu0  ;;  %2553 = vmatmul.bf16.gmra.mxu2 %v5058_v0 }
 0x26a   : > { %3245 = vmatmul.bf16.gmra.mxu0 %v5342_v57  ;;  %v1838_v63 = vpop.f32.mrf.mxu2  ;;  %v2475_v46 = vpop.f32.mrf.mxu1  ;;  %v6007_v57 = vld [vmem:[#allocation8 + $0x1d0] sm:$0xff] }
 0x26b   : > { %v1928_v6 = vadd.f32 %v1927_v50, %v1838_v63  ;;  %v7101_v28 = vadd.f32 %v2475_v46, %v7033_v20  ;;  %v5962_v63 = vld [vmem:[#allocation2 + $0x98] sm:$0xf0]  ;;  %3316 = vmatpush.bf16.msrb.mxu1 %v6007_v57  ;;  %v6005_v57 = vld [vmem:[#allocation8 + $0x1c0] sm:$0xff] }
 0x26c   : > { %v5354_v9 = vor.u32 %v5962_v63, %v5353_v59  ;;  %v5085_v63 = vld [vmem:[#allocation2 + $0x80] sm:$0xf] }
 0x26d   : > { %2514 = vmatmul.bf16.gmra.mxu1 %v5174_v15  ;;  %v7103_v1 = vadd.f32 %v2016_v13, %v1928_v6  ;;  %v5070_v13 = vor.u32 %v5817_v35, %v5067_v32 }
 0x26e   : > { %v1929_v47 = vpop.f32.mrf.mxu3 }
 0x26f   : > { %v2018_v24 = vpop.f32.mrf.mxu0  ;;  %3317 = vmatpush.bf16.msrb.mxu1 %v6006_v10 }
 0x272   : > { %v1840_v0 = vpop.f32.mrf.mxu2  ;;  %v2477_v55 = vpop.f32.mrf.mxu1 }
 0x273   : > { %v1930_v50 = vadd.f32 %v1929_v47, %v1840_v0  ;;  %v7106_v20 = vadd.f32 %v2477_v55, %v7036_v49  ;;  %2647 = vmatmul.bf16.gmra.mxu3 %v5074_v8  ;;  %v6017_v8 = vld [vmem:[#allocation8 + $0x220] sm:$0xff]  ;;  %v6046_v55 = vld [vmem:[#allocation11 + $0x44] sm:$0xf0]  ;;  %3318 = vmatpush.bf16.msrb.mxu1 %v6005_v57 }
 0x274   : > { %v5625_v0 = vld [vmem:[#allocation11 + $0x40] sm:$0xf]  ;;  %3403 = vmatpush.bf16.msrb.mxu2 %v6017_v8  ;;  %v5851_v57 = vld [vmem:[#allocation2 + $0x170] sm:$0xf0] }
 0x275   : > { %v7108_v46 = vadd.f32 %v2018_v24, %v1930_v50  ;;  %v5186_v24 = vor.u32 %v5848_v38, %v5185_v31  ;;  %v5626_v50 = vor.u32 %v6046_v55, %v5625_v0  ;;  %v5365_v0 = vld [vmem:[#allocation2 + $0xa8] sm:$0xf]  ;;  %v5965_v55 = vld [vmem:[#allocation2 + $0xb0] sm:$0xf0] }
 0x276   : > { %v1932_v6 = vpop.f32.mrf.mxu3  ;;  %v5366_v21 = vor.u32 %v5965_v55, %v5365_v0  ;;  %v5091_v0 = vld [vmem:[#allocation2 + $0x9c] sm:$0xf0] }
 0x277   : > { %v2021_v15 = vpop.f32.mrf.mxu0  ;;  %2558 = vmatmul.bf16.gmra.mxu2 %v5070_v13  ;;  %3780 = vmatpush.bf16.msrb.mxu3 %v5626_v50 }
 0x27a   : > { %3250 = vmatmul.bf16.gmra.mxu0 %v5354_v9  ;;  %v1843_v47 = vpop.f32.mrf.mxu2  ;;  %v2480_v49 = vpop.f32.mrf.mxu1  ;;  %v5822_v9 = vld [vmem:[#allocation2 + $0x88] sm:$0xf0] }
 0x27b   : > { %v1933_v32 = vadd.f32 %v1932_v6, %v1843_v47  ;;  %v7111_v35 = vadd.f32 %v2480_v49, %v7053_v44  ;;  %v5086_v6 = vor.u32 %v5822_v9, %v5085_v63  ;;  %v5079_v49 = vld [vmem:[#allocation2 + $0x84] sm:$0xf0]  ;;  %v5198_v9 = vor.u32 %v5851_v57, %v5197_v3  ;;  %v5968_v3 = vld [vmem:[#allocation2 + $0xc8] sm:$0xf0] }
 0x27d   : > { %2519 = vmatmul.bf16.gmra.mxu1 %v5186_v24  ;;  %v7113_v13 = vadd.f32 %v2021_v15, %v1933_v32  ;;  %v5820_v15 = vld [vmem:[#allocation2 + $0x7c] sm:$0xf] }
 0x27e   : > { %v1934_v59 = vpop.f32.mrf.mxu3  ;;  %v5082_v8 = vor.u32 %v5820_v15, %v5079_v49 }
 0x27f   : > { %v2023_v10 = vpop.f32.mrf.mxu0 }
 0x282   : > { %v1845_v47 = vpop.f32.mrf.mxu2  ;;  %v2482_v44 = vpop.f32.mrf.mxu1 }
 0x283   : > { %v1935_v31 = vadd.f32 %v1934_v59, %v1845_v47  ;;  %v7116_v38 = vadd.f32 %v2482_v44, %v7058_v17  ;;  %2652 = vmatmul.bf16.gmra.mxu3 %v5086_v6  ;;  %v5825_v44 = vld [vmem:[#allocation2 + $0xa0] sm:$0xf0] }
 0x285   : > { %v7118_v32 = vadd.f32 %v2023_v10, %v1935_v31  ;;  %v5097_v10 = vld [vmem:[#allocation2 + $0x98] sm:$0xf] }
 0x286   : > { %v1937_v24 = vpop.f32.mrf.mxu3  ;;  %v5098_v31 = vor.u32 %v5825_v44, %v5097_v10  ;;  %v5949_v10 = vld [vmem:[#allocation2 + $0x34] sm:$0xf] }
 0x287   : > { %v2026_v50 = vpop.f32.mrf.mxu0  ;;  %2563 = vmatmul.bf16.gmra.mxu2 %v5082_v8 }
 0x28a   : > { %3255 = vmatmul.bf16.gmra.mxu0 %v5366_v21  ;;  %v1848_v63 = vpop.f32.mrf.mxu2  ;;  %v2485_v2 = vpop.f32.mrf.mxu1 }
 0x28b   : > { %v1938_v59 = vadd.f32 %v1937_v24, %v1848_v63  ;;  %v7121_v17 = vadd.f32 %v2485_v2, %v7063_v37  ;;  %v5823_v24 = vld [vmem:[#allocation2 + $0x94] sm:$0xf]  ;;  %v5377_v63 = vld [vmem:[#allocation2 + $0xc0] sm:$0xf] }
 0x28c   : > { %v5094_v37 = vor.u32 %v5823_v24, %v5091_v0 }
 0x28d   : > { %2524 = vmatmul.bf16.gmra.mxu1 %v5198_v9  ;;  %v7123_v6 = vadd.f32 %v2026_v50, %v1938_v59  ;;  %v5378_v59 = vor.u32 %v5968_v3, %v5377_v63  ;;  %v5307_v9 = vld [vmem:[#allocation2 + $0x3c] sm:$0xf0]  ;;  %v5828_v63 = vld [vmem:[#allocation2 + $0xb8] sm:$0xf0] }
 0x28e   : > { %v1939_v47 = vpop.f32.mrf.mxu3  ;;  %v5310_v0 = vor.u32 %v5949_v10, %v5307_v9  ;;  %v5826_v9 = vld [vmem:[#allocation2 + $0xac] sm:$0xf]  ;;  %v5389_v10 = vld [vmem:[#allocation2 + $0xd8] sm:$0xf] }
 0x28f   : > { %v2028_v49 = vpop.f32.mrf.mxu0 }
 0x292   : > { %v1850_v15 = vpop.f32.mrf.mxu2  ;;  %v2487_v8 = vpop.f32.mrf.mxu1 }
 0x293   : > { %v1940_v55 = vadd.f32 %v1939_v47, %v1850_v15  ;;  %v7126_v21 = vadd.f32 %v2487_v8, %v7068_v41  ;;  %2657 = vmatmul.bf16.gmra.mxu3 %v5098_v31  ;;  %v6016_v47 = vld [vmem:[#allocation8 + $0x218] sm:$0xff]  ;;  %v5617_v15 = vld [vmem:[#allocation11 + $0x30] sm:$0xf] }
 0x294   : > { %v6044_v41 = vld [vmem:[#allocation11 + $0x34] sm:$0xf0]  ;;  %3404 = vmatpush.bf16.msrb.mxu2 %v6016_v47  ;;  %v5971_v47 = vld [vmem:[#allocation2 + $0xe0] sm:$0xf0] }
 0x295   : > { %v7128_v57 = vadd.f32 %v2028_v49, %v1940_v55  ;;  %v5618_v24 = vor.u32 %v6044_v41, %v5617_v15 }
 0x296   : > { %v1942_v50 = vpop.f32.mrf.mxu3 }
 0x297   : > { %v2031_v2 = vpop.f32.mrf.mxu0  ;;  %2568 = vmatmul.bf16.gmra.mxu2 %v5094_v37  ;;  %3781 = vmatpush.bf16.msrb.mxu3 %v5618_v24  ;;  %v5109_v37 = vld [vmem:[#allocation2 + $0xb0] sm:$0xf] }
 0x298   : > { %v5110_v33 = vor.u32 %v5828_v63, %v5109_v37 }
 0x29a   : > { %3260 = vmatmul.bf16.gmra.mxu0 %v5378_v59  ;;  %v1853_v44 = vpop.f32.mrf.mxu2  ;;  %v2490_v19 = vpop.f32.mrf.mxu1  ;;  %v5681_v59 = vld [vmem:[#allocation11 + $0xb0] sm:$0xf] }
 0x29b   : > { %v1943_v8 = vadd.f32 %v1942_v50, %v1853_v44  ;;  %v7131_v31 = vadd.f32 %v2490_v19, %v7073_v25  ;;  %v5682_v60 = vor.u32 %v6060_v54, %v5681_v59  ;;  %v5103_v44 = vld [vmem:[#allocation2 + $0xb4] sm:$0xf0]  ;;  %v5390_v54 = vor.u32 %v5971_v47, %v5389_v10  ;;  %v5831_v59 = vld [vmem:[#allocation2 + $0xd0] sm:$0xf0] }
 0x29d   : > { %3319 = vmatmul.bf16.vlgmr.msrb.gmra.mxu1 %v5310_v0  ;;  %v7133_v49 = vadd.f32 %v2031_v2, %v1943_v8  ;;  %3870 = vmatpush.bf16.msrb.mxu0 %v5682_v60  ;;  %v5106_v2 = vor.u32 %v5826_v9, %v5103_v44  ;;  %v5319_v0 = vld [vmem:[#allocation2 + $0x54] sm:$0xf0]  ;;  %v5952_v60 = vld [vmem:[#allocation2 + $0x4c] sm:$0xf] }
 0x29e   : > { %v1944_v55 = vpop.f32.mrf.mxu3 }
 0x29f   : > { %v2033_v3 = vpop.f32.mrf.mxu0 }
 0x2a2   : > { %v1855_v40 = vpop.f32.mrf.mxu2  ;;  %v2492_v50 = vpop.f32.mrf.mxu1 }
 0x2a3   : > { %v1945_v19 = vadd.f32 %v1944_v55, %v1855_v40  ;;  %v7136_v25 = vadd.f32 %v2492_v50, %v7078_v34  ;;  %2662 = vmatmul.bf16.gmra.mxu3 %v5110_v33  ;;  %v5322_v33 = vor.u32 %v5952_v60, %v5319_v0  ;;  %v5974_v0 = vld [vmem:[#allocation2 + $0xf8] sm:$0xf0] }
 0x2a5   : > { %v7138_v15 = vadd.f32 %v2033_v3, %v1945_v19  ;;  %v5121_v3 = vld [vmem:[#allocation2 + $0xc8] sm:$0xf] }
 0x2a6   : > { %v1947_v41 = vpop.f32.mrf.mxu3  ;;  %v5122_v44 = vor.u32 %v5831_v59, %v5121_v3  ;;  %v6015_v59 = vld [vmem:[#allocation8 + $0x210] sm:$0xff] }
 0x2a7   : > { %v2036_v8 = vpop.f32.mrf.mxu0  ;;  %2573 = vmatmul.bf16.gmra.mxu2 %v5106_v2  ;;  %v5115_v2 = vld [vmem:[#allocation2 + $0xcc] sm:$0xf0] }
 0x2a8   : > { %3405 = vmatpush.bf16.msrb.mxu2 %v6015_v59  ;;  %v5413_v59 = vld [vmem:[#allocation2 + $0x108] sm:$0xf] }
 0x2aa   : > { %3265 = vmatmul.bf16.gmra.mxu0 %v5390_v54  ;;  %v1858_v24 = vpop.f32.mrf.mxu2  ;;  %v2495_v37 = vpop.f32.mrf.mxu1  ;;  %v5401_v54 = vld [vmem:[#allocation2 + $0xf0] sm:$0xf] }
 0x2ab   : > { %v1948_v40 = vadd.f32 %v1947_v41, %v1858_v24  ;;  %v7141_v34 = vadd.f32 %v2495_v37, %v7083_v61  ;;  %v5829_v41 = vld [vmem:[#allocation2 + $0xc4] sm:$0xf]  ;;  %v5402_v60 = vor.u32 %v5974_v0, %v5401_v54  ;;  %v5834_v54 = vld [vmem:[#allocation2 + $0xe8] sm:$0xf0] }
 0x2ac   : > { %v5118_v61 = vor.u32 %v5829_v41, %v5115_v2 }
 0x2ad   : > { %3324 = vmatmul.bf16.gmra.mxu1 %v5322_v33  ;;  %v7143_v55 = vadd.f32 %v2036_v8, %v1948_v40  ;;  %v5331_v40 = vld [vmem:[#allocation2 + $0x6c] sm:$0xf0]  ;;  %v5955_v33 = vld [vmem:[#allocation2 + $0x64] sm:$0xf] }
 0x2ae   : > { %v1949_v63 = vpop.f32.mrf.mxu3 }
 0x2af   : > { %v2038_v50 = vpop.f32.mrf.mxu0 }
 0x2b2   : > { %v1860_v19 = vpop.f32.mrf.mxu2  ;;  %v2497_v9 = vpop.f32.mrf.mxu1 }
 0x2b3   : > { %v1950_v10 = vadd.f32 %v1949_v63, %v1860_v19  ;;  %v7146_v47 = vadd.f32 %v2497_v9, %v7088_v7  ;;  %2667 = vmatmul.bf16.gmra.mxu3 %v5122_v44  ;;  %v5609_v7 = vld [vmem:[#allocation11 + $0x20] sm:$0xf]  ;;  %v6042_v19 = vld [vmem:[#allocation11 + $0x24] sm:$0xf0] }
 0x2b4   : > { %v5610_v2 = vor.u32 %v6042_v19, %v5609_v7  ;;  %v5977_v7 = vld [vmem:[#allocation2 + $0x110] sm:$0xf0] }
 0x2b5   : > { %v7148_v24 = vadd.f32 %v2038_v50, %v1950_v10  ;;  %v5334_v50 = vor.u32 %v5955_v33, %v5331_v40  ;;  %v5832_v40 = vld [vmem:[#allocation2 + $0xdc] sm:$0xf] }
 0x2b6   : > { %v2628_v8 = vpop.f32.mrf.mxu3  ;;  %3782 = vmatpush.bf16.msrb.mxu3 %v5610_v2 }
 0x2b7   : > { %v7150_v37 = vpop.f32.mrf.mxu0  ;;  %2578 = vmatmul.bf16.gmra.mxu2 %v5118_v61  ;;  %v5133_v61 = vld [vmem:[#allocation2 + $0xe0] sm:$0xf] }
 0x2b8   : > { %7905 = vst [vmem:[#allocation44_spill] sm:$0xff] %v7150_v37  ;;  %v6058_v37 = vld [vmem:[#allocation11 + $0xa4] sm:$0xf0]  ;;  %v5134_v16 = vor.u32 %v5834_v54, %v5133_v61 }
 0x2b9   : > { %v5145_v54 = vld [vmem:[#allocation2 + $0xf8] sm:$0xf] }
 0x2ba   : > { %3270 = vmatmul.bf16.gmra.mxu0 %v5402_v60  ;;  %v2500_v3 = vpop.f32.mrf.mxu1  ;;  %v2539_v63 = vpop.f32.mrf.mxu2  ;;  %v5673_v60 = vld [vmem:[#allocation11 + $0xa0] sm:$0xf] }
 0x2bb   : > { %v7153_v44 = vadd.f32 %v2500_v3, %v7093_v52  ;;  %v2540_v9 = vadd.f32 %v2539_v63, %v7051_v53  ;;  %v5674_v27 = vor.u32 %v6058_v37, %v5673_v60  ;;  %v5130_v63 = vor.u32 %v5832_v40, %v5127_v18  ;;  %v5837_v60 = vld [vmem:[#allocation2 + $0x100] sm:$0xf0] }
 0x2bc   : > { %v5414_v37 = vor.u32 %v5977_v7, %v5413_v59 }
 0x2bd   : > { %v7156_v10 = vadd.f32 %v2628_v8, %v2540_v9  ;;  %3329 = vmatmul.bf16.gmra.mxu1 %v5334_v50  ;;  %3871 = vmatpush.bf16.msrb.mxu0 %v5674_v27  ;;  %v5343_v50 = vld [vmem:[#allocation2 + $0x84] sm:$0xf0] }
 0x2be   : > { %v2630_v41 = vpop.f32.mrf.mxu3 }
 0x2bf   : > { %v7158_v0 = vpop.f32.mrf.mxu0 }
 0x2c2   : > { %v2502_v52 = vpop.f32.mrf.mxu1  ;;  %v2541_v3 = vpop.f32.mrf.mxu2 }
 0x2c3   : > { %v7161_v53 = vadd.f32 %v2502_v52, %v7098_v43  ;;  %v2542_v8 = vadd.f32 %v2541_v3, %v7056_v14  ;;  %2672 = vmatmul.bf16.gmra.mxu3 %v5134_v16  ;;  %v5958_v43 = vld [vmem:[#allocation2 + $0x7c] sm:$0xf]  ;;  %v5146_v3 = vor.u32 %v5837_v60, %v5145_v54 }
 0x2c4   : > { %v5346_v14 = vor.u32 %v5958_v43, %v5343_v50  ;;  %v5980_v50 = vld [vmem:[#allocation2 + $0x128] sm:$0xf0]  ;;  %v6014_v60 = vld [vmem:[#allocation8 + $0x208] sm:$0xff] }
 0x2c5   : > { %v7164_v33 = vadd.f32 %v2630_v41, %v2542_v8  ;;  %3406 = vmatpush.bf16.msrb.mxu2 %v6014_v60  ;;  %v5437_v60 = vld [vmem:[#allocation2 + $0x138] sm:$0xf] }
 0x2c6   : > { %v2633_v19 = vpop.f32.mrf.mxu3 }
 0x2c7   : > { %v7166_v9 = vpop.f32.mrf.mxu0  ;;  %2583 = vmatmul.bf16.gmra.mxu2 %v5130_v63  ;;  %v5139_v63 = vld [vmem:[#allocation2 + $0xfc] sm:$0xf0] }
 0x2ca   : > { %3275 = vmatmul.bf16.gmra.mxu0 %v5414_v37  ;;  %v2505_v27 = vpop.f32.mrf.mxu1  ;;  %v2544_v2 = vpop.f32.mrf.mxu2  ;;  %v5425_v37 = vld [vmem:[#allocation2 + $0x120] sm:$0xf] }
 0x2cb   : > { %v7169_v61 = vadd.f32 %v2505_v27, %v7103_v1  ;;  %v2545_v16 = vadd.f32 %v2544_v2, %v7061_v4  ;;  %v5835_v4 = vld [vmem:[#allocation2 + $0xf4] sm:$0xf]  ;;  %v5426_v43 = vor.u32 %v5980_v50, %v5425_v37  ;;  %v5840_v37 = vld [vmem:[#allocation2 + $0x118] sm:$0xf0] }
 0x2cd   : > { %v7172_v41 = vadd.f32 %v2633_v19, %v2545_v16  ;;  %3334 = vmatmul.bf16.gmra.mxu1 %v5346_v14  ;;  %v5142_v19 = vor.u32 %v5835_v4, %v5139_v63  ;;  %v5355_v16 = vld [vmem:[#allocation2 + $0x9c] sm:$0xf0]  ;;  %v5961_v14 = vld [vmem:[#allocation2 + $0x94] sm:$0xf] }
 0x2ce   : > { %v2635_v18 = vpop.f32.mrf.mxu3 }
 0x2cf   : > { %7906 = vst [vmem:[#allocation45_spill] sm:$0xff] %v7172_v41  ;;  %v7174_v52 = vpop.f32.mrf.mxu0  ;;  %v5151_v41 = vld [vmem:[#allocation2 + $0x114] sm:$0xf0] }
 0x2d0   : > { %7907 = vst [vmem:[#allocation46_spill] sm:$0xff] %v7174_v52 }
 0x2d2   : > { %v2507_v8 = vpop.f32.mrf.mxu1  ;;  %v2546_v40 = vpop.f32.mrf.mxu2 }
 0x2d3   : > { %v7177_v59 = vadd.f32 %v2507_v8, %v7108_v46  ;;  %v2547_v1 = vadd.f32 %v2546_v40, %v7066_v12  ;;  %2677 = vmatmul.bf16.gmra.mxu3 %v5146_v3  ;;  %v5601_v8 = vld [vmem:[#allocation11 + $0x10] sm:$0xf]  ;;  %v6040_v12 = vld [vmem:[#allocation11 + $0x14] sm:$0xf0]  ;;  %v5358_v40 = vor.u32 %v5961_v14, %v5355_v16  ;;  %v5838_v16 = vld [vmem:[#allocation2 + $0x10c] sm:$0xf] }
 0x2d4   : > { %v5602_v63 = vor.u32 %v6040_v12, %v5601_v8  ;;  %v5983_v8 = vld [vmem:[#allocation2 + $0x140] sm:$0xf0] }
 0x2d5   : > { %v7180_v7 = vadd.f32 %v2635_v18, %v2547_v1 }
 0x2d6   : > { %v2638_v27 = vpop.f32.mrf.mxu3  ;;  %3783 = vmatpush.bf16.msrb.mxu3 %v5602_v63 }
 0x2d7   : > { %7908 = vst [vmem:[#allocation47_spill] sm:$0xff] %v7180_v7  ;;  %v7182_v2 = vpop.f32.mrf.mxu0  ;;  %2588 = vmatmul.bf16.gmra.mxu2 %v5142_v19  ;;  %v5157_v19 = vld [vmem:[#allocation2 + $0x110] sm:$0xf] }
 0x2d8   : > { %7909 = vst [vmem:[#allocation48_spill] sm:$0xff] %v7182_v2  ;;  %v6056_v2 = vld [vmem:[#allocation11 + $0x94] sm:$0xf0]  ;;  %v5158_v52 = vor.u32 %v5840_v37, %v5157_v19 }
 0x2d9   : > { %v5169_v37 = vld [vmem:[#allocation2 + $0x128] sm:$0xf] }
 0x2da   : > { %3280 = vmatmul.bf16.gmra.mxu0 %v5426_v43  ;;  %v2510_v54 = vpop.f32.mrf.mxu1  ;;  %v2549_v46 = vpop.f32.mrf.mxu2  ;;  %v5665_v43 = vld [vmem:[#allocation11 + $0x90] sm:$0xf] }
 0x2db   : > { %v7185_v3 = vadd.f32 %v2510_v54, %v7113_v13  ;;  %v2550_v18 = vadd.f32 %v2549_v46, %v7071_v58  ;;  %v5666_v7 = vor.u32 %v6056_v2, %v5665_v43  ;;  %v5154_v46 = vor.u32 %v5838_v16, %v5151_v41  ;;  %v5843_v43 = vld [vmem:[#allocation2 + $0x130] sm:$0xf0] }
 0x2dc   : > { %v5438_v2 = vor.u32 %v5983_v8, %v5437_v60 }
 0x2dd   : > { %v7188_v1 = vadd.f32 %v2638_v27, %v2550_v18  ;;  %3339 = vmatmul.bf16.gmra.mxu1 %v5358_v40  ;;  %3872 = vmatpush.bf16.msrb.mxu0 %v5666_v7  ;;  %v5367_v40 = vld [vmem:[#allocation2 + $0xb4] sm:$0xf0] }
 0x2de   : > { %v2640_v4 = vpop.f32.mrf.mxu3 }
 0x2df   : > { %v7190_v50 = vpop.f32.mrf.mxu0 }
 0x2e2   : > { %v2512_v13 = vpop.f32.mrf.mxu1  ;;  %v2551_v54 = vpop.f32.mrf.mxu2 }
 0x2e3   : > { %v7193_v58 = vadd.f32 %v2512_v13, %v7118_v32  ;;  %v2552_v27 = vadd.f32 %v2551_v54, %v7076_v26  ;;  %2682 = vmatmul.bf16.gmra.mxu3 %v5158_v52  ;;  %v5964_v32 = vld [vmem:[#allocation2 + $0xac] sm:$0xf]  ;;  %v5170_v54 = vor.u32 %v5843_v43, %v5169_v37  ;;  %v6013_v43 = vld [vmem:[#allocation8 + $0x200] sm:$0xff] }
 0x2e4   : > { %v5370_v52 = vor.u32 %v5964_v32, %v5367_v40  ;;  %v5986_v40 = vld [vmem:[#allocation2 + $0x158] sm:$0xf0]  ;;  %3407 = vmatpush.bf16.msrb.mxu2 %v6013_v43  ;;  %v5461_v43 = vld [vmem:[#allocation2 + $0x168] sm:$0xf] }
 0x2e5   : > { %v7196_v14 = vadd.f32 %v2640_v4, %v2552_v27 }
 0x2e6   : > { %v2643_v12 = vpop.f32.mrf.mxu3 }
 0x2e7   : > { %v7198_v18 = vpop.f32.mrf.mxu0  ;;  %2593 = vmatmul.bf16.gmra.mxu2 %v5154_v46  ;;  %v5163_v46 = vld [vmem:[#allocation2 + $0x12c] sm:$0xf0] }
 0x2ea   : > { %3285 = vmatmul.bf16.gmra.mxu0 %v5438_v2  ;;  %v2515_v7 = vpop.f32.mrf.mxu1  ;;  %v2554_v63 = vpop.f32.mrf.mxu2  ;;  %v5449_v2 = vld [vmem:[#allocation2 + $0x150] sm:$0xf] }
 0x2eb   : > { %v7201_v19 = vadd.f32 %v2515_v7, %v7123_v6  ;;  %v2555_v26 = vadd.f32 %v2554_v63, %v7081_v29  ;;  %v5841_v29 = vld [vmem:[#allocation2 + $0x124] sm:$0xf]  ;;  %v5450_v32 = vor.u32 %v5986_v40, %v5449_v2  ;;  %v5846_v2 = vld [vmem:[#allocation2 + $0x148] sm:$0xf0] }
 0x2ed   : > { %v7204_v4 = vadd.f32 %v2643_v12, %v2555_v26  ;;  %3344 = vmatmul.bf16.gmra.mxu1 %v5370_v52  ;;  %v5166_v12 = vor.u32 %v5841_v29, %v5163_v46  ;;  %v5379_v26 = vld [vmem:[#allocation2 + $0xcc] sm:$0xf0]  ;;  %v5967_v52 = vld [vmem:[#allocation2 + $0xc4] sm:$0xf] }
 0x2ee   : > { %v2645_v41 = vpop.f32.mrf.mxu3 }
 0x2ef   : > { %7910 = vst [vmem:[#allocation49_spill] sm:$0xff] %v7204_v4  ;;  %v7206_v13 = vpop.f32.mrf.mxu0  ;;  %v5175_v4 = vld [vmem:[#allocation2 + $0x144] sm:$0xf0] }
 0x2f0   : > { %7911 = vst [vmem:[#allocation50_spill] sm:$0xff] %v7206_v13 }
 0x2f2   : > { %v2517_v27 = vpop.f32.mrf.mxu1  ;;  %v2556_v16 = vpop.f32.mrf.mxu2 }
 0x2f3   : > { %v7209_v60 = vadd.f32 %v2517_v27, %v7128_v57  ;;  %v2557_v6 = vadd.f32 %v2556_v16, %v7086_v56  ;;  %2687 = vmatmul.bf16.gmra.mxu3 %v5170_v54  ;;  %v5593_v27 = vld [vmem:[#allocation11] sm:$0xf]  ;;  %v6038_v56 = vld [vmem:[#allocation11 + $0x4] sm:$0xf0]  ;;  %v5382_v16 = vor.u32 %v5967_v52, %v5379_v26  ;;  %v5844_v26 = vld [vmem:[#allocation2 + $0x13c] sm:$0xf] }
 0x2f4   : > { %v5594_v46 = vor.u32 %v6038_v56, %v5593_v27  ;;  %v5989_v27 = vld [vmem:[#allocation2 + $0x170] sm:$0xf0] }
 0x2f5   : > { %v7212_v8 = vadd.f32 %v2645_v41, %v2557_v6 }
 0x2f6   : > { %v2648_v7 = vpop.f32.mrf.mxu3  ;;  %3784 = vmatpush.bf16.msrb.mxu3 %v5594_v46 }
 0x2f7   : > { %7912 = vst [vmem:[#allocation51_spill] sm:$0xff] %v7212_v8  ;;  %v7214_v63 = vpop.f32.mrf.mxu0  ;;  %2598 = vmatmul.bf16.gmra.mxu2 %v5166_v12  ;;  %v5181_v12 = vld [vmem:[#allocation2 + $0x140] sm:$0xf] }
 0x2f8   : > { %7913 = vst [vmem:[#allocation52_spill] sm:$0xff] %v7214_v63  ;;  %v6054_v63 = vld [vmem:[#allocation11 + $0x84] sm:$0xf0]  ;;  %v5182_v13 = vor.u32 %v5846_v2, %v5181_v12 }
 0x2f9   : > { %v5193_v2 = vld [vmem:[#allocation2 + $0x158] sm:$0xf] }
 0x2fa   : > { %3290 = vmatmul.bf16.gmra.mxu0 %v5450_v32  ;;  %v2520_v37 = vpop.f32.mrf.mxu1  ;;  %v2559_v57 = vpop.f32.mrf.mxu2  ;;  %v5657_v32 = vld [vmem:[#allocation11 + $0x80] sm:$0xf] }
 0x2fb   : > { %v7217_v54 = vadd.f32 %v2520_v37, %v7133_v49  ;;  %v2560_v41 = vadd.f32 %v2559_v57, %v7091_v23  ;;  %v5658_v8 = vor.u32 %v6054_v63, %v5657_v32  ;;  %v5178_v57 = vor.u32 %v5844_v26, %v5175_v4  ;;  %v5849_v32 = vld [vmem:[#allocation2 + $0x160] sm:$0xf0] }
 0x2fc   : > { %v5462_v63 = vor.u32 %v5989_v27, %v5461_v43 }
 0x2fd   : > { %v7220_v6 = vadd.f32 %v2648_v7, %v2560_v41  ;;  %3349 = vmatmul.bf16.gmra.mxu1 %v5382_v16  ;;  %3873 = vmatpush.bf16.msrb.mxu0 %v5658_v8  ;;  %v5391_v16 = vld [vmem:[#allocation2 + $0xe4] sm:$0xf0] }
 0x2fe   : > { %v2650_v29 = vpop.f32.mrf.mxu3 }
 0x2ff   : > { %v7222_v40 = vpop.f32.mrf.mxu0 }
 0x302   : > { %v2522_v49 = vpop.f32.mrf.mxu1  ;;  %v2561_v37 = vpop.f32.mrf.mxu2 }
 0x303   : > { %v7225_v23 = vadd.f32 %v2522_v49, %v7138_v15  ;;  %v2562_v7 = vadd.f32 %v2561_v37, %v7096_v5  ;;  %2692 = vmatmul.bf16.gmra.mxu3 %v5182_v13  ;;  %v5970_v15 = vld [vmem:[#allocation2 + $0xdc] sm:$0xf]  ;;  %v5194_v37 = vor.u32 %v5849_v32, %v5193_v2  ;;  %v5715_v32 = vld [vmem:[#allocation11 + $0xf8] sm:$0xf0] }
 0x304   : > { %v5394_v13 = vor.u32 %v5970_v15, %v5391_v16  ;;  %v5992_v16 = vld [vmem:[#allocation2 + $0x188] sm:$0xf0] }
 0x305   : > { %v7228_v52 = vadd.f32 %v2650_v29, %v2562_v7 }
 0x306   : > { %v2653_v56 = vpop.f32.mrf.mxu3 }
 0x307   : > { %v7230_v41 = vpop.f32.mrf.mxu0  ;;  %2603 = vmatmul.bf16.gmra.mxu2 %v5178_v57  ;;  %v5187_v57 = vld [vmem:[#allocation2 + $0x15c] sm:$0xf0] }
 0x30a   : > { %3295 = vmatmul.bf16.gmra.mxu0 %v5462_v63  ;;  %v2525_v8 = vpop.f32.mrf.mxu1  ;;  %v2564_v46 = vpop.f32.mrf.mxu2  ;;  %v5473_v63 = vld [vmem:[#allocation2 + $0x180] sm:$0xf] }
 0x30b   : > { %v7233_v12 = vadd.f32 %v2525_v8, %v7143_v55  ;;  %v2565_v5 = vadd.f32 %v2564_v46, %v7101_v28  ;;  %v5847_v28 = vld [vmem:[#allocation2 + $0x154] sm:$0xf]  ;;  %v5474_v15 = vor.u32 %v5992_v16, %v5473_v63  ;;  %v5852_v63 = vld [vmem:[#allocation2 + $0x178] sm:$0xf0] }
 0x30d   : > { %v7236_v29 = vadd.f32 %v2653_v56, %v2565_v5  ;;  %3354 = vmatmul.bf16.gmra.mxu1 %v5394_v13  ;;  %v5190_v56 = vor.u32 %v5847_v28, %v5187_v57  ;;  %v5403_v5 = vld [vmem:[#allocation2 + $0xfc] sm:$0xf0]  ;;  %v5973_v13 = vld [vmem:[#allocation2 + $0xf4] sm:$0xf] }
 0x30e   : > { %v2655_v4 = vpop.f32.mrf.mxu3 }
 0x30f   : > { %7914 = vst [vmem:[#allocation53_spill] sm:$0xff] %v7236_v29  ;;  %v7238_v49 = vpop.f32.mrf.mxu0  ;;  %v5779_v29 = vld [vmem:[#allocation9 + $0x78] sm:$0xf0] }
 0x310   : > { %7915 = vst [vmem:[#allocation54_spill] sm:$0xff] %v7238_v49 }
 0x312   : > { %v2527_v7 = vpop.f32.mrf.mxu1  ;;  %v2566_v26 = vpop.f32.mrf.mxu2 }
 0x313   : > { %v7241_v43 = vadd.f32 %v2527_v7, %v7148_v24  ;;  %v2567_v55 = vadd.f32 %v2566_v26, %v7106_v20  ;;  %2697 = vmatmul.bf16.gmra.mxu3 %v5194_v37  ;;  %v6067_v24 = vld [vmem:[#allocation11 + $0xf4] sm:$0xf]  ;;  %v5777_v7 = vld [vmem:[#allocation9 + $0x70] sm:$0xf]  ;;  %v5406_v37 = vor.u32 %v5973_v13, %v5403_v5  ;;  %v6036_v26 = vld [vmem:[#allocation9 + $0x74] sm:$0xf0] }
 0x314   : > { %v5778_v57 = vor.u32 %v6036_v26, %v5777_v7  ;;  %v5850_v7 = vld [vmem:[#allocation2 + $0x16c] sm:$0xf] }
 0x315   : > { %v7244_v27 = vadd.f32 %v2655_v4, %v2567_v55  ;;  %v5718_v4 = vor.u32 %v6067_v24, %v5715_v32  ;;  %v5485_v24 = vld [vmem:[#allocation2 + $0x198] sm:$0xf]  ;;  %v5995_v32 = vld [vmem:[#allocation2 + $0x1a0] sm:$0xf0] }
 0x316   : > { %v2658_v8 = vpop.f32.mrf.mxu3  ;;  %4213 = vmatpush.bf16.msra.mxu3 %v5778_v57  ;;  %v5486_v26 = vor.u32 %v5995_v32, %v5485_v24 }
 0x317   : > { %7916 = vst [vmem:[#allocation55_spill] sm:$0xff] %v7244_v27  ;;  %v7246_v46 = vpop.f32.mrf.mxu0  ;;  %2608 = vmatmul.bf16.gmra.mxu2 %v5190_v56  ;;  %v5205_v56 = vld [vmem:[#allocation2 + $0x170] sm:$0xf]  ;;  %v6035_v27 = vld [vmem:[#allocation9 + $0x74] sm:$0xf] }
 0x318   : > { %7917 = vst [vmem:[#allocation56_spill] sm:$0xff] %v7246_v46  ;;  %4044 = vmatpush.bf16.msra.mxu2 %v5718_v4  ;;  %v5651_v46 = vld [vmem:[#allocation11 + $0x78] sm:$0xf0]  ;;  %v5782_v5 = vor.u32 %v6035_v27, %v5779_v29 }
 0x319   : > { %v5976_v27 = vld [vmem:[#allocation2 + $0x10c] sm:$0xf] }
 0x31a   : > { %3300 = vmatmul.bf16.gmra.mxu0 %v5474_v15  ;;  %v2569_v2 = vpop.f32.mrf.mxu2  ;;  %v6051_v15 = vld [vmem:[#allocation11 + $0x74] sm:$0xf] }
 0x31b   : > { %v2570_v20 = vadd.f32 %v2569_v2, %v7111_v35  ;;  %v5654_v49 = vor.u32 %v6051_v15, %v5651_v46  ;;  %v5206_v35 = vor.u32 %v5852_v63, %v5205_v56  ;;  %v5199_v2 = vld [vmem:[#allocation2 + $0x174] sm:$0xf0]  ;;  %4302 = vmatpush.bf16.msra.mxu0 %v5782_v5  ;;  %v5951_v5 = vld [vmem:[#allocation2 + $0x40] sm:$0xf0] }
 0x31c   : > { %v5415_v46 = vld [vmem:[#allocation2 + $0x114] sm:$0xf0] }
 0x31d   : > { %v7249_v55 = vadd.f32 %v2658_v8, %v2570_v20  ;;  %3359 = vmatmul.bf16.gmra.mxu1 %v5406_v37  ;;  %v5202_v37 = vor.u32 %v5850_v7, %v5199_v2  ;;  %v5979_v7 = vld [vmem:[#allocation2 + $0x124] sm:$0xf] }
 0x31e   : > { %v2660_v28 = vpop.f32.mrf.mxu3  ;;  %3955 = vmatpush.bf16.msra.mxu1 %v5654_v49 }
 0x31f   : > { %v7251_v16 = vpop.f32.mrf.mxu0 }
 0x322   : > { %v2571_v13 = vpop.f32.mrf.mxu2 }
 0x323   : > { %v2572_v8 = vadd.f32 %v2571_v13, %v7116_v38  ;;  %2702 = vmatmul.bf16.gmra.mxu3 %v5206_v35  ;;  %v5418_v38 = vor.u32 %v5976_v27, %v5415_v46  ;;  %v5313_v35 = vld [vmem:[#allocation2 + $0x38] sm:$0xf]  ;;  %v5769_v46 = vld [vmem:[#allocation9 + $0x60] sm:$0xf] }
 0x325   : > { %v7254_v20 = vadd.f32 %v2660_v28, %v2572_v8  ;;  %v5314_v8 = vor.u32 %v5951_v5, %v5313_v35  ;;  %v6049_v5 = vld [vmem:[#allocation11 + $0x64] sm:$0xf] }
 0x326   : > { %v2663_v4 = vpop.f32.mrf.mxu3 }
 0x327   : > { %v7256_v57 = vpop.f32.mrf.mxu0  ;;  %2613 = vmatmul.bf16.gmra.mxu2 %v5202_v37 }
 0x32a   : > { %3305 = vmatmul.bf16.gmra.mxu0 %v5486_v26  ;;  %v2574_v29 = vpop.f32.mrf.mxu2  ;;  %v5707_v26 = vld [vmem:[#allocation11 + $0xe8] sm:$0xf0] }
 0x32b   : > { %v2575_v49 = vadd.f32 %v2574_v29, %v7121_v17  ;;  %v5427_v17 = vld [vmem:[#allocation2 + $0x12c] sm:$0xf0] }
 0x32d   : > { %v7259_v56 = vadd.f32 %v2663_v4, %v2575_v49  ;;  %3364 = vmatmul.bf16.gmra.mxu1 %v5418_v38  ;;  %v6065_v4 = vld [vmem:[#allocation11 + $0xe4] sm:$0xf]  ;;  %v6034_v49 = vld [vmem:[#allocation9 + $0x64] sm:$0xf0] }
 0x32e   : > { %v2665_v63 = vpop.f32.mrf.mxu3  ;;  %v5710_v27 = vor.u32 %v6065_v4, %v5707_v26  ;;  %v5770_v38 = vor.u32 %v6034_v49, %v5769_v46  ;;  %v7279_v26 = vpop.f32.mrf.mxu1 }
 0x32f   : > { %v7261_v15 = vpop.f32.mrf.mxu0 }
 0x330   : > { %7918 = vst [vmem:[#allocation57_spill] sm:$0xff] %v7261_v15  ;;  %4045 = vmatpush.bf16.msra.mxu2 %v5710_v27  ;;  %4214 = vmatpush.bf16.msra.mxu3 %v5770_v38 }
 0x332   : > { %v2576_v28 = vpop.f32.mrf.mxu2 }
 0x333   : > { %v2577_v13 = vadd.f32 %v2576_v28, %v7126_v21  ;;  %3785 = vmatmul.bf16.vlgmr.msrb.gmra.mxu3 %v6605_v22  ;;  %v5430_v21 = vor.u32 %v5979_v7, %v5427_v17  ;;  %v5954_v17 = vld [vmem:[#allocation2 + $0x58] sm:$0xf0] }
 0x335   : > { %v7265_v2 = vadd.f32 %v2665_v63, %v2577_v13  ;;  %v5643_v13 = vld [vmem:[#allocation11 + $0x68] sm:$0xf0] }
 0x336   : > { %v2668_v24 = vpop.f32.mrf.mxu3  ;;  %v7289_v49 = vpop.f32.mrf.mxu1 }
 0x337   : > { %7919 = vst [vmem:[#allocation58_spill] sm:$0xff] %v7265_v2  ;;  %v7267_v32 = vpop.f32.mrf.mxu0  ;;  %3408 = vmatmul.bf16.vlgmr.msrb.gmra.mxu2 %v5314_v8  ;;  %v6033_v8 = vld [vmem:[#allocation9 + $0x64] sm:$0xf] }
 0x338   : > { %7920 = vst [vmem:[#allocation59_spill] sm:$0xff] %v7267_v32  ;;  %v5646_v32 = vor.u32 %v6049_v5, %v5643_v13  ;;  %v5957_v5 = vld [vmem:[#allocation2 + $0x70] sm:$0xf0] }
 0x33a   : > { %3874 = vmatmul.bf16.vlgmr.msrb.gmra.mxu0 %v6630_v39  ;;  %v2579_v37 = vpop.f32.mrf.mxu2  ;;  %v5771_v39 = vld [vmem:[#allocation9 + $0x68] sm:$0xf0]  ;;  %3956 = vmatpush.bf16.msra.mxu1 %v5646_v32 }
 0x33b   : > { %v2580_v29 = vadd.f32 %v2579_v37, %v7131_v31  ;;  %v5774_v2 = vor.u32 %v6033_v8, %v5771_v39  ;;  %v5325_v31 = vld [vmem:[#allocation2 + $0x50] sm:$0xf] }
 0x33c   : > { %v5326_v37 = vor.u32 %v5954_v17, %v5325_v31 }
 0x33d   : > { %v7271_v63 = vadd.f32 %v2668_v24, %v2580_v29  ;;  %3369 = vmatmul.bf16.gmra.mxu1 %v5430_v21  ;;  %4303 = vmatpush.bf16.msra.mxu0 %v5774_v2  ;;  %v5439_v29 = vld [vmem:[#allocation2 + $0x144] sm:$0xf0]  ;;  %v5982_v21 = vld [vmem:[#allocation2 + $0x13c] sm:$0xf] }
 0x33e   : > { %v2670_v28 = vpop.f32.mrf.mxu3 }
 0x33f   : > { %v7273_v35 = vpop.f32.mrf.mxu0 }
 0x342   : > { %v2581_v15 = vpop.f32.mrf.mxu2 }
 0x343   : > { %v2582_v7 = vadd.f32 %v2581_v15, %v7136_v25  ;;  %3790 = vmatmul.bf16.gmra.mxu3 %v6615_v30  ;;  %v5442_v25 = vor.u32 %v5982_v21, %v5439_v29  ;;  %v6063_v29 = vld [vmem:[#allocation11 + $0xd4] sm:$0xf]  ;;  %v5761_v21 = vld [vmem:[#allocation9 + $0x50] sm:$0xf] }
 0x345   : > { %v7277_v24 = vadd.f32 %v2670_v28, %v2582_v7  ;;  %v5337_v28 = vld [vmem:[#allocation2 + $0x68] sm:$0xf]  ;;  %v5451_v7 = vld [vmem:[#allocation2 + $0x15c] sm:$0xf0] }
 0x346   : > { %v2673_v4 = vpop.f32.mrf.mxu3  ;;  %v5338_v31 = vor.u32 %v5957_v5, %v5337_v28 }
 0x347   : > { %v7281_v46 = vpop.f32.mrf.mxu0  ;;  %3413 = vmatmul.bf16.gmra.mxu2 %v5326_v37  ;;  %v5985_v37 = vld [vmem:[#allocation2 + $0x154] sm:$0xf] }
 0x348   : > { %7921 = vst [vmem:[#allocation60_spill] sm:$0xff] %v7281_v46 }
 0x34a   : > { %3879 = vmatmul.bf16.gmra.mxu0 %v6640_v45  ;;  %v2584_v39 = vpop.f32.mrf.mxu2 }
 0x34b   : > { %v2585_v32 = vadd.f32 %v2584_v39, %v7141_v34  ;;  %v5699_v39 = vld [vmem:[#allocation11 + $0xd8] sm:$0xf0] }
 0x34d   : > { %v7285_v15 = vadd.f32 %v2673_v4, %v2585_v32  ;;  %3374 = vmatmul.bf16.gmra.mxu1 %v5442_v25  ;;  %v7298_v32 = vpop.f32.mrf.mxu1  ;;  %v5454_v25 = vor.u32 %v5985_v37, %v5451_v7  ;;  %v5960_v7 = vld [vmem:[#allocation2 + $0x88] sm:$0xf0] }
 0x34e   : > { %v2675_v2 = vpop.f32.mrf.mxu3 }
 0x34f   : > { %7922 = vst [vmem:[#allocation61_spill] sm:$0xff] %v7285_v15  ;;  %v7287_v27 = vpop.f32.mrf.mxu0  ;;  %v5763_v15 = vld [vmem:[#allocation9 + $0x58] sm:$0xf0] }
 0x350   : > { %7923 = vst [vmem:[#allocation62_spill] sm:$0xff] %v7287_v27 }
 0x352   : > { %v2586_v38 = vpop.f32.mrf.mxu2 }
 0x353   : > { %v2587_v13 = vadd.f32 %v2586_v38, %v7146_v47  ;;  %3795 = vmatmul.bf16.gmra.mxu3 %v6625_v36  ;;  %v6032_v38 = vld [vmem:[#allocation9 + $0x54] sm:$0xf0] }
 0x354   : > { %v5762_v28 = vor.u32 %v6032_v38, %v5761_v21  ;;  %v5963_v38 = vld [vmem:[#allocation2 + $0xa0] sm:$0xf0] }
 0x355   : > { %v7293_v8 = vadd.f32 %v2675_v2, %v2587_v13  ;;  %v5702_v2 = vor.u32 %v6063_v29, %v5699_v39 }
 0x356   : > { %v2678_v34 = vpop.f32.mrf.mxu3  ;;  %4215 = vmatpush.bf16.msra.mxu3 %v5762_v28 }
 0x357   : > { %7924 = vst [vmem:[#allocation63_spill] sm:$0xff] %v7293_v8  ;;  %v7295_v17 = vpop.f32.mrf.mxu0  ;;  %3418 = vmatmul.bf16.gmra.mxu2 %v5338_v31  ;;  %v6031_v8 = vld [vmem:[#allocation9 + $0x54] sm:$0xf] }
 0x358   : > { %7925 = vst [vmem:[#allocation64_spill] sm:$0xff] %v7295_v17  ;;  %4046 = vmatpush.bf16.msra.mxu2 %v5702_v2  ;;  %v6047_v17 = vld [vmem:[#allocation11 + $0x54] sm:$0xf]  ;;  %v5766_v46 = vor.u32 %v6031_v8, %v5763_v15  ;;  %v5988_v8 = vld [vmem:[#allocation2 + $0x16c] sm:$0xf] }
 0x359   : > { %v5361_v2 = vld [vmem:[#allocation2 + $0x98] sm:$0xf] }
 0x35a   : > { %3884 = vmatmul.bf16.gmra.mxu0 %v6645_v48  ;;  %v2589_v4 = vpop.f32.mrf.mxu2  ;;  %v5635_v48 = vld [vmem:[#allocation11 + $0x58] sm:$0xf0] }
 0x35b   : > { %v2590_v47 = vadd.f32 %v2589_v4, %v7153_v44  ;;  %v5638_v27 = vor.u32 %v6047_v17, %v5635_v48  ;;  %v5349_v44 = vld [vmem:[#allocation2 + $0x80] sm:$0xf]  ;;  %4304 = vmatpush.bf16.msra.mxu0 %v5766_v46  ;;  %v5463_v48 = vld [vmem:[#allocation2 + $0x174] sm:$0xf0] }
 0x35c   : > { %v5350_v29 = vor.u32 %v5960_v7, %v5349_v44  ;;  %v5362_v44 = vor.u32 %v5963_v38, %v5361_v2 }
 0x35d   : > { %v7301_v5 = vadd.f32 %v2678_v34, %v2590_v47  ;;  %3379 = vmatmul.bf16.gmra.mxu1 %v5454_v25  ;;  %v7307_v34 = vpop.f32.mrf.mxu1 }
 0x35e   : > { %v2680_v13 = vpop.f32.mrf.mxu3  ;;  %3957 = vmatpush.bf16.msra.mxu1 %v5638_v27 }
 0x35f   : > { %v7303_v31 = vpop.f32.mrf.mxu0 }
 0x362   : > { %v2591_v45 = vpop.f32.mrf.mxu2 }
 0x363   : > { %v2592_v37 = vadd.f32 %v2591_v45, %v7161_v53  ;;  %3800 = vmatmul.bf16.gmra.mxu3 %v6635_v42  ;;  %v5466_v45 = vor.u32 %v5988_v8, %v5463_v48  ;;  %v5691_v8 = vld [vmem:[#allocation11 + $0xc8] sm:$0xf0] }
 0x365   : > { %v7309_v4 = vadd.f32 %v2680_v13, %v2592_v37  ;;  %v7317_v17 = vpop.f32.mrf.mxu1  ;;  %v5475_v37 = vld [vmem:[#allocation2 + $0x18c] sm:$0xf0] }
 0x366   : > { %v2683_v39 = vpop.f32.mrf.mxu3 }
 0x367   : > { %v7311_v21 = vpop.f32.mrf.mxu0  ;;  %3423 = vmatmul.bf16.gmra.mxu2 %v5350_v29 }
 0x368   : > { %7926 = vst [vmem:[#allocation65_spill] sm:$0xff] %v7311_v21 }
 0x36a   : > { %3889 = vmatmul.bf16.gmra.mxu0 %v6650_v51  ;;  %v2594_v15 = vpop.f32.mrf.mxu2 }
 0x36b   : > { %v2595_v27 = vadd.f32 %v2594_v15, %v7169_v61  ;;  %v6061_v15 = vld [vmem:[#allocation11 + $0xc4] sm:$0xf] }
 0x36d   : > { %v7315_v53 = vadd.f32 %v2683_v39, %v2595_v27  ;;  %3384 = vmatmul.bf16.gmra.mxu1 %v5466_v45  ;;  %v7327_v29 = vpop.f32.mrf.mxu1  ;;  %v5991_v39 = vld [vmem:[#allocation2 + $0x184] sm:$0xf]  ;;  %v5753_v27 = vld [vmem:[#allocation9 + $0x40] sm:$0xf] }
 0x36e   : > { %v2685_v46 = vpop.f32.mrf.mxu3  ;;  %v5478_v45 = vor.u32 %v5991_v39, %v5475_v37  ;;  %v5966_v37 = vld [vmem:[#allocation2 + $0xb8] sm:$0xf0] }
 0x36f   : > { %7927 = vst [vmem:[#allocation66_spill] sm:$0xff] %v7315_v53  ;;  %v7319_v47 = vpop.f32.mrf.mxu0  ;;  %v5755_v53 = vld [vmem:[#allocation9 + $0x48] sm:$0xf0] }
 0x370   : > { %7928 = vst [vmem:[#allocation67_spill] sm:$0xff] %v7319_v47 }
 0x372   : > { %v2596_v25 = vpop.f32.mrf.mxu2 }
 0x373   : > { %v2597_v28 = vadd.f32 %v2596_v25, %v7177_v59  ;;  %3805 = vmatmul.bf16.gmra.mxu3 %v6595_v11  ;;  %v6030_v25 = vld [vmem:[#allocation9 + $0x44] sm:$0xf0] }
 0x374   : > { %v5754_v2 = vor.u32 %v6030_v25, %v5753_v27 }
 0x375   : > { %v7323_v13 = vadd.f32 %v2685_v46, %v2597_v28  ;;  %v5694_v46 = vor.u32 %v6061_v15, %v5691_v8  ;;  %v7335_v39 = vpop.f32.mrf.mxu1 }
 0x376   : > { %v2688_v61 = vpop.f32.mrf.mxu3  ;;  %4216 = vmatpush.bf16.msra.mxu3 %v5754_v2  ;;  %v5385_v2 = vld [vmem:[#allocation2 + $0xc8] sm:$0xf] }
 0x377   : > { %7929 = vst [vmem:[#allocation68_spill] sm:$0xff] %v7323_v13  ;;  %v7325_v7 = vpop.f32.mrf.mxu0  ;;  %3428 = vmatmul.bf16.gmra.mxu2 %v5362_v44  ;;  %v6029_v13 = vld [vmem:[#allocation9 + $0x44] sm:$0xf] }
 0x378   : > { %7930 = vst [vmem:[#allocation69_spill] sm:$0xff] %v7325_v7  ;;  %4047 = vmatpush.bf16.msra.mxu2 %v5694_v46  ;;  %v6045_v7 = vld [vmem:[#allocation11 + $0x44] sm:$0xf]  ;;  %v5758_v21 = vor.u32 %v6029_v13, %v5755_v53 }
 0x379   : > { %v7935_v13 = vld [vmem:[#allocation29_spill] sm:$0xff] }
 0x37a   : > { %3894 = vmatmul.bf16.gmra.mxu0 %v6665_v62  ;;  %v2599_v48 = vpop.f32.mrf.mxu2  ;;  %v5627_v62 = vld [vmem:[#allocation11 + $0x48] sm:$0xf0] }
 0x37b   : > { %v2600_v59 = vadd.f32 %v2599_v48, %v7185_v3  ;;  %v5630_v47 = vor.u32 %v6045_v7, %v5627_v62  ;;  %v5373_v3 = vld [vmem:[#allocation2 + $0xb0] sm:$0xf]  ;;  %4305 = vmatpush.bf16.msra.mxu0 %v5758_v21 }
 0x37c   : > { %v7932_v48 = vld [vmem:[#allocation17_spill] sm:$0xff]  ;;  %v5374_v8 = vor.u32 %v5966_v37, %v5373_v3  ;;  %v7938_v37 = vld [vmem:[#allocation18_spill] sm:$0xff] }
 0x37d   : > { %v7331_v38 = vadd.f32 %v2688_v61, %v2600_v59  ;;  %3389 = vmatmul.bf16.gmra.mxu1 %v5478_v45  ;;  %v5994_v59 = vld [vmem:[#allocation2 + $0x19c] sm:$0xf]  ;;  %v5487_v45 = vld [vmem:[#allocation2 + $0x1a4] sm:$0xf0]  ;;  %v7345_v46 = vpop.f32.mrf.mxu1 }
 0x37e   : > { %v2690_v28 = vpop.f32.mrf.mxu3  ;;  %3958 = vmatpush.bf16.msra.mxu1 %v5630_v47  ;;  %v5490_v53 = vor.u32 %v5994_v59, %v5487_v45 }
 0x37f   : > { %v7333_v44 = vpop.f32.mrf.mxu0 }
 0x380   : > { %7931 = vst [vmem:[#allocation70_spill] sm:$0xff] %v7333_v44  ;;  %v5972_v44 = vld [vmem:[#allocation2 + $0xe8] sm:$0xf0] }
 0x382   : > { %v2601_v51 = vpop.f32.mrf.mxu2 }
 0x383   : > { %v2602_v61 = vadd.f32 %v2601_v51, %v7193_v58  ;;  %3810 = vmatmul.bf16.gmra.mxu3 %v7932_v48 }
 0x385   : > { %v7339_v15 = vadd.f32 %v2690_v28, %v2602_v61  ;;  %v5969_v28 = vld [vmem:[#allocation2 + $0xd0] sm:$0xf0] }
 0x386   : > { %v2693_v27 = vpop.f32.mrf.mxu3 }
 0x387   : > { %7933 = vst [vmem:[#allocation17_spill] sm:$0xff] %v7339_v15  ;;  %v7341_v62 = vpop.f32.mrf.mxu0  ;;  %3433 = vmatmul.bf16.gmra.mxu2 %v5374_v8  ;;  %v5386_v8 = vor.u32 %v5969_v28, %v5385_v2  ;;  %v6043_v28 = vld [vmem:[#allocation11 + $0x34] sm:$0xf]  ;;  %v5397_v15 = vld [vmem:[#allocation2 + $0xe0] sm:$0xf] }
 0x388   : > { %7934 = vst [vmem:[#allocation71_spill] sm:$0xff] %v7341_v62  ;;  %v6028_v62 = vld [vmem:[#allocation9 + $0x34] sm:$0xf0] }
 0x38a   : > { %3899 = vmatmul.bf16.gmra.mxu0 %v7935_v13  ;;  %v2604_v47 = vpop.f32.mrf.mxu2 }
 0x38b   : > { %v2605_v7 = vadd.f32 %v2604_v47, %v7201_v19  ;;  %v5683_v47 = vld [vmem:[#allocation11 + $0xb8] sm:$0xf0] }
 0x38d   : > { %v7347_v51 = vadd.f32 %v2693_v27, %v2605_v7  ;;  %3394 = vmatmul.bf16.gmra.mxu1 %v5490_v53  ;;  %v7941_v27 = vld [vmem:[#allocation32_spill] sm:$0xff]  ;;  %v6059_v53 = vld [vmem:[#allocation11 + $0xb4] sm:$0xf]  ;;  %v5745_v7 = vld [vmem:[#allocation9 + $0x30] sm:$0xf] }
 0x38e   : > { %v2695_v58 = vpop.f32.mrf.mxu3 }
 0x38f   : > { %7936 = vst [vmem:[#allocation72_spill] sm:$0xff] %v7347_v51  ;;  %v7349_v21 = vpop.f32.mrf.mxu0  ;;  %v5686_v51 = vor.u32 %v6059_v53, %v5683_v47  ;;  %v7369_v53 = vpop.f32.mrf.mxu1  ;;  %v7945_v47 = vld [vmem:[#allocation35_spill] sm:$0xff] }
 0x390   : > { %7937 = vst [vmem:[#allocation73_spill] sm:$0xff] %v7349_v21 }
 0x391   : > { %4048 = vmatpush.bf16.msra.mxu2 %v5686_v51 }
 0x392   : > { %v2606_v25 = vpop.f32.mrf.mxu2 }
 0x393   : > { %v2607_v3 = vadd.f32 %v2606_v25, %v7209_v60  ;;  %3815 = vmatmul.bf16.gmra.mxu3 %v7938_v37  ;;  %v5746_v60 = vor.u32 %v6028_v62, %v5745_v7  ;;  %v7942_v62 = vld [vmem:[#allocation19_spill] sm:$0xff] }
 0x395   : > { %v7353_v61 = vadd.f32 %v2695_v58, %v2607_v3  ;;  %4217 = vmatpush.bf16.msra.mxu3 %v5746_v60  ;;  %v5619_v3 = vld [vmem:[#allocation11 + $0x38] sm:$0xf0]  ;;  %v5409_v60 = vld [vmem:[#allocation2 + $0xf8] sm:$0xf] }
 0x396   : > { %v2698_v59 = vpop.f32.mrf.mxu3 }
 0x397   : > { %7939 = vst [vmem:[#allocation18_spill] sm:$0xff] %v7353_v61  ;;  %v7355_v19 = vpop.f32.mrf.mxu0  ;;  %3438 = vmatmul.bf16.gmra.mxu2 %v5386_v8  ;;  %v5622_v8 = vor.u32 %v6043_v28, %v5619_v3  ;;  %v7948_v28 = vld [vmem:[#allocation24_spill] sm:$0xff] }
 0x398   : > { %7940 = vst [vmem:[#allocation74_spill] sm:$0xff] %v7355_v19  ;;  %v6027_v19 = vld [vmem:[#allocation9 + $0x34] sm:$0xf] }
 0x399   : > { %3959 = vmatpush.bf16.msra.mxu1 %v5622_v8 }
 0x39a   : > { %3904 = vmatmul.bf16.gmra.mxu0 %v7941_v27  ;;  %v2609_v45 = vpop.f32.mrf.mxu2  ;;  %v5747_v27 = vld [vmem:[#allocation9 + $0x38] sm:$0xf0] }
 0x39b   : > { %v2610_v21 = vadd.f32 %v2609_v45, %v7217_v54  ;;  %v5750_v61 = vor.u32 %v6027_v19, %v5747_v27 }
 0x39d   : > { %v7359_v25 = vadd.f32 %v2698_v59, %v2610_v21  ;;  %4306 = vmatpush.bf16.msra.mxu0 %v5750_v61  ;;  %v5398_v21 = vor.u32 %v5972_v44, %v5397_v15  ;;  %v7377_v44 = vpop.f32.mrf.mxu1 }
 0x39e   : > { %v2700_v58 = vpop.f32.mrf.mxu3 }
 0x39f   : > { %v7361_v2 = vpop.f32.mrf.mxu0 }
 0x3a2   : > { %v2611_v13 = vpop.f32.mrf.mxu2 }
 0x3a3   : > { %v2612_v54 = vadd.f32 %v2611_v13, %v7225_v23  ;;  %3820 = vmatmul.bf16.gmra.mxu3 %v7942_v62 }
 0x3a5   : > { %v7365_v51 = vadd.f32 %v2700_v58, %v2612_v54  ;;  %v5975_v58 = vld [vmem:[#allocation2 + $0x100] sm:$0xf0] }
 0x3a6   : > { %v2703_v59 = vpop.f32.mrf.mxu3  ;;  %v5410_v8 = vor.u32 %v5975_v58, %v5409_v60 }
 0x3a7   : > { %7943 = vst [vmem:[#allocation19_spill] sm:$0xff] %v7365_v51  ;;  %v7367_v45 = vpop.f32.mrf.mxu0  ;;  %3443 = vmatmul.bf16.gmra.mxu2 %v5398_v21  ;;  %v6026_v51 = vld [vmem:[#allocation9 + $0x24] sm:$0xf0] }
 0x3a8   : > { %7944 = vst [vmem:[#allocation75_spill] sm:$0xff] %v7367_v45  ;;  %v5675_v45 = vld [vmem:[#allocation11 + $0xa8] sm:$0xf0] }
 0x3aa   : > { %3909 = vmatmul.bf16.gmra.mxu0 %v7945_v47  ;;  %v2614_v19 = vpop.f32.mrf.mxu2  ;;  %v5737_v47 = vld [vmem:[#allocation9 + $0x20] sm:$0xf] }
 0x3ab   : > { %v2615_v27 = vadd.f32 %v2614_v19, %v7233_v12 }
 0x3ad   : > { %v7373_v7 = vadd.f32 %v2703_v59, %v2615_v27  ;;  %v7950_v59 = vld [vmem:[#allocation44_spill] sm:$0xff] }
 0x3ae   : > { %v2705_v23 = vpop.f32.mrf.mxu3  ;;  %v3321_v19 = vadd.f32 %v7279_v26, %v7950_v59  ;;  %v7951_v27 = vld [vmem:[#allocation36_spill] sm:$0xff]  ;;  %v5611_v26 = vld [vmem:[#allocation11 + $0x28] sm:$0xf0] }
 0x3af   : > { %7946 = vst [vmem:[#allocation76_spill] sm:$0xff] %v7373_v7  ;;  %v7375_v13 = vpop.f32.mrf.mxu0  ;;  %v6057_v7 = vld [vmem:[#allocation11 + $0xa4] sm:$0xf] }
 0x3b0   : > { %7947 = vst [vmem:[#allocation77_spill] sm:$0xff] %v7375_v13 }
 0x3b2   : > { %v2616_v61 = vpop.f32.mrf.mxu2 }
 0x3b3   : > { %v2617_v15 = vadd.f32 %v2616_v61, %v7241_v43  ;;  %3825 = vmatmul.bf16.gmra.mxu3 %v7948_v28  ;;  %v5678_v61 = vor.u32 %v6057_v7, %v5675_v45  ;;  %v3323_v45 = vadd.f32 %v7289_v49, %v7158_v0  ;;  %v3326_v49 = vadd.f32 %v7298_v32, %v7166_v9  ;;  %v5981_v9 = vld [vmem:[#allocation2 + $0x130] sm:$0xf0] }
 0x3b5   : > { %v7381_v3 = vadd.f32 %v2705_v23, %v2617_v15  ;;  %v5738_v23 = vor.u32 %v6026_v51, %v5737_v47  ;;  %v7388_v15 = vpop.f32.mrf.mxu1  ;;  %4049 = vmatpush.bf16.msra.mxu2 %v5678_v61  ;;  %v5421_v47 = vld [vmem:[#allocation2 + $0x110] sm:$0xf] }
 0x3b6   : > { %v3786_v54 = vpop.f32.mrf.mxu3 }
 0x3b7   : > { %v3875_v21 = vpop.f32.mrf.mxu0  ;;  %3448 = vmatmul.bf16.gmra.mxu2 %v5410_v8  ;;  %4218 = vmatpush.bf16.msra.mxu3 %v5738_v23 }
 0x3b8   : > { %v7383_v12 = vadd.f32 %v3875_v21, %v3786_v54  ;;  %v6041_v54 = vld [vmem:[#allocation11 + $0x24] sm:$0xf] }
 0x3b9   : > { %v5614_v59 = vor.u32 %v6041_v54, %v5611_v26 }
 0x3ba   : > { %7949 = vst [vmem:[#allocation24_spill] sm:$0xff] %v7383_v12  ;;  %3914 = vmatmul.bf16.gmra.mxu0 %v7951_v27  ;;  %v3409_v13 = vpop.f32.mrf.mxu2  ;;  %v6025_v27 = vld [vmem:[#allocation9 + $0x24] sm:$0xf]  ;;  %v5739_v12 = vld [vmem:[#allocation9 + $0x28] sm:$0xf0] }
 0x3bb   : > { %v3410_v43 = vadd.f32 %v3409_v13, %v3321_v19  ;;  %v5742_v7 = vor.u32 %v6025_v27, %v5739_v12  ;;  %v5978_v13 = vld [vmem:[#allocation2 + $0x118] sm:$0xf0]  ;;  %3960 = vmatpush.bf16.msra.mxu1 %v5614_v59  ;;  %v7953_v19 = vld [vmem:[#allocation27_spill] sm:$0xff]  ;;  %v7955_v27 = vld [vmem:[#allocation37_spill] sm:$0xff] }
 0x3bc   : > { %v5422_v61 = vor.u32 %v5978_v13, %v5421_v47 }
 0x3bd   : > { %v3489_v60 = vadd.f32 %v3410_v43, %v7156_v10  ;;  %4307 = vmatpush.bf16.msra.mxu0 %v5742_v7 }
 0x3be   : > { %v3788_v58 = vpop.f32.mrf.mxu3 }
 0x3bf   : > { %v3877_v8 = vpop.f32.mrf.mxu0 }
 0x3c0   : > { %v7391_v21 = vadd.f32 %v3877_v8, %v3788_v58  ;;  %v7397_v58 = vpop.f32.mrf.mxu1  ;;  %v3521_v8 = vmax.f32 %v3489_v60, 0.0  ;;  %v7958_v60 = vld [vmem:[#allocation46_spill] sm:$0xff] }
 0x3c2   : > { %7952 = vst [vmem:[#allocation44_spill] sm:$0xff] %v7391_v21  ;;  %v3411_v51 = vpop.f32.mrf.mxu2  ;;  %v5729_v21 = vld [vmem:[#allocation9 + $0x10] sm:$0xf] }
 0x3c3   : > { %v3412_v10 = vadd.f32 %v3411_v51, %v3323_v45  ;;  %3830 = vmatmul.bf16.gmra.mxu3 %v7953_v19 }
 0x3c5   : > { %v3490_v43 = vadd.f32 %v3412_v10, %v7164_v33  ;;  %v7956_v33 = vld [vmem:[#allocation45_spill] sm:$0xff]  ;;  %v3328_v10 = vadd.f32 %v7307_v34, %v7958_v60 }
 0x3c6   : > { %v3791_v23 = vpop.f32.mrf.mxu3 }
 0x3c7   : > { %v3522_v54 = vmax.f32 %v3490_v43, 0.0  ;;  %v3880_v26 = vpop.f32.mrf.mxu0  ;;  %3453 = vmatmul.bf16.gmra.mxu2 %v5422_v61 }
 0x3c8   : > { %v7399_v0 = vadd.f32 %v3880_v26, %v3791_v23  ;;  %v7411_v43 = vpop.f32.mrf.mxu1  ;;  %v5433_v23 = vld [vmem:[#allocation2 + $0x128] sm:$0xf] }
 0x3c9   : > { %v7403_v12 = vpack.c.bf16 %v3522_v54, %v3521_v8  ;;  %v7959_v8 = vld [vmem:[#allocation30_spill] sm:$0xff]  ;;  %v7960_v54 = vld [vmem:[#allocation47_spill] sm:$0xff] }
 0x3ca   : > { %7954 = vst [vmem:[#allocation27_spill] sm:$0xff] %v7399_v0  ;;  %3919 = vmatmul.bf16.gmra.mxu0 %v7955_v27  ;;  %v3414_v59 = vpop.f32.mrf.mxu2  ;;  %v5667_v0 = vld [vmem:[#allocation11 + $0x98] sm:$0xf0] }
 0x3cb   : > { %v3415_v45 = vadd.f32 %v3414_v59, %v3326_v49  ;;  %v5434_v49 = vor.u32 %v5981_v9, %v5433_v23  ;;  %v6024_v9 = vld [vmem:[#allocation9 + $0x14] sm:$0xf0] }
 0x3cd   : > { %v3491_v7 = vadd.f32 %v3415_v45, %v7956_v33 }
 0x3ce   : > { %v3793_v51 = vpop.f32.mrf.mxu3 }
 0x3cf   : > { %v3882_v47 = vpop.f32.mrf.mxu0  ;;  %v3523_v45 = vmax.f32 %v3491_v7, 0.0 }
 0x3d0   : > { %v7407_v13 = vadd.f32 %v3882_v47, %v3793_v51  ;;  %v7962_v47 = vld [vmem:[#allocation48_spill] sm:$0xff] }
 0x3d1   : > { %v3331_v34 = vadd.f32 %v7317_v17, %v7962_v47  ;;  %v6023_v47 = vld [vmem:[#allocation9 + $0x14] sm:$0xf] }
 0x3d2   : > { %7957 = vst [vmem:[#allocation45_spill] sm:$0xff] %v7407_v13  ;;  %v3416_v61 = vpop.f32.mrf.mxu2  ;;  %v7963_v13 = vld [vmem:[#allocation38_spill] sm:$0xff] }
 0x3d3   : > { %v3417_v32 = vadd.f32 %v3416_v61, %v3328_v10  ;;  %3835 = vmatmul.bf16.gmra.mxu3 %v7959_v8  ;;  %v6055_v61 = vld [vmem:[#allocation11 + $0x94] sm:$0xf] }
 0x3d4   : > { %v5670_v7 = vor.u32 %v6055_v61, %v5667_v0  ;;  %v7964_v61 = vld [vmem:[#allocation33_spill] sm:$0xff] }
 0x3d5   : > { %v3492_v26 = vadd.f32 %v3417_v32, %v7960_v54  ;;  %v7422_v32 = vpop.f32.mrf.mxu1  ;;  %v5730_v54 = vor.u32 %v6024_v9, %v5729_v21  ;;  %v5984_v21 = vld [vmem:[#allocation2 + $0x148] sm:$0xf0] }
 0x3d6   : > { %v3796_v59 = vpop.f32.mrf.mxu3  ;;  %4050 = vmatpush.bf16.msra.mxu2 %v5670_v7 }
 0x3d7   : > { %v3524_v33 = vmax.f32 %v3492_v26, 0.0  ;;  %v3885_v27 = vpop.f32.mrf.mxu0  ;;  %3458 = vmatmul.bf16.gmra.mxu2 %v5434_v49  ;;  %4219 = vmatpush.bf16.msra.mxu3 %v5730_v54  ;;  %v6039_v49 = vld [vmem:[#allocation11 + $0x14] sm:$0xf] }
 0x3d8   : > { %v7415_v51 = vadd.f32 %v3885_v27, %v3796_v59  ;;  %v5603_v59 = vld [vmem:[#allocation11 + $0x18] sm:$0xf0] }
 0x3d9   : > { %v7419_v60 = vpack.c.bf16 %v3524_v33, %v3523_v45  ;;  %v5606_v33 = vor.u32 %v6039_v49, %v5603_v59 }
 0x3da   : > { %7961 = vst [vmem:[#allocation46_spill] sm:$0xff] %v7415_v51  ;;  %3924 = vmatmul.bf16.gmra.mxu0 %v7963_v13  ;;  %v3419_v10 = vpop.f32.mrf.mxu2  ;;  %v5731_v13 = vld [vmem:[#allocation9 + $0x18] sm:$0xf0]  ;;  %v3333_v51 = vadd.f32 %v7327_v29, %v7190_v50  ;;  %v3336_v29 = vadd.f32 %v7335_v39, %v7198_v18  ;;  %v5987_v18 = vld [vmem:[#allocation2 + $0x160] sm:$0xf0] }
 0x3db   : > { %v3420_v23 = vadd.f32 %v3419_v10, %v3331_v34  ;;  %v5734_v34 = vor.u32 %v6023_v47, %v5731_v13  ;;  %v5445_v10 = vld [vmem:[#allocation2 + $0x140] sm:$0xf]  ;;  %3961 = vmatpush.bf16.msra.mxu1 %v5606_v33  ;;  %v7967_v47 = vld [vmem:[#allocation49_spill] sm:$0xff] }
 0x3dc   : > { %v5446_v9 = vor.u32 %v5984_v21, %v5445_v10  ;;  %v7969_v21 = vld [vmem:[#allocation50_spill] sm:$0xff] }
 0x3dd   : > { %v3493_v27 = vadd.f32 %v3420_v23, %v7188_v1  ;;  %4308 = vmatpush.bf16.msra.mxu0 %v5734_v34  ;;  %v7430_v23 = vpop.f32.mrf.mxu1 }
 0x3de   : > { %v3798_v26 = vpop.f32.mrf.mxu3 }
 0x3df   : > { %v3887_v17 = vpop.f32.mrf.mxu0 }
 0x3e0   : > { %v7425_v45 = vadd.f32 %v3887_v17, %v3798_v26  ;;  %v3525_v26 = vmax.f32 %v3493_v27, 0.0 }
 0x3e2   : > { %v3421_v0 = vpop.f32.mrf.mxu2 }
 0x3e3   : > { %v3422_v1 = vadd.f32 %v3421_v0, %v3333_v51  ;;  %3840 = vmatmul.bf16.gmra.mxu3 %v7964_v61  ;;  %v7966_v51 = vld [vmem:[#allocation39_spill] sm:$0xff] }
 0x3e5   : > { %v3494_v7 = vadd.f32 %v3422_v1, %v7196_v14  ;;  %v7441_v0 = vpop.f32.mrf.mxu1  ;;  %v3338_v1 = vadd.f32 %v7345_v46, %v7969_v21 }
 0x3e6   : > { %v3801_v54 = vpop.f32.mrf.mxu3 }
 0x3e7   : > { %v3526_v17 = vmax.f32 %v3494_v7, 0.0  ;;  %v3890_v49 = vpop.f32.mrf.mxu0  ;;  %3463 = vmatmul.bf16.gmra.mxu2 %v5446_v9  ;;  %v5457_v9 = vld [vmem:[#allocation2 + $0x158] sm:$0xf] }
 0x3e8   : > { %v7433_v50 = vadd.f32 %v3890_v49, %v3801_v54  ;;  %v7970_v54 = vld [vmem:[#allocation25_spill] sm:$0xff]  ;;  %v5458_v49 = vor.u32 %v5987_v18, %v5457_v9 }
 0x3e9   : > { %v7437_v13 = vpack.c.bf16 %v3526_v17, %v3525_v26  ;;  %v7971_v26 = vld [vmem:[#allocation51_spill] sm:$0xff]  ;;  %v5721_v9 = vld [vmem:[#allocation9] sm:$0xf] }
 0x3ea   : > { %7965 = vst [vmem:[#allocation30_spill] sm:$0xff] %v7433_v50  ;;  %3929 = vmatmul.bf16.gmra.mxu0 %v7966_v51  ;;  %v3424_v59 = vpop.f32.mrf.mxu2  ;;  %v3343_v50 = vadd.f32 %v7377_v44, %v7222_v40 }
 0x3eb   : > { %v3425_v33 = vadd.f32 %v3424_v59, %v3336_v29 }
 0x3ed   : > { %v3495_v34 = vadd.f32 %v3425_v33, %v7967_v47  ;;  %v7453_v46 = vpop.f32.mrf.mxu1 }
 0x3ee   : > { %v3803_v14 = vpop.f32.mrf.mxu3 }
 0x3ef   : > { %v3892_v27 = vpop.f32.mrf.mxu0  ;;  %v3527_v59 = vmax.f32 %v3495_v34, 0.0 }
 0x3f0   : > { %v7443_v10 = vadd.f32 %v3892_v27, %v3803_v14  ;;  %v7973_v14 = vld [vmem:[#allocation52_spill] sm:$0xff] }
 0x3f1   : > { %v3341_v27 = vadd.f32 %v7369_v53, %v7973_v14  ;;  %v5595_v14 = vld [vmem:[#allocation11 + $0x8] sm:$0xf0] }
 0x3f2   : > { %7968 = vst [vmem:[#allocation47_spill] sm:$0xff] %v7443_v10  ;;  %v3426_v7 = vpop.f32.mrf.mxu2  ;;  %v6053_v10 = vld [vmem:[#allocation11 + $0x84] sm:$0xf] }
 0x3f3   : > { %v3427_v39 = vadd.f32 %v3426_v7, %v3338_v1  ;;  %3845 = vmatmul.bf16.gmra.mxu3 %v7970_v54  ;;  %v7974_v1 = vld [vmem:[#allocation40_spill] sm:$0xff] }
 0x3f5   : > { %v3496_v17 = vadd.f32 %v3427_v39, %v7971_v26  ;;  %v5659_v39 = vld [vmem:[#allocation11 + $0x88] sm:$0xf0]  ;;  %v6022_v26 = vld [vmem:[#allocation9 + $0x4] sm:$0xf0] }
 0x3f6   : > { %v3806_v29 = vpop.f32.mrf.mxu3  ;;  %v5662_v34 = vor.u32 %v6053_v10, %v5659_v39  ;;  %v5990_v39 = vld [vmem:[#allocation2 + $0x178] sm:$0xf0] }
 0x3f7   : > { %v3528_v33 = vmax.f32 %v3496_v17, 0.0  ;;  %v3895_v47 = vpop.f32.mrf.mxu0  ;;  %3468 = vmatmul.bf16.gmra.mxu2 %v5458_v49  ;;  %v5722_v17 = vor.u32 %v6022_v26, %v5721_v9 }
 0x3f8   : > { %v7449_v51 = vadd.f32 %v3895_v47, %v3806_v29  ;;  %4051 = vmatpush.bf16.msra.mxu2 %v5662_v34  ;;  %v6037_v47 = vld [vmem:[#allocation11 + $0x4] sm:$0xf] }
 0x3f9   : > { %v7455_v21 = vpack.c.bf16 %v3528_v33, %v3527_v59  ;;  %4220 = vmatpush.bf16.msra.mxu3 %v5722_v17  ;;  %v5598_v33 = vor.u32 %v6037_v47, %v5595_v14 }
 0x3fa   : > { %7972 = vst [vmem:[#allocation48_spill] sm:$0xff] %v7449_v51  ;;  %3934 = vmatmul.bf16.gmra.mxu0 %v7974_v1  ;;  %v3429_v7 = vpop.f32.mrf.mxu2  ;;  %v6021_v1 = vld [vmem:[#allocation9 + $0x4] sm:$0xf]  ;;  %v5723_v51 = vld [vmem:[#allocation9 + $0x8] sm:$0xf0] }
 0x3fb   : > { %v3430_v18 = vadd.f32 %v3429_v7, %v3341_v27  ;;  %v5726_v27 = vor.u32 %v6021_v1, %v5723_v51  ;;  %v5469_v7 = vld [vmem:[#allocation2 + $0x170] sm:$0xf]  ;;  %3962 = vmatpush.bf16.msra.mxu1 %v5598_v33  ;;  %v3346_v51 = vadd.f32 %v7388_v15, %v7230_v41  ;;  %v5993_v41 = vld [vmem:[#allocation2 + $0x190] sm:$0xf0] }
 0x3fc   : > { %v5470_v26 = vor.u32 %v5990_v39, %v5469_v7  ;;  %v7977_v33 = vld [vmem:[#allocation53_spill] sm:$0xff]  ;;  %v7978_v7 = vld [vmem:[#allocation54_spill] sm:$0xff] }
 0x3fd   : > { %v3497_v49 = vadd.f32 %v3430_v18, %v7220_v6  ;;  %v7463_v6 = vpop.f32.mrf.mxu1  ;;  %v7975_v18 = vld [vmem:[#allocation28_spill] sm:$0xff]  ;;  %4309 = vmatpush.bf16.msra.mxu0 %v5726_v27  ;;  %v3348_v39 = vadd.f32 %v7397_v58, %v7978_v7 }
 0x3fe   : > { %v3808_v29 = vpop.f32.mrf.mxu3  ;;  %3963 = vmatmul.bf16.vlgmr.msra.gmra.mxu1 %v6605_v22  ;;  %v7981_v58 = vld [vmem:[#allocation56_spill] sm:$0xff] }
 0x3ff   : > { %v3897_v53 = vpop.f32.mrf.mxu0 }
 0x400   : > { %v7459_v59 = vadd.f32 %v3897_v53, %v3808_v29  ;;  %v3529_v29 = vmax.f32 %v3497_v49, 0.0 }
 0x402   : > { %v3431_v10 = vpop.f32.mrf.mxu2 }
 0x403   : > { %v3432_v9 = vadd.f32 %v3431_v10, %v3343_v50  ;;  %3850 = vmatmul.bf16.gmra.mxu3 %v7975_v18  ;;  %v7976_v50 = vld [vmem:[#allocation41_spill] sm:$0xff] }
 0x405   : > { %v3498_v34 = vadd.f32 %v3432_v9, %v7228_v52  ;;  %v7475_v52 = vpop.f32.mrf.mxu1 }
 0x406   : > { %v3811_v17 = vpop.f32.mrf.mxu3 }
 0x407   : > { %v3530_v53 = vmax.f32 %v3498_v34, 0.0  ;;  %v3900_v40 = vpop.f32.mrf.mxu0  ;;  %3473 = vmatmul.bf16.gmra.mxu2 %v5470_v26  ;;  %v5481_v34 = vld [vmem:[#allocation2 + $0x188] sm:$0xf]  ;;  %v7979_v26 = vld [vmem:[#allocation31_spill] sm:$0xff] }
 0x408   : > { %v7468_v44 = vadd.f32 %v3900_v40, %v3811_v17  ;;  %v7980_v17 = vld [vmem:[#allocation55_spill] sm:$0xff] }
 0x409   : > { %v7472_v1 = vpack.c.bf16 %v3530_v53, %v3529_v29  ;;  %v5482_v53 = vor.u32 %v5993_v41, %v5481_v34 }
 0x40a   : > { %3939 = vmatmul.bf16.gmra.mxu0 %v7976_v50  ;;  %v3434_v47 = vpop.f32.mrf.mxu2 }
 0x40b   : > { %v3435_v14 = vadd.f32 %v3434_v47, %v3346_v51 }
 0x40d   : > { %v3499_v22 = vadd.f32 %v3435_v14, %v7977_v33  ;;  %v7485_v51 = vpop.f32.mrf.mxu1 }
 0x40e   : > { %v3813_v27 = vpop.f32.mrf.mxu3  ;;  %3968 = vmatmul.bf16.gmra.mxu1 %v6615_v30 }
 0x40f   : > { %v3902_v49 = vpop.f32.mrf.mxu0  ;;  %v3531_v47 = vmax.f32 %v3499_v22, 0.0  ;;  %v5493_v22 = vld [vmem:[#allocation2 + $0x1a0] sm:$0xf] }
 0x410   : > { %v7478_v10 = vadd.f32 %v3902_v49, %v3813_v27  ;;  %v3351_v49 = vadd.f32 %v7411_v43, %v7981_v58 }
 0x412   : > { %v3436_v9 = vpop.f32.mrf.mxu2 }
 0x413   : > { %v3437_v15 = vadd.f32 %v3436_v9, %v3348_v39  ;;  %3855 = vmatmul.bf16.gmra.mxu3 %v7979_v26  ;;  %v7982_v39 = vld [vmem:[#allocation42_spill] sm:$0xff] }
 0x415   : > { %v3500_v29 = vadd.f32 %v3437_v15, %v7980_v17 }
 0x416   : > { %v3816_v40 = vpop.f32.mrf.mxu3 }
 0x417   : > { %v3532_v14 = vmax.f32 %v3500_v29, 0.0  ;;  %v3905_v33 = vpop.f32.mrf.mxu0  ;;  %3478 = vmatmul.bf16.gmra.mxu2 %v5482_v53  ;;  %v5996_v29 = vld [vmem:[#allocation2 + $0x1a8] sm:$0xf0]  ;;  %v3353_v53 = vadd.f32 %v7422_v32, %v7251_v16  ;;  %v3356_v16 = vadd.f32 %v7430_v23, %v7256_v57  ;;  %v7986_v23 = vld [vmem:[#allocation58_spill] sm:$0xff] }
 0x418   : > { %v7487_v27 = vadd.f32 %v3905_v33, %v3816_v40  ;;  %v7499_v40 = vpop.f32.mrf.mxu1  ;;  %v5494_v33 = vor.u32 %v5996_v29, %v5493_v22 }
 0x419   : > { %v7491_v7 = vpack.c.bf16 %v3532_v14, %v3531_v47  ;;  %v7983_v14 = vld [vmem:[#allocation34_spill] sm:$0xff] }
 0x41a   : > { %3944 = vmatmul.bf16.gmra.mxu0 %v7982_v39  ;;  %v3439_v9 = vpop.f32.mrf.mxu2 }
 0x41b   : > { %v3440_v34 = vadd.f32 %v3439_v9, %v3351_v49 }
 0x41d   : > { %v3501_v30 = vadd.f32 %v3440_v34, %v7249_v55 }
 0x41e   : > { %v3818_v41 = vpop.f32.mrf.mxu3  ;;  %3973 = vmatmul.bf16.gmra.mxu1 %v6625_v36 }
 0x41f   : > { %v3907_v15 = vpop.f32.mrf.mxu0  ;;  %v3533_v49 = vmax.f32 %v3501_v30, 0.0 }
 0x420   : > { %v7495_v17 = vadd.f32 %v3907_v15, %v3818_v41  ;;  %v7984_v15 = vld [vmem:[#allocation43_spill] sm:$0xff]  ;;  %v7511_v22 = vpop.f32.mrf.mxu1 }
 0x422   : > { %v3441_v43 = vpop.f32.mrf.mxu2 }
 0x423   : > { %v3442_v47 = vadd.f32 %v3441_v43, %v3353_v53  ;;  %3860 = vmatmul.bf16.gmra.mxu3 %v7983_v14 }
 0x425   : > { %v3502_v58 = vadd.f32 %v3442_v47, %v7254_v20  ;;  %v7985_v47 = vld [vmem:[#allocation57_spill] sm:$0xff] }
 0x426   : > { %v3821_v55 = vpop.f32.mrf.mxu3 }
 0x427   : > { %v3534_v9 = vmax.f32 %v3502_v58, 0.0  ;;  %v3910_v34 = vpop.f32.mrf.mxu0  ;;  %3483 = vmatmul.bf16.gmra.mxu2 %v5494_v33  ;;  %v3358_v33 = vadd.f32 %v7441_v0, %v7985_v47 }
 0x428   : > { %v7504_v41 = vadd.f32 %v3910_v34, %v3821_v55  ;;  %v7519_v57 = vpop.f32.mrf.mxu1 }
 0x429   : > { %v7508_v32 = vpack.c.bf16 %v3534_v9, %v3533_v49 }
 0x42a   : > { %3949 = vmatmul.bf16.gmra.mxu0 %v7984_v15  ;;  %v3444_v53 = vpop.f32.mrf.mxu2 }
 0x42b   : > { %v3445_v20 = vadd.f32 %v3444_v53, %v3356_v16  ;;  %v7987_v53 = vld [vmem:[#allocation20_spill] sm:$0xff] }
 0x42d   : > { %v3503_v36 = vadd.f32 %v3445_v20, %v7259_v56 }
 0x42e   : > { %v3823_v29 = vpop.f32.mrf.mxu3  ;;  %3978 = vmatmul.bf16.gmra.mxu1 %v6635_v42 }
 0x42f   : > { %v3912_v30 = vpop.f32.mrf.mxu0  ;;  %v3535_v34 = vmax.f32 %v3503_v36, 0.0 }
 0x430   : > { %v7514_v43 = vadd.f32 %v3912_v30, %v3823_v29  ;;  %v7988_v29 = vld [vmem:[#allocation59_spill] sm:$0xff] }
 0x431   : > { %v3361_v0 = vadd.f32 %v7453_v46, %v7988_v29 }
 0x432   : > { %v3446_v58 = vpop.f32.mrf.mxu2 }
 0x433   : > { %v3447_v55 = vadd.f32 %v3446_v58, %v3358_v33  ;;  %4221 = vmatmul.bf16.vlgmr.msra.gmra.mxu3 %v7403_v12 }
 0x435   : > { %v3504_v49 = vadd.f32 %v3447_v55, %v7986_v23  ;;  %v7532_v55 = vpop.f32.mrf.mxu1 }
 0x436   : > { %v3826_v9 = vpop.f32.mrf.mxu3 }
 0x437   : > { %v3536_v56 = vmax.f32 %v3504_v49, 0.0  ;;  %v3915_v16 = vpop.f32.mrf.mxu0  ;;  %4052 = vmatmul.bf16.vlgmr.msra.gmra.mxu2 %v7987_v53  ;;  %v3363_v49 = vadd.f32 %v7463_v6, %v7273_v35  ;;  %v7989_v53 = vld [vmem:[#allocation21_spill] sm:$0xff] }
 0x438   : > { %v7524_v20 = vadd.f32 %v3915_v16, %v3826_v9 }
 0x439   : > { %v7528_v30 = vpack.c.bf16 %v3536_v56, %v3535_v34 }
 0x43a   : > { %4310 = vmatmul.bf16.vlgmr.msra.gmra.mxu0 %v7403_v12  ;;  %v3449_v47 = vpop.f32.mrf.mxu2 }
 0x43b   : > { %v3450_v33 = vadd.f32 %v3449_v47, %v3361_v0  ;;  %v7990_v0 = vld [vmem:[#allocation60_spill] sm:$0xff] }
 0x43c   : > { %v3366_v47 = vadd.f32 %v7475_v52, %v7990_v0 }
 0x43d   : > { %v3505_v58 = vadd.f32 %v3450_v33, %v7271_v63  ;;  %v7546_v35 = vpop.f32.mrf.mxu1 }
 0x43e   : > { %v3828_v42 = vpop.f32.mrf.mxu3  ;;  %3983 = vmatmul.bf16.gmra.mxu1 %v6595_v11  ;;  %v7991_v11 = vld [vmem:[#allocation61_spill] sm:$0xff] }
 0x43f   : > { %v3917_v36 = vpop.f32.mrf.mxu0  ;;  %v3537_v34 = vmax.f32 %v3505_v58, 0.0 }
 0x440   : > { %v7534_v23 = vadd.f32 %v3917_v36, %v3828_v42 }
 0x442   : > { %v3451_v9 = vpop.f32.mrf.mxu2 }
 0x443   : > { %v3452_v16 = vadd.f32 %v3451_v9, %v3363_v49  ;;  %4226 = vmatmul.bf16.gmra.mxu3 %v7419_v60  ;;  %v7992_v9 = vld [vmem:[#allocation62_spill] sm:$0xff] }
 0x445   : > { %v3506_v46 = vadd.f32 %v3452_v16, %v7277_v24  ;;  %v3368_v16 = vadd.f32 %v7485_v51, %v7992_v9 }
 0x446   : > { %v3831_v12 = vpop.f32.mrf.mxu3 }
 0x447   : > { %v3538_v63 = vmax.f32 %v3506_v46, 0.0  ;;  %v3920_v56 = vpop.f32.mrf.mxu0  ;;  %4057 = vmatmul.bf16.gmra.mxu2 %v7989_v53 }
 0x448   : > { %v7542_v29 = vadd.f32 %v3920_v56, %v3831_v12  ;;  %v7556_v12 = vpop.f32.mrf.mxu1 }
 0x449   : > { %v7548_v6 = vpack.c.bf16 %v3538_v63, %v3537_v34  ;;  %v7993_v34 = vld [vmem:[#allocation63_spill] sm:$0xff] }
 0x44a   : > { %4315 = vmatmul.bf16.gmra.mxu0 %v7419_v60  ;;  %v3454_v24 = vpop.f32.mrf.mxu2 }
 0x44b   : > { %v3455_v33 = vadd.f32 %v3454_v24, %v3366_v47  ;;  %v7994_v47 = vld [vmem:[#allocation22_spill] sm:$0xff] }
 0x44d   : > { %v3507_v42 = vadd.f32 %v3455_v33, %v7991_v11  ;;  %v7995_v33 = vld [vmem:[#allocation64_spill] sm:$0xff] }
 0x44e   : > { %v3833_v58 = vpop.f32.mrf.mxu3  ;;  %3988 = vmatmul.bf16.gmra.mxu1 %v7932_v48  ;;  %v3371_v51 = vadd.f32 %v7499_v40, %v7995_v33  ;;  %v7997_v33 = vld [vmem:[#allocation65_spill] sm:$0xff] }
 0x44f   : > { %v3922_v36 = vpop.f32.mrf.mxu0  ;;  %v3539_v56 = vmax.f32 %v3507_v42, 0.0 }
 0x450   : > { %v7552_v49 = vadd.f32 %v3922_v36, %v3833_v58  ;;  %v7569_v9 = vpop.f32.mrf.mxu1 }
 0x452   : > { %v3456_v46 = vpop.f32.mrf.mxu2 }
 0x453   : > { %v3457_v52 = vadd.f32 %v3456_v46, %v3368_v16  ;;  %4231 = vmatmul.bf16.gmra.mxu3 %v7437_v13 }
 0x455   : > { %v3508_v63 = vadd.f32 %v3457_v52, %v7993_v34  ;;  %v3373_v52 = vadd.f32 %v7511_v22, %v7303_v31  ;;  %v3376_v31 = vadd.f32 %v7519_v57, %v7997_v33  ;;  %v8000_v57 = vld [vmem:[#allocation68_spill] sm:$0xff] }
 0x456   : > { %v3836_v60 = vpop.f32.mrf.mxu3 }
 0x457   : > { %v3540_v53 = vmax.f32 %v3508_v63, 0.0  ;;  %v3925_v0 = vpop.f32.mrf.mxu0  ;;  %4062 = vmatmul.bf16.gmra.mxu2 %v7994_v47 }
 0x458   : > { %v7562_v24 = vadd.f32 %v3925_v0, %v3836_v60  ;;  %v3387_v60 = vpop.f32.mrf.mxu1  ;;  %v7996_v0 = vld [vmem:[#allocation23_spill] sm:$0xff] }
 0x459   : > { %v7566_v11 = vpack.c.bf16 %v3540_v53, %v3539_v56 }
 0x45a   : > { %4320 = vmatmul.bf16.gmra.mxu0 %v7437_v13  ;;  %v3459_v58 = vpop.f32.mrf.mxu2 }
 0x45b   : > { %v3460_v36 = vadd.f32 %v3459_v58, %v3371_v51  ;;  %v7998_v58 = vld [vmem:[#allocation66_spill] sm:$0xff] }
 0x45d   : > { %v3509_v48 = vadd.f32 %v3460_v36, %v7301_v5 }
 0x45e   : > { %v3838_v42 = vpop.f32.mrf.mxu3  ;;  %3993 = vmatmul.bf16.gmra.mxu1 %v7938_v37 }
 0x45f   : > { %v3927_v16 = vpop.f32.mrf.mxu0  ;;  %v3541_v56 = vmax.f32 %v3509_v48, 0.0 }
 0x460   : > { %v7572_v46 = vadd.f32 %v3927_v16, %v3838_v42  ;;  %v7999_v16 = vld [vmem:[#allocation67_spill] sm:$0xff] }
 0x462   : > { %v3461_v34 = vpop.f32.mrf.mxu2 }
 0x463   : > { %v3462_v63 = vadd.f32 %v3461_v34, %v3373_v52  ;;  %4236 = vmatmul.bf16.gmra.mxu3 %v7455_v21  ;;  %v3378_v52 = vadd.f32 %v7532_v55, %v7999_v16  ;;  %v3390_v34 = vpop.f32.mrf.mxu1 }
 0x465   : > { %v3510_v40 = vadd.f32 %v3462_v63, %v7309_v4 }
 0x466   : > { %v3841_v13 = vpop.f32.mrf.mxu3 }
 0x467   : > { %v3542_v53 = vmax.f32 %v3510_v40, 0.0  ;;  %v3930_v5 = vpop.f32.mrf.mxu0  ;;  %4067 = vmatmul.bf16.gmra.mxu2 %v7996_v0  ;;  %v8001_v0 = vld [vmem:[#allocation26_spill] sm:$0xff] }
 0x468   : > { %v7580_v47 = vadd.f32 %v3930_v5, %v3841_v13 }
 0x469   : > { %v7584_v22 = vpack.c.bf16 %v3542_v53, %v3541_v56 }
 0x46a   : > { %4325 = vmatmul.bf16.gmra.mxu0 %v7455_v21  ;;  %v3464_v51 = vpop.f32.mrf.mxu2 }
 0x46b   : > { %v3465_v4 = vadd.f32 %v3464_v51, %v3376_v31  ;;  %v8002_v31 = vld [vmem:[#allocation69_spill] sm:$0xff] }
 0x46c   : > { %v3381_v55 = vadd.f32 %v7546_v35, %v8002_v31  ;;  %v8006_v31 = vld [vmem:[#allocation71_spill] sm:$0xff] }
 0x46d   : > { %v3511_v37 = vadd.f32 %v3465_v4, %v7998_v58  ;;  %v3392_v58 = vpop.f32.mrf.mxu1 }
 0x46e   : > { %v3843_v36 = vpop.f32.mrf.mxu3  ;;  %3998 = vmatmul.bf16.gmra.mxu1 %v7942_v62 }
 0x46f   : > { %v3932_v42 = vpop.f32.mrf.mxu0  ;;  %v3543_v56 = vmax.f32 %v3511_v37, 0.0 }
 0x470   : > { %v7588_v48 = vadd.f32 %v3932_v42, %v3843_v36 }
 0x472   : > { %v3466_v63 = vpop.f32.mrf.mxu2 }
 0x473   : > { %v3467_v40 = vadd.f32 %v3466_v63, %v3378_v52  ;;  %4241 = vmatmul.bf16.gmra.mxu3 %v7472_v1  ;;  %v8003_v52 = vld [vmem:[#allocation70_spill] sm:$0xff] }
 0x474   : > { %v3383_v63 = vadd.f32 %v7556_v12, %v8003_v52  ;;  %v3386_v12 = vadd.f32 %v7569_v9, %v8006_v31  ;;  %v8009_v9 = vld [vmem:[#allocation18_spill] sm:$0xff] }
 0x475   : > { %v3512_v13 = vadd.f32 %v3467_v40, %v8000_v57  ;;  %v3395_v35 = vpop.f32.mrf.mxu1 }
 0x476   : > { %v3846_v21 = vpop.f32.mrf.mxu3 }
 0x477   : > { %v3544_v53 = vmax.f32 %v3512_v13, 0.0  ;;  %v3935_v5 = vpop.f32.mrf.mxu0  ;;  %4072 = vmatmul.bf16.gmra.mxu2 %v8001_v0  ;;  %v8004_v13 = vld [vmem:[#allocation17_spill] sm:$0xff] }
 0x478   : > { %v7596_v33 = vadd.f32 %v3935_v5, %v3846_v21  ;;  %v8005_v5 = vld [vmem:[#allocation29_spill] sm:$0xff] }
 0x479   : > { %v7600_v51 = vpack.c.bf16 %v3544_v53, %v3543_v56 }
 0x47a   : > { %4330 = vmatmul.bf16.gmra.mxu0 %v7472_v1  ;;  %v3469_v4 = vpop.f32.mrf.mxu2 }
 0x47b   : > { %v3470_v36 = vadd.f32 %v3469_v4, %v3381_v55 }
 0x47d   : > { %v3513_v62 = vadd.f32 %v3470_v36, %v7331_v38  ;;  %v3397_v52 = vpop.f32.mrf.mxu1 }
 0x47e   : > { %v3848_v42 = vpop.f32.mrf.mxu3  ;;  %4003 = vmatmul.bf16.gmra.mxu1 %v7948_v28 }
 0x47f   : > { %v3937_v37 = vpop.f32.mrf.mxu0  ;;  %v3545_v56 = vmax.f32 %v3513_v62, 0.0 }
 0x480   : > { %v7604_v16 = vadd.f32 %v3937_v37, %v3848_v42  ;;  %v8007_v42 = vld [vmem:[#allocation72_spill] sm:$0xff] }
 0x482   : > { %v3471_v40 = vpop.f32.mrf.mxu2 }
 0x483   : > { %v3472_v57 = vadd.f32 %v3471_v40, %v3383_v63  ;;  %4246 = vmatmul.bf16.gmra.mxu3 %v7491_v7  ;;  %v8008_v40 = vld [vmem:[#allocation73_spill] sm:$0xff] }
 0x485   : > { %v3514_v21 = vadd.f32 %v3472_v57, %v8004_v13  ;;  %v3388_v57 = vadd.f32 %v3387_v60, %v8008_v40  ;;  %v3964_v31 = vpop.f32.mrf.mxu1 }
 0x486   : > { %v3851_v1 = vpop.f32.mrf.mxu3 }
 0x487   : > { %v3546_v53 = vmax.f32 %v3514_v21, 0.0  ;;  %v3940_v38 = vpop.f32.mrf.mxu0  ;;  %4077 = vmatmul.bf16.gmra.mxu2 %v8005_v5  ;;  %v8010_v5 = vld [vmem:[#allocation32_spill] sm:$0xff] }
 0x488   : > { %v7612_v0 = vadd.f32 %v3940_v38, %v3851_v1 }
 0x489   : > { %v7616_v55 = vpack.c.bf16 %v3546_v53, %v3545_v56 }
 0x48a   : > { %4335 = vmatmul.bf16.gmra.mxu0 %v7491_v7  ;;  %v3474_v4 = vpop.f32.mrf.mxu2 }
 0x48b   : > { %v3475_v36 = vadd.f32 %v3474_v4, %v3386_v12  ;;  %v8011_v4 = vld [vmem:[#allocation74_spill] sm:$0xff] }
 0x48d   : > { %v3515_v37 = vadd.f32 %v3475_v36, %v8007_v42  ;;  %v3391_v36 = vadd.f32 %v3390_v34, %v8011_v4  ;;  %v8012_v34 = vld [vmem:[#allocation19_spill] sm:$0xff] }
 0x48e   : > { %v3853_v28 = vpop.f32.mrf.mxu3  ;;  %4008 = vmatmul.bf16.gmra.mxu1 %v7953_v19  ;;  %v8014_v4 = vld [vmem:[#allocation75_spill] sm:$0xff] }
 0x48f   : > { %v3942_v62 = vpop.f32.mrf.mxu0  ;;  %v3547_v56 = vmax.f32 %v3515_v37, 0.0  ;;  %v3966_v37 = vpop.f32.mrf.mxu1 }
 0x490   : > { %v7620_v63 = vadd.f32 %v3942_v62, %v3853_v28 }
 0x492   : > { %v3476_v13 = vpop.f32.mrf.mxu2 }
 0x493   : > { %v3477_v21 = vadd.f32 %v3476_v13, %v3388_v57  ;;  %4251 = vmatmul.bf16.gmra.mxu3 %v7508_v32  ;;  %v3393_v13 = vadd.f32 %v3392_v58, %v7361_v2 }
 0x495   : > { %v3516_v1 = vadd.f32 %v3477_v21, %v8009_v9 }
 0x496   : > { %v3856_v7 = vpop.f32.mrf.mxu3 }
 0x497   : > { %v3548_v53 = vmax.f32 %v3516_v1, 0.0  ;;  %v3945_v38 = vpop.f32.mrf.mxu0  ;;  %4082 = vmatmul.bf16.gmra.mxu2 %v8010_v5 }
 0x498   : > { %v7627_v12 = vadd.f32 %v3945_v38, %v3856_v7  ;;  %v3969_v38 = vpop.f32.mrf.mxu1 }
 0x499   : > { %v7630_v60 = vpack.c.bf16 %v3548_v53, %v3547_v56 }
 0x49a   : > { %4340 = vmatmul.bf16.gmra.mxu0 %v7508_v32  ;;  %v3479_v42 = vpop.f32.mrf.mxu2 }
 0x49b   : > { %v3480_v28 = vadd.f32 %v3479_v42, %v3391_v36  ;;  %v3396_v36 = vadd.f32 %v3395_v35, %v8014_v4  ;;  %v8018_v4 = vld [vmem:[#allocation36_spill] sm:$0xff] }
 0x49d   : > { %v3517_v62 = vadd.f32 %v3480_v28, %v7359_v25  ;;  %v8013_v25 = vld [vmem:[#allocation35_spill] sm:$0xff]  ;;  %v8015_v28 = vld [vmem:[#allocation76_spill] sm:$0xff] }
 0x49e   : > { %v3858_v19 = vpop.f32.mrf.mxu3  ;;  %4013 = vmatmul.bf16.gmra.mxu1 %v7959_v8 }
 0x49f   : > { %v3947_v40 = vpop.f32.mrf.mxu0  ;;  %v3549_v7 = vmax.f32 %v3517_v62, 0.0 }
 0x4a0   : > { %v7634_v57 = vadd.f32 %v3947_v40, %v3858_v19  ;;  %v3971_v62 = vpop.f32.mrf.mxu1 }
 0x4a2   : > { %v3481_v21 = vpop.f32.mrf.mxu2 }
 0x4a3   : > { %v3482_v9 = vadd.f32 %v3481_v21, %v3393_v13  ;;  %4256 = vmatmul.bf16.gmra.mxu3 %v7528_v30  ;;  %v8016_v21 = vld [vmem:[#allocation77_spill] sm:$0xff] }
 0x4a5   : > { %v3518_v1 = vadd.f32 %v3482_v9, %v8012_v34  ;;  %v3398_v9 = vadd.f32 %v3397_v52, %v8016_v21 }
 0x4a6   : > { %v3861_v32 = vpop.f32.mrf.mxu3 }
 0x4a7   : > { %v3550_v56 = vmax.f32 %v3518_v1, 0.0  ;;  %v3950_v53 = vpop.f32.mrf.mxu0  ;;  %4087 = vmatmul.bf16.gmra.mxu2 %v8013_v25 }
 0x4a8   : > { %v7641_v5 = vadd.f32 %v3950_v53, %v3861_v32  ;;  %v8017_v53 = vld [vmem:[#allocation24_spill] sm:$0xff] }
 0x4a9   : > { %v7644_v2 = vpack.c.bf16 %v3550_v56, %v3549_v7 }
 0x4aa   : > { %4345 = vmatmul.bf16.gmra.mxu0 %v7528_v30  ;;  %v3484_v58 = vpop.f32.mrf.mxu2 }
 0x4ab   : > { %v3485_v42 = vadd.f32 %v3484_v58, %v3396_v36  ;;  %v3974_v36 = vpop.f32.mrf.mxu1 }
 0x4ad   : > { %v3519_v19 = vadd.f32 %v3485_v42, %v8015_v28 }
 0x4ae   : > { %v3863_v8 = vpop.f32.mrf.mxu3  ;;  %4018 = vmatmul.bf16.gmra.mxu1 %v7964_v61 }
 0x4af   : > { %v3952_v40 = vpop.f32.mrf.mxu0  ;;  %v3551_v32 = vmax.f32 %v3519_v19, 0.0 }
 0x4b0   : > { %v7648_v13 = vadd.f32 %v3952_v40, %v3863_v8  ;;  %v8019_v40 = vld [vmem:[#allocation44_spill] sm:$0xff] }
 0x4b2   : > { %v3486_v34 = vpop.f32.mrf.mxu2 }
 0x4b3   : > { %v3487_v1 = vadd.f32 %v3486_v34, %v3398_v9  ;;  %4261 = vmatmul.bf16.gmra.mxu3 %v7548_v6  ;;  %v3976_v9 = vpop.f32.mrf.mxu1 }
 0x4b5   : > { %v3520_v35 = vadd.f32 %v3487_v1, %v7381_v3 }
 0x4b6   : > { %v4222_v30 = vpop.f32.mrf.mxu3 }
 0x4b7   : > { %v3552_v7 = vmax.f32 %v3520_v35, 0.0  ;;  %v4311_v56 = vpop.f32.mrf.mxu0  ;;  %v4223_v25 = vadd.f32 %v4222_v30, %v8017_v53  ;;  %4092 = vmatmul.bf16.gmra.mxu2 %v8018_v4  ;;  %v8021_v53 = vld [vmem:[#allocation37_spill] sm:$0xff] }
 0x4b9   : > { %v4391_v58 = vmax.f32 %v4223_v25, 0.0  ;;  %v7656_v52 = vpack.c.bf16 %v3552_v7, %v3551_v32  ;;  %v8020_v7 = vld [vmem:[#allocation27_spill] sm:$0xff] }
 0x4ba   : > { %4350 = vmatmul.bf16.gmra.mxu0 %v7548_v6  ;;  %v4053_v42 = vpop.f32.mrf.mxu2 }
 0x4bb   : > { %4455 = vst [vmem:[%s7661_s24] sm:$0xff] %v4391_v58  ;;  %v4054_v3 = vadd.f32 %v4053_v42, %v3964_v31  ;;  %v3979_v25 = vpop.f32.mrf.mxu1 }
 0x4bd   : > { %v4312_v61 = vadd.f32 %v4311_v56, %v4054_v3 }
 0x4be   : > { %v4224_v28 = vpop.f32.mrf.mxu3  ;;  %4023 = vmatmul.bf16.gmra.mxu1 %v7970_v54 }
 0x4bf   : > { %v4392_v19 = vmax.f32 %v4312_v61, 0.0  ;;  %v4313_v8 = vpop.f32.mrf.mxu0  ;;  %v4225_v21 = vadd.f32 %v4224_v28, %v8019_v40  ;;  %v8022_v28 = vld [vmem:[#allocation45_spill] sm:$0xff] }
 0x4c1   : > { %4456 = vst [vmem:[%s7661_s24 + $0x8] sm:$0xff] %v4392_v19  ;;  %v4393_v34 = vmax.f32 %v4225_v21, 0.0 }
 0x4c2   : > { %v4055_v6 = vpop.f32.mrf.mxu2 }
 0x4c3   : > { %4457 = vst [vmem:[%s7661_s24 + $0x10] sm:$0xff] %v4393_v34  ;;  %v4056_v1 = vadd.f32 %v4055_v6, %v3966_v37  ;;  %4266 = vmatmul.bf16.gmra.mxu3 %v7566_v11 }
 0x4c5   : > { %v4314_v35 = vadd.f32 %v4313_v8, %v4056_v1  ;;  %v3981_v8 = vpop.f32.mrf.mxu1 }
 0x4c6   : > { %v4227_v31 = vpop.f32.mrf.mxu3 }
 0x4c7   : > { %v4394_v30 = vmax.f32 %v4314_v35, 0.0  ;;  %v4316_v32 = vpop.f32.mrf.mxu0  ;;  %v4228_v56 = vadd.f32 %v4227_v31, %v8020_v7  ;;  %4097 = vmatmul.bf16.gmra.mxu2 %v8021_v53  ;;  %v8023_v35 = vld [vmem:[#allocation46_spill] sm:$0xff] }
 0x4c9   : > { %4458 = vst [vmem:[%s7661_s24 + $0x18] sm:$0xff] %v4394_v30  ;;  %v4395_v4 = vmax.f32 %v4228_v56, 0.0  ;;  %v8024_v30 = vld [vmem:[#allocation38_spill] sm:$0xff] }
 0x4ca   : > { %4355 = vmatmul.bf16.gmra.mxu0 %v7566_v11  ;;  %v4058_v37 = vpop.f32.mrf.mxu2 }
 0x4cb   : > { %4459 = vst [vmem:[%s7661_s24 + $0x20] sm:$0xff] %v4395_v4  ;;  %v4059_v58 = vadd.f32 %v4058_v37, %v3969_v38 }
 0x4cd   : > { %v4317_v42 = vadd.f32 %v4316_v32, %v4059_v58  ;;  %v3984_v32 = vpop.f32.mrf.mxu1 }
 0x4ce   : > { %v4229_v3 = vpop.f32.mrf.mxu3  ;;  %4028 = vmatmul.bf16.gmra.mxu1 %v7975_v18 }
 0x4cf   : > { %v4396_v54 = vmax.f32 %v4317_v42, 0.0  ;;  %v4318_v61 = vpop.f32.mrf.mxu0  ;;  %v4230_v19 = vadd.f32 %v4229_v3, %v8022_v28 }
 0x4d1   : > { %4460 = vst [vmem:[%s7661_s24 + $0x28] sm:$0xff] %v4396_v54  ;;  %v4397_v40 = vmax.f32 %v4230_v19, 0.0 }
 0x4d2   : > { %v4060_v21 = vpop.f32.mrf.mxu2 }
 0x4d3   : > { %4461 = vst [vmem:[%s7661_s24 + $0x30] sm:$0xff] %v4397_v40  ;;  %v4061_v34 = vadd.f32 %v4060_v21, %v3971_v62  ;;  %4271 = vmatmul.bf16.gmra.mxu3 %v7584_v22  ;;  %v8025_v40 = vld [vmem:[#allocation30_spill] sm:$0xff] }
 0x4d5   : > { %v4319_v11 = vadd.f32 %v4318_v61, %v4061_v34  ;;  %v3986_v42 = vpop.f32.mrf.mxu1 }
 0x4d6   : > { %v4232_v38 = vpop.f32.mrf.mxu3 }
 0x4d7   : > { %v4398_v6 = vmax.f32 %v4319_v11, 0.0  ;;  %v4321_v1 = vpop.f32.mrf.mxu0  ;;  %v4233_v31 = vadd.f32 %v4232_v38, %v8023_v35  ;;  %4102 = vmatmul.bf16.gmra.mxu2 %v8024_v30 }
 0x4d9   : > { %4462 = vst [vmem:[%s7661_s24 + $0x38] sm:$0xff] %v4398_v6  ;;  %v4399_v7 = vmax.f32 %v4233_v31, 0.0  ;;  %v8027_v31 = vld [vmem:[#allocation47_spill] sm:$0xff] }
 0x4da   : > { %4360 = vmatmul.bf16.gmra.mxu0 %v7584_v22  ;;  %v4063_v62 = vpop.f32.mrf.mxu2 }
 0x4db   : > { %4463 = vst [vmem:[%s7661_s24 + $0x40] sm:$0xff] %v4399_v7  ;;  %v4064_v56 = vadd.f32 %v4063_v62, %v3974_v36 }
 0x4dd   : > { %v4322_v53 = vadd.f32 %v4321_v1, %v4064_v56  ;;  %v3989_v34 = vpop.f32.mrf.mxu1 }
 0x4de   : > { %v4234_v4 = vpop.f32.mrf.mxu3  ;;  %4033 = vmatmul.bf16.gmra.mxu1 %v7979_v26 }
 0x4df   : > { %v4400_v18 = vmax.f32 %v4322_v53, 0.0  ;;  %v4323_v37 = vpop.f32.mrf.mxu0  ;;  %v4235_v58 = vadd.f32 %v4234_v4, %v7425_v45  ;;  %v8026_v45 = vld [vmem:[#allocation39_spill] sm:$0xff] }
 0x4e1   : > { %4464 = vst [vmem:[%s7661_s24 + $0x48] sm:$0xff] %v4400_v18  ;;  %v4401_v3 = vmax.f32 %v4235_v58, 0.0 }
 0x4e2   : > { %v4065_v54 = vpop.f32.mrf.mxu2 }
 0x4e3   : > { %4465 = vst [vmem:[%s7661_s24 + $0x50] sm:$0xff] %v4401_v3  ;;  %v4066_v61 = vadd.f32 %v4065_v54, %v3976_v9  ;;  %4276 = vmatmul.bf16.gmra.mxu3 %v7600_v51  ;;  %v8029_v3 = vld [vmem:[#allocation40_spill] sm:$0xff] }
 0x4e5   : > { %v4324_v22 = vadd.f32 %v4323_v37, %v4066_v61  ;;  %v3991_v7 = vpop.f32.mrf.mxu1  ;;  %v8028_v37 = vld [vmem:[#allocation48_spill] sm:$0xff] }
 0x4e6   : > { %v4237_v36 = vpop.f32.mrf.mxu3 }
 0x4e7   : > { %v4402_v28 = vmax.f32 %v4324_v22, 0.0  ;;  %v4326_v19 = vpop.f32.mrf.mxu0  ;;  %v4238_v21 = vadd.f32 %v4237_v36, %v8025_v40  ;;  %4107 = vmatmul.bf16.gmra.mxu2 %v8026_v45 }
 0x4e9   : > { %4466 = vst [vmem:[%s7661_s24 + $0x58] sm:$0xff] %v4402_v28  ;;  %v4403_v11 = vmax.f32 %v4238_v21, 0.0 }
 0x4ea   : > { %4365 = vmatmul.bf16.gmra.mxu0 %v7600_v51  ;;  %v4068_v9 = vpop.f32.mrf.mxu2 }
 0x4eb   : > { %4467 = vst [vmem:[%s7661_s24 + $0x60] sm:$0xff] %v4403_v11  ;;  %v4069_v38 = vadd.f32 %v4068_v9, %v3979_v25 }
 0x4ed   : > { %v4327_v6 = vadd.f32 %v4326_v19, %v4069_v38  ;;  %v3994_v54 = vpop.f32.mrf.mxu1 }
 0x4ee   : > { %v4239_v1 = vpop.f32.mrf.mxu3  ;;  %4038 = vmatmul.bf16.gmra.mxu1 %v7983_v14 }
 0x4ef   : > { %v4404_v26 = vmax.f32 %v4327_v6, 0.0  ;;  %v4328_v35 = vpop.f32.mrf.mxu0  ;;  %v4240_v30 = vadd.f32 %v4239_v1, %v8027_v31 }
 0x4f1   : > { %4468 = vst [vmem:[%s7661_s24 + $0x68] sm:$0xff] %v4404_v26  ;;  %v4405_v62 = vmax.f32 %v4240_v30, 0.0 }
 0x4f2   : > { %v4070_v56 = vpop.f32.mrf.mxu2 }
 0x4f3   : > { %4469 = vst [vmem:[%s7661_s24 + $0x70] sm:$0xff] %v4405_v62  ;;  %v4071_v53 = vadd.f32 %v4070_v56, %v3981_v8  ;;  %4281 = vmatmul.bf16.gmra.mxu3 %v7616_v55 }
 0x4f5   : > { %v4329_v51 = vadd.f32 %v4328_v35, %v4071_v53  ;;  %v3996_v21 = vpop.f32.mrf.mxu1 }
 0x4f6   : > { %v4242_v25 = vpop.f32.mrf.mxu3 }
 0x4f7   : > { %v4406_v4 = vmax.f32 %v4329_v51, 0.0  ;;  %v4331_v18 = vpop.f32.mrf.mxu0  ;;  %v4243_v58 = vadd.f32 %v4242_v25, %v8028_v37  ;;  %4112 = vmatmul.bf16.gmra.mxu2 %v8029_v3 }
 0x4f9   : > { %4470 = vst [vmem:[%s7661_s24 + $0x78] sm:$0xff] %v4406_v4  ;;  %v4407_v61 = vmax.f32 %v4243_v58, 0.0 }
 0x4fa   : > { %4370 = vmatmul.bf16.gmra.mxu0 %v7616_v55  ;;  %v4073_v8 = vpop.f32.mrf.mxu2 }
 0x4fb   : > { %4471 = vst [vmem:[%s7661_s24 + $0x80] sm:$0xff] %v4407_v61  ;;  %v4074_v22 = vadd.f32 %v4073_v8, %v3984_v32 }
 0x4fd   : > { %v4332_v36 = vadd.f32 %v4331_v18, %v4074_v22  ;;  %v3999_v26 = vpop.f32.mrf.mxu1 }
 0x4fe   : > { %v4244_v28 = vpop.f32.mrf.mxu3 }
 0x4ff   : > { %v4408_v14 = vmax.f32 %v4332_v36, 0.0  ;;  %v4333_v19 = vpop.f32.mrf.mxu0  ;;  %v4245_v40 = vadd.f32 %v4244_v28, %v7459_v59 }
 0x501   : > { %4472 = vst [vmem:[%s7661_s24 + $0x88] sm:$0xff] %v4408_v14  ;;  %v4409_v45 = vmax.f32 %v4245_v40, 0.0 }
 0x502   : > { %v4075_v11 = vpop.f32.mrf.mxu2 }
 0x503   : > { %4473 = vst [vmem:[%s7661_s24 + $0x90] sm:$0xff] %v4409_v45  ;;  %v4076_v9 = vadd.f32 %v4075_v11, %v3986_v42  ;;  %4286 = vmatmul.bf16.gmra.mxu3 %v7630_v60 }
 0x505   : > { %v4334_v55 = vadd.f32 %v4333_v19, %v4076_v9  ;;  %v4001_v51 = vpop.f32.mrf.mxu1 }
 0x506   : > { %v4247_v38 = vpop.f32.mrf.mxu3 }
 0x507   : > { %v4410_v6 = vmax.f32 %v4334_v55, 0.0  ;;  %v4336_v32 = vpop.f32.mrf.mxu0  ;;  %v4248_v1 = vadd.f32 %v4247_v38, %v7468_v44  ;;  %4117 = vmatmul.bf16.gmra.mxu2 %v7976_v50 }
 0x509   : > { %4474 = vst [vmem:[%s7661_s24 + $0x98] sm:$0xff] %v4410_v6  ;;  %v4411_v59 = vmax.f32 %v4248_v1, 0.0 }
 0x50a   : > { %4375 = vmatmul.bf16.gmra.mxu0 %v7630_v60  ;;  %v4078_v35 = vpop.f32.mrf.mxu2 }
 0x50b   : > { %4475 = vst [vmem:[%s7661_s24 + $0xa0] sm:$0xff] %v4411_v59  ;;  %v4079_v42 = vadd.f32 %v4078_v35, %v3989_v34 }
 0x50d   : > { %v4337_v31 = vadd.f32 %v4336_v32, %v4079_v42 }
 0x50e   : > { %v4249_v30 = vpop.f32.mrf.mxu3 }
 0x50f   : > { %v4412_v62 = vmax.f32 %v4337_v31, 0.0  ;;  %v4338_v56 = vpop.f32.mrf.mxu0  ;;  %v4250_v53 = vadd.f32 %v4249_v30, %v7478_v10 }
 0x511   : > { %4476 = vst [vmem:[%s7661_s24 + $0xa8] sm:$0xff] %v4412_v62  ;;  %v4413_v44 = vmax.f32 %v4250_v53, 0.0 }
 0x512   : > { %v4080_v50 = vpop.f32.mrf.mxu2 }
 0x513   : > { %4477 = vst [vmem:[%s7661_s24 + $0xb0] sm:$0xff] %v4413_v44  ;;  %v4081_v25 = vadd.f32 %v4080_v50, %v3991_v7  ;;  %4291 = vmatmul.bf16.gmra.mxu3 %v7644_v2  ;;  %v4004_v7 = vpop.f32.mrf.mxu1 }
 0x515   : > { %v4339_v60 = vadd.f32 %v4338_v56, %v4081_v25 }
 0x516   : > { %v4252_v4 = vpop.f32.mrf.mxu3 }
 0x517   : > { %v4414_v18 = vmax.f32 %v4339_v60, 0.0  ;;  %v4341_v34 = vpop.f32.mrf.mxu0  ;;  %v4253_v37 = vadd.f32 %v4252_v4, %v7487_v27  ;;  %4122 = vmatmul.bf16.gmra.mxu2 %v7982_v39 }
 0x519   : > { %4478 = vst [vmem:[%s7661_s24 + $0xb8] sm:$0xff] %v4414_v18  ;;  %v4415_v10 = vmax.f32 %v4253_v37, 0.0 }
 0x51a   : > { %4380 = vmatmul.bf16.gmra.mxu0 %v7644_v2  ;;  %v4083_v58 = vpop.f32.mrf.mxu2 }
 0x51b   : > { %4479 = vst [vmem:[%s7661_s24 + $0xc0] sm:$0xff] %v4415_v10  ;;  %v4084_v3 = vadd.f32 %v4083_v58, %v3994_v54  ;;  %v4006_v40 = vpop.f32.mrf.mxu1 }
 0x51d   : > { %v4342_v61 = vadd.f32 %v4341_v34, %v4084_v3 }
 0x51e   : > { %v4254_v8 = vpop.f32.mrf.mxu3 }
 0x51f   : > { %v4416_v22 = vmax.f32 %v4342_v61, 0.0  ;;  %v4343_v36 = vpop.f32.mrf.mxu0  ;;  %v4255_v28 = vadd.f32 %v4254_v8, %v7495_v17 }
 0x521   : > { %4480 = vst [vmem:[%s7661_s24 + $0xc8] sm:$0xff] %v4416_v22  ;;  %v4417_v27 = vmax.f32 %v4255_v28, 0.0 }
 0x522   : > { %v4085_v39 = vpop.f32.mrf.mxu2 }
 0x523   : > { %4481 = vst [vmem:[%s7661_s24 + $0xd0] sm:$0xff] %v4417_v27  ;;  %v4086_v14 = vadd.f32 %v4085_v39, %v3996_v21  ;;  %4296 = vmatmul.bf16.gmra.mxu3 %v7656_v52  ;;  %v4009_v59 = vpop.f32.mrf.mxu1 }
 0x525   : > { %v4344_v2 = vadd.f32 %v4343_v36, %v4086_v14 }
 0x526   : > { %v4257_v19 = vpop.f32.mrf.mxu3 }
 0x527   : > { %v4418_v54 = vmax.f32 %v4344_v2, 0.0  ;;  %v4346_v45 = vpop.f32.mrf.mxu0  ;;  %v4258_v11 = vadd.f32 %v4257_v19, %v7504_v41  ;;  %4127 = vmatmul.bf16.gmra.mxu2 %v7984_v15 }
 0x529   : > { %4482 = vst [vmem:[%s7661_s24 + $0xd8] sm:$0xff] %v4418_v54  ;;  %v4419_v17 = vmax.f32 %v4258_v11, 0.0 }
 0x52a   : > { %4385 = vmatmul.bf16.gmra.mxu0 %v7656_v52  ;;  %v4088_v9 = vpop.f32.mrf.mxu2 }
 0x52b   : > { %4483 = vst [vmem:[%s7661_s24 + $0xe0] sm:$0xff] %v4419_v17  ;;  %v4089_v21 = vadd.f32 %v4088_v9, %v3999_v26  ;;  %v4011_v53 = vpop.f32.mrf.mxu1 }
 0x52d   : > { %v4347_v55 = vadd.f32 %v4346_v45, %v4089_v21 }
 0x52e   : > { %v4259_v38 = vpop.f32.mrf.mxu3 }
 0x52f   : > { %v4420_v6 = vmax.f32 %v4347_v55, 0.0  ;;  %v4348_v32 = vpop.f32.mrf.mxu0  ;;  %v4260_v1 = vadd.f32 %v4259_v38, %v7514_v43 }
 0x531   : > { %4484 = vst [vmem:[%s7661_s24 + $0xe8] sm:$0xff] %v4420_v6  ;;  %v4421_v41 = vmax.f32 %v4260_v1, 0.0 }
 0x532   : > { %v4090_v15 = vpop.f32.mrf.mxu2 }
 0x533   : > { %4485 = vst [vmem:[%s7661_s24 + $0xf0] sm:$0xff] %v4421_v41  ;;  %v4091_v35 = vadd.f32 %v4090_v15, %v4001_v51 }
 0x535   : > { %v4349_v42 = vadd.f32 %v4348_v32, %v4091_v35 }
 0x536   : > { %v4262_v52 = vpop.f32.mrf.mxu3 }
 0x537   : > { %v4422_v31 = vmax.f32 %v4349_v42, 0.0  ;;  %v4351_v30 = vpop.f32.mrf.mxu0  ;;  %v4263_v26 = vadd.f32 %v4262_v52, %v7524_v20  ;;  %v4014_v20 = vpop.f32.mrf.mxu1 }
 0x539   : > { %4486 = vst [vmem:[%s7661_s24 + $0xf8] sm:$0xff] %v4422_v31  ;;  %v4423_v62 = vmax.f32 %v4263_v26, 0.0 }
 0x53a   : > { %v4093_v56 = vpop.f32.mrf.mxu2 }
 0x53b   : > { %4487 = vst [vmem:[%s7661_s24 + $0x100] sm:$0xff] %v4423_v62  ;;  %v4094_v43 = vadd.f32 %v4093_v56, %v4004_v7 }
 0x53d   : > { %v4352_v44 = vadd.f32 %v4351_v30, %v4094_v43 }
 0x53e   : > { %v4264_v50 = vpop.f32.mrf.mxu3 }
 0x53f   : > { %v4424_v25 = vmax.f32 %v4352_v44, 0.0  ;;  %v4353_v60 = vpop.f32.mrf.mxu0  ;;  %v4265_v51 = vadd.f32 %v4264_v50, %v7534_v23  ;;  %v4016_v28 = vpop.f32.mrf.mxu1 }
 0x541   : > { %4488 = vst [vmem:[%s7661_s24 + $0x108] sm:$0xff] %v4424_v25  ;;  %v4425_v4 = vmax.f32 %v4265_v51, 0.0 }
 0x542   : > { %v4095_v18 = vpop.f32.mrf.mxu2 }
 0x543   : > { %4489 = vst [vmem:[%s7661_s24 + $0x110] sm:$0xff] %v4425_v4  ;;  %v4096_v34 = vadd.f32 %v4095_v18, %v4006_v40 }
 0x545   : > { %v4354_v37 = vadd.f32 %v4353_v60, %v4096_v34 }
 0x546   : > { %v4267_v10 = vpop.f32.mrf.mxu3 }
 0x547   : > { %v4426_v58 = vmax.f32 %v4354_v37, 0.0  ;;  %v4356_v3 = vpop.f32.mrf.mxu0  ;;  %v4268_v7 = vadd.f32 %v4267_v10, %v7542_v29  ;;  %v4019_v9 = vpop.f32.mrf.mxu1 }
 0x549   : > { %4490 = vst [vmem:[%s7661_s24 + $0x118] sm:$0xff] %v4426_v58  ;;  %v4427_v61 = vmax.f32 %v4268_v7, 0.0 }
 0x54a   : > { %v4098_v8 = vpop.f32.mrf.mxu2 }
 0x54b   : > { %4491 = vst [vmem:[%s7661_s24 + $0x120] sm:$0xff] %v4427_v61  ;;  %v4099_v22 = vadd.f32 %v4098_v8, %v4009_v59 }
 0x54d   : > { %v4357_v23 = vadd.f32 %v4356_v3, %v4099_v22 }
 0x54e   : > { %v4269_v36 = vpop.f32.mrf.mxu3 }
 0x54f   : > { %v4428_v27 = vmax.f32 %v4357_v23, 0.0  ;;  %v4358_v39 = vpop.f32.mrf.mxu0  ;;  %v4270_v14 = vadd.f32 %v4269_v36, %v7552_v49  ;;  %v4021_v35 = vpop.f32.mrf.mxu1 }
 0x551   : > { %4492 = vst [vmem:[%s7661_s24 + $0x128] sm:$0xff] %v4428_v27  ;;  %v4429_v2 = vmax.f32 %v4270_v14, 0.0 }
 0x552   : > { %v4100_v19 = vpop.f32.mrf.mxu2 }
 0x553   : > { %4493 = vst [vmem:[%s7661_s24 + $0x130] sm:$0xff] %v4429_v2  ;;  %v4101_v40 = vadd.f32 %v4100_v19, %v4011_v53 }
 0x555   : > { %v4359_v29 = vadd.f32 %v4358_v39, %v4101_v40 }
 0x556   : > { %v4272_v54 = vpop.f32.mrf.mxu3 }
 0x557   : > { %v4430_v45 = vmax.f32 %v4359_v29, 0.0  ;;  %v4361_v11 = vpop.f32.mrf.mxu0  ;;  %v4273_v17 = vadd.f32 %v4272_v54, %v7562_v24 }
 0x559   : > { %4494 = vst [vmem:[%s7661_s24 + $0x138] sm:$0xff] %v4430_v45  ;;  %v4431_v21 = vmax.f32 %v4273_v17, 0.0 }
 0x55a   : > { %v4103_v55 = vpop.f32.mrf.mxu2 }
 0x55b   : > { %4495 = vst [vmem:[%s7661_s24 + $0x140] sm:$0xff] %v4431_v21  ;;  %v4104_v38 = vadd.f32 %v4103_v55, %v4014_v20 }
 0x55d   : > { %v4362_v49 = vadd.f32 %v4361_v11, %v4104_v38 }
 0x55e   : > { %v4274_v6 = vpop.f32.mrf.mxu3 }
 0x55f   : > { %v4432_v32 = vmax.f32 %v4362_v49, 0.0  ;;  %v4363_v1 = vpop.f32.mrf.mxu0  ;;  %v4275_v59 = vadd.f32 %v4274_v6, %v7572_v46  ;;  %v4024_v46 = vpop.f32.mrf.mxu1 }
 0x561   : > { %4496 = vst [vmem:[%s7661_s24 + $0x148] sm:$0xff] %v4432_v32  ;;  %v4433_v41 = vmax.f32 %v4275_v59, 0.0 }
 0x562   : > { %v4105_v15 = vpop.f32.mrf.mxu2 }
 0x563   : > { %4497 = vst [vmem:[%s7661_s24 + $0x150] sm:$0xff] %v4433_v41  ;;  %v4106_v24 = vadd.f32 %v4105_v15, %v4016_v28 }
 0x565   : > { %v4364_v42 = vadd.f32 %v4363_v1, %v4106_v24 }
 0x566   : > { %v4277_v52 = vpop.f32.mrf.mxu3 }
 0x567   : > { %v4434_v31 = vmax.f32 %v4364_v42, 0.0  ;;  %v4366_v30 = vpop.f32.mrf.mxu0  ;;  %v4278_v26 = vadd.f32 %v4277_v52, %v7580_v47  ;;  %v4026_v20 = vpop.f32.mrf.mxu1 }
 0x569   : > { %4498 = vst [vmem:[%s7661_s24 + $0x158] sm:$0xff] %v4434_v31  ;;  %v4435_v62 = vmax.f32 %v4278_v26, 0.0 }
 0x56a   : > { %v4108_v56 = vpop.f32.mrf.mxu2 }
 0x56b   : > { %4499 = vst [vmem:[%s7661_s24 + $0x160] sm:$0xff] %v4435_v62  ;;  %v4109_v53 = vadd.f32 %v4108_v56, %v4019_v9 }
 0x56d   : > { %v4367_v43 = vadd.f32 %v4366_v30, %v4109_v53 }
 0x56e   : > { %v4279_v44 = vpop.f32.mrf.mxu3 }
 0x56f   : > { %v4436_v50 = vmax.f32 %v4367_v43, 0.0  ;;  %v4368_v25 = vpop.f32.mrf.mxu0  ;;  %v4280_v60 = vadd.f32 %v4279_v44, %v7588_v48  ;;  %v4029_v28 = vpop.f32.mrf.mxu1 }
 0x571   : > { %4500 = vst [vmem:[%s7661_s24 + $0x168] sm:$0xff] %v4436_v50  ;;  %v4437_v51 = vmax.f32 %v4280_v60, 0.0 }
 0x572   : > { %v4110_v4 = vpop.f32.mrf.mxu2 }
 0x573   : > { %4501 = vst [vmem:[%s7661_s24 + $0x170] sm:$0xff] %v4437_v51  ;;  %v4111_v18 = vadd.f32 %v4110_v4, %v4021_v35 }
 0x575   : > { %v4369_v47 = vadd.f32 %v4368_v25, %v4111_v18 }
 0x576   : > { %v4282_v34 = vpop.f32.mrf.mxu3 }
 0x577   : > { %v4438_v37 = vmax.f32 %v4369_v47, 0.0  ;;  %v4371_v10 = vpop.f32.mrf.mxu0  ;;  %v4283_v58 = vadd.f32 %v4282_v34, %v7596_v33  ;;  %v4031_v45 = vpop.f32.mrf.mxu1 }
 0x579   : > { %4502 = vst [vmem:[%s7661_s24 + $0x178] sm:$0xff] %v4438_v37  ;;  %v4439_v3 = vmax.f32 %v4283_v58, 0.0 }
 0x57a   : > { %v4113_v7 = vpop.f32.mrf.mxu2 }
 0x57b   : > { %4503 = vst [vmem:[%s7661_s24 + $0x180] sm:$0xff] %v4439_v3  ;;  %v4114_v61 = vadd.f32 %v4113_v7, %v4024_v46 }
 0x57d   : > { %v4372_v48 = vadd.f32 %v4371_v10, %v4114_v61 }
 0x57e   : > { %v4284_v8 = vpop.f32.mrf.mxu3 }
 0x57f   : > { %v4440_v22 = vmax.f32 %v4372_v48, 0.0  ;;  %v4373_v23 = vpop.f32.mrf.mxu0  ;;  %v4285_v36 = vadd.f32 %v4284_v8, %v7604_v16 }
 0x581   : > { %4504 = vst [vmem:[%s7661_s24 + $0x188] sm:$0xff] %v4440_v22  ;;  %v4441_v27 = vmax.f32 %v4285_v36, 0.0 }
 0x582   : > { %v4115_v39 = vpop.f32.mrf.mxu2 }
 0x583   : > { %4505 = vst [vmem:[%s7661_s24 + $0x190] sm:$0xff] %v4441_v27  ;;  %v4116_v14 = vadd.f32 %v4115_v39, %v4026_v20 }
 0x585   : > { %v4374_v33 = vadd.f32 %v4373_v23, %v4116_v14 }
 0x586   : > { %v4287_v2 = vpop.f32.mrf.mxu3 }
 0x587   : > { %v4442_v19 = vmax.f32 %v4374_v33, 0.0  ;;  %v4376_v40 = vpop.f32.mrf.mxu0  ;;  %v4288_v29 = vadd.f32 %v4287_v2, %v7612_v0  ;;  %v4034_v0 = vpop.f32.mrf.mxu1 }
 0x589   : > { %4506 = vst [vmem:[%s7661_s24 + $0x198] sm:$0xff] %v4442_v19  ;;  %v4443_v54 = vmax.f32 %v4288_v29, 0.0 }
 0x58a   : > { %v4118_v11 = vpop.f32.mrf.mxu2 }
 0x58b   : > { %4507 = vst [vmem:[%s7661_s24 + $0x1a0] sm:$0xff] %v4443_v54  ;;  %v4119_v16 = vadd.f32 %v4118_v11, %v4029_v28 }
 0x58d   : > { %v4377_v17 = vadd.f32 %v4376_v40, %v4119_v16 }
 0x58e   : > { %v4289_v9 = vpop.f32.mrf.mxu3 }
 0x58f   : > { %v4444_v21 = vmax.f32 %v4377_v17, 0.0  ;;  %v4378_v55 = vpop.f32.mrf.mxu0  ;;  %v4290_v38 = vadd.f32 %v4289_v9, %v7620_v63  ;;  %v4036_v31 = vpop.f32.mrf.mxu1 }
 0x591   : > { %4508 = vst [vmem:[%s7661_s24 + $0x1a8] sm:$0xff] %v4444_v21  ;;  %v4445_v49 = vmax.f32 %v4290_v38, 0.0 }
 0x592   : > { %v4120_v6 = vpop.f32.mrf.mxu2 }
 0x593   : > { %4509 = vst [vmem:[%s7661_s24 + $0x1b0] sm:$0xff] %v4445_v49  ;;  %v4121_v32 = vadd.f32 %v4120_v6, %v4031_v45 }
 0x595   : > { %v4379_v1 = vadd.f32 %v4378_v55, %v4121_v32 }
 0x596   : > { %v4292_v59 = vpop.f32.mrf.mxu3 }
 0x597   : > { %v4446_v41 = vmax.f32 %v4379_v1, 0.0  ;;  %v4381_v15 = vpop.f32.mrf.mxu0  ;;  %v4293_v35 = vadd.f32 %v4292_v59, %v7627_v12  ;;  %v4039_v60 = vpop.f32.mrf.mxu1 }
 0x599   : > { %4510 = vst [vmem:[%s7661_s24 + $0x1b8] sm:$0xff] %v4446_v41  ;;  %v4447_v24 = vmax.f32 %v4293_v35, 0.0 }
 0x59a   : > { %v4123_v42 = vpop.f32.mrf.mxu2 }
 0x59b   : > { %4511 = vst [vmem:[%s7661_s24 + $0x1c0] sm:$0xff] %v4447_v24  ;;  %v4124_v52 = vadd.f32 %v4123_v42, %v4034_v0 }
 0x59d   : > { %v4382_v63 = vadd.f32 %v4381_v15, %v4124_v52 }
 0x59e   : > { %v4294_v30 = vpop.f32.mrf.mxu3 }
 0x59f   : > { %v4448_v26 = vmax.f32 %v4382_v63, 0.0  ;;  %v4295_v62 = vadd.f32 %v4294_v30, %v7634_v57  ;;  %v4383_v56 = vpop.f32.mrf.mxu0  ;;  %v4041_v10 = vpop.f32.mrf.mxu1 }
 0x5a1   : > { %4512 = vst [vmem:[%s7661_s24 + $0x1c8] sm:$0xff] %v4448_v26  ;;  %v4449_v53 = vmax.f32 %v4295_v62, 0.0 }
 0x5a2   : > { %v4125_v46 = vpop.f32.mrf.mxu2 }
 0x5a3   : > { %4513 = vst [vmem:[%s7661_s24 + $0x1d0] sm:$0xff] %v4449_v53  ;;  %v4126_v12 = vadd.f32 %v4125_v46, %v4036_v31 }
 0x5a5   : > { %v4384_v43 = vadd.f32 %v4383_v56, %v4126_v12 }
 0x5a6   : > { %v4297_v44 = vpop.f32.mrf.mxu3 }
 0x5a7   : > { %v4450_v50 = vmax.f32 %v4384_v43, 0.0  ;;  %v4298_v25 = vadd.f32 %v4297_v44, %v7641_v5  ;;  %v4386_v4 = vpop.f32.mrf.mxu0 }
 0x5a9   : > { %4514 = vst [vmem:[%s7661_s24 + $0x1d8] sm:$0xff] %v4450_v50  ;;  %v4451_v51 = vmax.f32 %v4298_v25, 0.0 }
 0x5aa   : > { %v4128_v57 = vpop.f32.mrf.mxu2 }
 0x5ab   : > { %4515 = vst [vmem:[%s7661_s24 + $0x1e0] sm:$0xff] %v4451_v51  ;;  %v4129_v18 = vadd.f32 %v4128_v57, %v4039_v60 }
 0x5ad   : > { %v4387_v47 = vadd.f32 %v4386_v4, %v4129_v18 }
 0x5ae   : > { %v4299_v34 = vpop.f32.mrf.mxu3 }
 0x5af   : > { %v4452_v20 = vmax.f32 %v4387_v47, 0.0  ;;  %v4300_v37 = vadd.f32 %v4299_v34, %v7648_v13  ;;  %v4388_v7 = vpop.f32.mrf.mxu0 }
 0x5b1   : > { %4516 = vst [vmem:[%s7661_s24 + $0x1e8] sm:$0xff] %v4452_v20  ;;  %v4453_v5 = vmax.f32 %v4300_v37, 0.0 }
 0x5b2   : > { %v4130_v58 = vpop.f32.mrf.mxu2 }
 0x5b3   : > { %4517 = vst [vmem:[%s7661_s24 + $0x1f0] sm:$0xff] %v4453_v5  ;;  %v4131_v3 = vadd.f32 %v4130_v58, %v4041_v10 }
 0x5b5   : > { %v4389_v61 = vadd.f32 %v4388_v7, %v4131_v3 }
 0x5b7   : > { %v4454_v48 = vmax.f32 %v4389_v61, 0.0 }
 0x5b9   : > { %4518 = vst [vmem:[%s7661_s24 + $0x1f8] sm:$0xff] %v4454_v48 }
 0x5ba   : > { %6367 = shalt.err (!%p6364_p10)
}
 0x5bb   : > { %s6427_s28 = smov 256   ;;  %s6428_s17 = smov 16  }
 0x5bc   : > { %6112 = dma.vmem_to_hbm [thread:$0]  (%p6543_p3), %s4533_s9, 8192, %s4535_s7, %s4520_s22, %s6427_s28, %s6427_s28, %s6428_s17  }
 0x5bd PF: > { %s4549_s24 = sand.u32 1, %s6402_s18   ;;  %p8030_p12 = scmp.ge.s32.totalorder %s6414_s21, 2 }
 0x5be   : > { %s4550_s29 = scalar_lea.sflag [#allocation5], %s4549_s24 }
 0x5bf   : > { %p6132_p13 = pnand %p8030_p12, %p6494_p6 }
 0x5c1   : > { %p6133_p0 = pneg %p6132_p13 }
 0x5c3   : > { %6397 = dma.done.wait (%p6133_p0), %s4550_s29, 8192  }
 0x5c4   : > { %6399 = vsyncadd (%p6133_p0), %s4550_s29, 4294959104  ;;  %p20_p5 = scmp.ge.s32.totalorder %s6533_s13, 4   ;;  %s8031_s18 = smov %s6406_s19 }
 0x5c5   : > { %s8032_s19 = smov %s6410_s20  ;;  %s8033_s20 = smov %s6549_s11 }
 0x5c6   : > { %s8034_s21 = smov %s6533_s13  ;;  %22 = sbr.rel (!%p20_p5) target bundleno = 7 (0x7), region = 106 }
 0x5cb   :  { %4556 = vsyncpa [#allocation4], 1 }
 0x5cc   :  { %4558 = vsyncpa [#allocation4 + $0x1], 1 }
 0x5cd   :  { %4559 = vsyncpa [#allocation7], 1 }
 0x5ce   :  { %4560 = vsyncpa [#allocation10], 1 }
 0x5cf   :  { %4561 = vsyncpa [#allocation5], 1 }
 0x5d0   :  { %4563 = vsyncpa [#allocation5 + $0x1], 1 }

</bundles_post_ra>
